<compile_context>
chip_gen: v5e
topology: v5e:2x2
jax: 0.10.0
libtpu: 0.0.40
codegen_flags: <defaults>
</compile_context>

<pallas_src>
from functools import partial

import jax
import jax.numpy as jnp
from jax.experimental import pallas as pl
from jax.experimental.pallas import tpu as pltpu

MM_DTYPE = jnp.bfloat16  # MXU input dtype; accumulation/epilogue stay in f32


# ----------------------------------------------------------------------------
# Pallas kernel: out(R, TN) = W(R, K) @ A(K, TN) with fused bias / PReLU / residual
# ----------------------------------------------------------------------------
def _mm_kernel(has_alpha, has_res, res_sign, *refs):
    w_ref, a_ref, bias_ref = refs[0], refs[1], refs[2]
    pos = 3
    alpha_ref = None
    if has_alpha:
        alpha_ref = refs[pos]
        pos += 1
    res_ref = None
    if has_res:
        res_ref = refs[pos]
        pos += 1
    o_ref = refs[pos]

    acc = jnp.dot(w_ref[...], a_ref[...], preferred_element_type=jnp.float32)
    acc = acc + bias_ref[...]                              # (R, 1) broadcast over lanes
    if has_alpha:                                          # per-output-channel PReLU
        acc = jnp.where(acc >= 0.0, acc, acc * alpha_ref[...])
    if has_res:                                            # fused residual add/sub
        acc = acc + res_sign * res_ref[...]
    o_ref[...] = acc


def _pick_tile(m):
    # Lane tile on M: large enough for HBM bandwidth, but keep >=2 blocks when possible
    # so the "parallel" grid axis engages both TensorCores on v7x.
    if m <= 256:
        return 128
    if m <= 1024:
        return 256
    return 512


def matmul_T(wmat, a, bias, alpha=None, res=None, res_sign=1.0):
    """wmat: (R, K), a: (K, M), bias: (R, 1) f32, alpha: (R, 1) f32 or None,
    res: (R, M) or None. Returns f32 (R, M)."""
    R, K = wmat.shape
    M = a.shape[1]
    TN = _pick_tile(M)
    Mp = ((M + TN - 1) // TN) * TN

    wmat = wmat.astype(MM_DTYPE)
    a = a.astype(MM_DTYPE)
    if Mp != M:  # pad only the ragged tail (never triggers at the power-of-two test shapes)
        a = jnp.pad(a, ((0, 0), (0, Mp - M)))

    in_specs = [
        pl.BlockSpec((R, K), lambda i: (0, 0)),
        pl.BlockSpec((K, TN), lambda i: (0, i)),
        pl.BlockSpec((R, 1), lambda i: (0, 0)),
    ]
    args = [wmat, a, bias]
    has_alpha = alpha is not None
    if has_alpha:
        in_specs.append(pl.BlockSpec((R, 1), lambda i: (0, 0)))
        args.append(alpha)
    has_res = res is not None
    if has_res:
        res = res.astype(jnp.float32)
        if Mp != M:
            res = jnp.pad(res, ((0, 0), (0, Mp - M)))
        in_specs.append(pl.BlockSpec((R, TN), lambda i: (0, i)))
        args.append(res)

    out = pl.pallas_call(
        partial(_mm_kernel, has_alpha, has_res, float(res_sign)),
        out_shape=jax.ShapeDtypeStruct((R, Mp), jnp.float32),
        grid_spec=pltpu.PrefetchScalarGridSpec(
            num_scalar_prefetch=0,
            grid=(Mp // TN,),
            in_specs=in_specs,
            out_specs=pl.BlockSpec((R, TN), lambda i: (0, i)),
        ),
        compiler_params=pltpu.CompilerParams(
            dimension_semantics=("parallel",),
            vmem_limit_bytes=32 * 1024 * 1024,
        ),
    )(*args)
    return out[:, :M] if Mp != M else out


# ----------------------------------------------------------------------------
# Layout helpers (plain-JAX data movement; hot math stays in the Pallas matmul)
# ----------------------------------------------------------------------------
def im2col_T(x, kh, kw, stride, pad):
    """x: (C, N, H, W) -> (C*kh*kw, N*Ho*Wo), rows ordered (c, ky, kx) to match the
    weight flattening used by pack_conv / pack_conv_transpose."""
    C, N, H, W = x.shape
    p_lo, p_hi = (pad, pad) if isinstance(pad, int) else pad
    if kh == 1 and kw == 1 and stride == 1 and p_lo == 0 and p_hi == 0:
        return x.reshape(C, N * H * W), (N, H, W)
    xp = jnp.pad(x, ((0, 0), (0, 0), (p_lo, p_hi), (p_lo, p_hi)))
    Hp, Wp = H + p_lo + p_hi, W + p_lo + p_hi
    Ho = (Hp - kh) // stride + 1
    Wo = (Wp - kw) // stride + 1
    taps = []
    for i in range(kh):
        for j in range(kw):
            taps.append(xp[:, :, i:i + stride * Ho:stride, j:j + stride * Wo:stride])
    a = jnp.stack(taps, axis=1)  # (C, kh*kw, N, Ho, Wo)
    return a.reshape(C * kh * kw, N * Ho * Wo), (N, Ho, Wo)


def pixel_shuffle_cnhw(x, r):
    C, N, H, W = x.shape
    Co = C // (r * r)
    y = x.reshape(Co, r, r, N, H, W).transpose(0, 3, 4, 1, 5, 2)
    return y.reshape(Co, N, H * r, W * r)


def inv_pixel_shuffle_flat(x, r):
    # (C, N, r*H, r*W) -> (C*r*r, N*H*W) with channel order (c, a, b): the phase layout
    # used by the sub-pixel decomposition of ConvTranspose2d (for residual fusion).
    C, N, Hr, Wr = x.shape
    H, W = Hr // r, Wr // r
    y = x.reshape(C, N, H, r, W, r).transpose(0, 3, 5, 1, 2, 4)
    return y.reshape(C * r * r, N * H * W)


def conv_cnhw(x, pk, res_flat=None, res_sign=1.0):
    a, (N, Ho, Wo) = im2col_T(x.astype(MM_DTYPE), pk["kh"], pk["kw"], pk["stride"], pk["pad"])
    out = matmul_T(pk["wmat"], a, pk["bias"], pk["alpha"], res_flat, res_sign)
    return out.reshape(pk["wmat"].shape[0], N, Ho, Wo)


def apply_projection(pk, x, res=None, res_sign=1.0):
    """Apply a packed projection conv; optional residual (already at the output
    resolution/channels) is fused into the epilogue: out = PReLU(conv(x)) + res_sign*res."""
    if pk["kind"] == "shuffle_conv":
        x = pixel_shuffle_cnhw(x, pk["scale"])
        rf = None if res is None else res.reshape(res.shape[0], -1)
        return conv_cnhw(x, pk, rf, res_sign)
    if pk["kind"] == "conv_t":
        rf = None if res is None else inv_pixel_shuffle_flat(res, pk["scale"])
        y = conv_cnhw(x, pk, rf, res_sign)            # (Cout*s*s, N, H, W) phase layout
        return pixel_shuffle_cnhw(y, pk["scale"])
    rf = None if res is None else res.reshape(res.shape[0], -1)
    return conv_cnhw(x, pk, rf, res_sign)


# ----------------------------------------------------------------------------
# Parameter construction + packing (weight reshapes / casts hoisted out of forward)
# ----------------------------------------------------------------------------
def key_iter(key):
    while True:
        key, sub = jax.random.split(key)
        yield sub


def _init(key, shape, scale=0.05):
    return jax.random.normal(key, shape, jnp.float32) * scale


def _col(v):
    return None if v is None else v.reshape(-1, 1).astype(jnp.float32)


def pack_conv(w, b, alpha, stride, pad):
    # w: (Cout, Cin, kh, kw)  (PyTorch Conv2d layout)
    Cout, Cin, kh, kw = w.shape
    return dict(kind="conv", kh=kh, kw=kw, stride=stride, pad=pad,
                wmat=w.reshape(Cout, Cin * kh * kw).astype(MM_DTYPE),
                bias=_col(b), alpha=_col(alpha))


def pack_shuffle_conv(w, b, alpha, scale):
    pk = pack_conv(w, b, alpha, 1, 0)
    pk["kind"] = "shuffle_conv"
    pk["scale"] = scale
    return pk


def pack_conv_transpose(w, b, alpha, stride, pad):
    # w: (Cin, Cout, k, k)  (PyTorch ConvTranspose2d layout).
    # Sub-pixel decomposition: y[:, s*h+a, s*w+b] = sum_m,n x[:, h+m, w+n] * W[:, :, a+p-s*m, b+p-s*n]
    # -> one stride-1 conv with Cout*s*s phase channels + pixel shuffle.
    Cin, Cout, k, _ = w.shape
    s, p = stride, pad
    m_min = -((k - 1 - p) // s)
    m_max = (s - 1 + p) // s
    kk = m_max - m_min + 1
    F = jnp.zeros((Cout, s, s, Cin, kk, kk), jnp.float32)
    for a in range(s):
        for bb in range(s):
            for jy in range(kk):
                ky = a + p - s * (m_min + jy)
                if not 0 <= ky < k:
                    continue
                for jx in range(kk):
                    kx = bb + p - s * (m_min + jx)
                    if not 0 <= kx < k:
                        continue
                    F = F.at[:, a, bb, :, jy, jx].set(w[:, :, ky, kx].T)
    R = Cout * s * s
    return dict(kind="conv_t", scale=s, kh=kk, kw=kk, stride=1, pad=(-m_min, m_max),
                wmat=F.reshape(R, Cin * kk * kk).astype(MM_DTYPE),
                bias=_col(jnp.repeat(b, s * s)),
                alpha=None if alpha is None else _col(jnp.repeat(alpha, s * s)))


KSP = {2: (6, 2, 2), 4: (8, 4, 2), 8: (12, 8, 2)}


def make_projection_conv(keys, in_c, out_c, scale, up, shuffle, alpha):
    k, s, p = KSP[scale]
    if up:
        if shuffle:
            ci = in_c // (scale * scale)
            w = _init(next(keys), (out_c, ci, 1, 1))
            b = _init(next(keys), (out_c,))
            return pack_shuffle_conv(w, b, alpha, scale)
        w = _init(next(keys), (in_c, out_c, k, k))
        b = _init(next(keys), (out_c,))
        return pack_conv_transpose(w, b, alpha, s, p)
    w = _init(next(keys), (out_c, in_c, k, k))
    b = _init(next(keys), (out_c,))
    return pack_conv(w, b, alpha, s, p)


def make_dense_projection(keys, in_channels, nr, scale, up, bottleneck, use_shuffle=False):
    params = {}
    if bottleneck:
        w = _init(next(keys), (nr, in_channels, 1, 1))
        b = _init(next(keys), (nr,))
        params["bottleneck"] = pack_conv(w, b, jnp.full((nr,), 0.25, jnp.float32), 1, 0)
        inter = nr
    else:
        params["bottleneck"] = None
        inter = in_channels
    params["conv_1"] = make_projection_conv(keys, inter, nr, scale, up, not use_shuffle,
                                            jnp.full((nr,), 0.25, jnp.float32))
    params["conv_2"] = make_projection_conv(keys, nr, inter, scale, not up, use_shuffle,
                                            jnp.full((inter,), 0.25, jnp.float32))
    params["conv_3"] = make_projection_conv(keys, inter, nr, scale, up, use_shuffle,
                                            jnp.full((nr,), 0.25, jnp.float32))
    return params


def dense_projection_forward(p, x):
    if p["bottleneck"] is not None:
        x = apply_projection(p["bottleneck"], x)
    a0 = apply_projection(p["conv_1"], x)
    # e   = PReLU(conv_2(a0)) - x   (residual subtraction fused into the matmul epilogue)
    e = apply_projection(p["conv_2"], a0, res=x, res_sign=-1.0)
    # out = PReLU(conv_3(e)) + a0   (residual addition fused into the matmul epilogue)
    out = apply_projection(p["conv_3"], e, res=a0, res_sign=1.0)
    # TODO(synk): PixelAttention (use_pa=True) path not implemented — class not provided; config disables it.
    return out


def freq_split(x):
    # TODO(synk): original FreqSplit calls torch.stft on a 4-D feature map (not runnable in
    # PyTorch either); substituted with a DFT along the last spatial axis producing
    # real/imag parts of identical shape so the rest of the network composes.
    C, N, H, W = x.shape
    n = jnp.arange(W, dtype=jnp.float32)[:, None]
    k = jnp.arange(W, dtype=jnp.float32)[None, :]
    ang = 2.0 * jnp.pi * n * k / W
    dft = jnp.concatenate([jnp.cos(ang).T, -jnp.sin(ang).T], axis=0)   # (2W, W): [cos; -sin]
    flat_t = x.reshape(C * N * H, W).T                                  # (W, M)
    out = matmul_T(dft, flat_t, jnp.zeros((2 * W, 1), jnp.float32))     # one matmul for both parts
    real = out[:W].T.reshape(C, N, H, W)
    imag = out[W:].T.reshape(C, N, H, W)
    return real, imag


# ----------------------------------------------------------------------------
# FDDBPN
# ----------------------------------------------------------------------------
class Args:
    scale = [2]
    depth = 2
    n_colors = 3
    n_feats_in = 8
    n_feats = 8
    n_feats_out = 3
    use_pa = False
    use_pa_learn_scale = False
    use_pa_bridge = False
    use_hessian_attn = False
    use_hessian_out_attn = False
    no_upsampling = False
    use_mean_shift = False


def make_fddbpn(args, key):
    keys = key_iter(key)
    scale = args.scale[0]
    p = {}
    w1 = _init(next(keys), (args.n_feats_in, args.n_colors, 3, 3))
    b1 = _init(next(keys), (args.n_feats_in,))
    w2 = _init(next(keys), (args.n_feats, args.n_feats_in, 1, 1))
    b2 = _init(next(keys), (args.n_feats,))
    p["initial"] = [
        pack_conv(w1, b1, jnp.full((args.n_feats_in,), 0.25, jnp.float32), 1, 1),
        pack_conv(w2, b2, jnp.full((args.n_feats,), 0.25, jnp.float32), 1, 0),
    ]
    p["upmodules"] = []
    channels = args.n_feats
    for i in range(args.depth):
        p["upmodules"].append(make_dense_projection(
            keys, channels, args.n_feats, scale, up=True,
            bottleneck=i > 1, use_shuffle=(i % 2 == 1)))
        if i != 0:
            channels += args.n_feats
    total_depth = args.depth if args.no_upsampling else args.depth - 1
    p["downmodules"] = []
    channels = args.n_feats
    for i in range(total_depth):
        p["downmodules"].append(make_dense_projection(
            keys, channels, args.n_feats, scale, up=False, bottleneck=i != 0))
        channels += args.n_feats
    # TODO(synk): reference __init__ declares depth*n_feats reconstruction input channels but
    # the forward concatenates real+imag branches (2*depth*n_feats); sized to match the forward.
    rec_in = 2 * args.depth * args.n_feats
    wr = _init(next(keys), (args.n_feats_out, rec_in, 3, 3))
    br = _init(next(keys), (args.n_feats_out,))
    p["reconstruction"] = pack_conv(wr, br, None, 1, 1)
    p["total_depth"] = total_depth
    return p


def fddbpn_forward(p, args, x_nchw):
    # Internal layout is CNHW (channel-major): matmul outputs are lane-dense over N*H*W
    # and feed the next conv without any transpose.
    x = x_nchw.transpose(1, 0, 2, 3)
    N = x.shape[1]
    for layer in p["initial"]:
        x = apply_projection(layer, x)
    x_real, x_imag = freq_split(x)
    # real/imag branches share all weights -> batch them along N (halves kernel launches)
    xc = jnp.concatenate([x_real, x_imag], axis=1)           # (C, 2N, H, W)
    h_list, l_list = [], []
    # TODO(synk): reference forward cats the empty h-list on iteration 0 and appends up-projections
    # to the l-list (raises in PyTorch); we follow the standard DBPN dataflow it implements.
    for i in range(p["total_depth"]):
        l_in = xc if i == 0 else jnp.concatenate(l_list, axis=0)
        h_list.append(dense_projection_forward(p["upmodules"][i], l_in))
        h_cat = jnp.concatenate(h_list, axis=0)
        l_list.append(dense_projection_forward(p["downmodules"][i], h_cat))
    if args.no_upsampling:
        h_cat = jnp.concatenate(h_list, axis=0)
        l_list.append(dense_projection_forward(p["downmodules"][-1], h_cat))
    h_list.append(dense_projection_forward(p["upmodules"][-1],
                                           jnp.concatenate(l_list, axis=0)))
    # un-batch real/imag and concatenate channels as [real blocks..., imag blocks...]
    h = jnp.concatenate([hh[:, :N] for hh in h_list] + [hh[:, N:] for hh in h_list], axis=0)
    out = apply_projection(p["reconstruction"], h)           # no PReLU on reconstruction
    return out.transpose(1, 0, 2, 3)                         # back to NCHW


if __name__ == "__main__":
    args = Args()
    root = jax.random.PRNGKey(0)
    k_param, k_input = jax.random.split(root)
    params = make_fddbpn(args, k_param)
    x = jax.random.normal(k_input, (2, args.n_colors, 8, 8), jnp.float32)
    fwd = jax.jit(lambda inp: fddbpn_forward(params, args, inp))
    out = jax.block_until_ready(fwd(x))
    assert out.shape == (2, args.n_feats_out, 16, 16), out.shape
    assert bool(jnp.all(jnp.isfinite(out)))
    print("KERNEL_OK")
</pallas_src>

<mosaic_0001>
module attributes {stable_mosaic.version = 11 : i64} {
  func.func @_mm_kernel(%arg0: i32, %arg1: memref<8x8xbf16, #tpu.memory_space<vmem>>, %arg2: memref<8x128xbf16, #tpu.memory_space<vmem>>, %arg3: memref<8x1xf32, #tpu.memory_space<vmem>>, %arg4: memref<8x1xf32, #tpu.memory_space<vmem>>, %arg5: memref<8x128xf32, #tpu.memory_space<vmem>>) attributes {dimension_semantics = [#tpu.dimension_semantics<parallel>], iteration_bounds = array<i64: 1>, scalar_prefetch = 0 : i64, scratch_operands = 0 : i64, tpu.core_type = #tpu.core_type<tc>, window_params = [{pipeline_mode = #tpu.pipeline_mode<synchronous>, transform_indices = @transform_0, window_bounds = array<i64: 8, 8>}, {transform_indices = @transform_1, window_bounds = array<i64: 8, 128>}, {pipeline_mode = #tpu.pipeline_mode<synchronous>, transform_indices = @transform_2, window_bounds = array<i64: 8, 1>}, {pipeline_mode = #tpu.pipeline_mode<synchronous>, transform_indices = @transform_3, window_bounds = array<i64: 8, 1>}, {transform_indices = @transform_4, window_bounds = array<i64: 8, 128>}]} {
    %c0 = arith.constant 0 : index
    %c0_0 = arith.constant 0 : index
    %0 = vector.load %arg1[%c0, %c0_0] : memref<8x8xbf16, #tpu.memory_space<vmem>>, vector<8x8xbf16>
    %c0_1 = arith.constant 0 : index
    %c0_2 = arith.constant 0 : index
    %1 = vector.load %arg2[%c0_1, %c0_2] : memref<8x128xbf16, #tpu.memory_space<vmem>>, vector<8x128xbf16>
    %cst = arith.constant dense<0.000000e+00> : vector<8x128xf32>
    %2 = tpu.matmul %0, %1, %cst {dimension_numbers = #tpu.dot_dimension_numbers<[1], [0], [0], [1], [0, 0, 1, 1], [], []>} : vector<8x8xbf16>, vector<8x128xbf16>, vector<8x128xf32> -> vector<8x128xf32>
    %c0_3 = arith.constant 0 : index
    %c0_4 = arith.constant 0 : index
    %3 = vector.load %arg3[%c0_3, %c0_4] : memref<8x1xf32, #tpu.memory_space<vmem>>, vector<8x1xf32>
    %4 = vector.broadcast %3 : vector<8x1xf32> to vector<8x128xf32>
    %5 = arith.addf %2, %4 : vector<8x128xf32>
    %cst_5 = arith.constant 0.000000e+00 : f32
    %6 = vector.broadcast %cst_5 : f32 to vector<8x128xf32>
    %7 = arith.cmpf oge, %5, %6 : vector<8x128xf32>
    %c0_6 = arith.constant 0 : index
    %c0_7 = arith.constant 0 : index
    %8 = vector.load %arg4[%c0_6, %c0_7] : memref<8x1xf32, #tpu.memory_space<vmem>>, vector<8x1xf32>
    %9 = vector.broadcast %8 : vector<8x1xf32> to vector<8x128xf32>
    %10 = arith.mulf %5, %9 : vector<8x128xf32>
    %11 = arith.select %7, %5, %10 : vector<8x128xi1>, vector<8x128xf32>
    %c0_8 = arith.constant 0 : index
    %c0_9 = arith.constant 0 : index
    %12 = vector.load %arg5[%c0_8, %c0_9] : memref<8x128xf32, #tpu.memory_space<vmem>>, vector<8x128xf32>
    tpu.vector_store %arg5[%c0_8, %c0_9], %11 {strides = array<i32>} : memref<8x128xf32, #tpu.memory_space<vmem>>, vector<8x128xf32>,
    return
  }
  func.func @transform_0(%arg0: i32) -> (i32, i32) {
    %c0_i32 = arith.constant 0 : i32
    %c0_i32_0 = arith.constant 0 : i32
    %c0_i32_1 = arith.constant 0 : i32
    return %c0_i32, %c0_i32_0 : i32, i32
  }
  func.func @transform_1(%arg0: i32) -> (i32, i32) {
    %c0_i32 = arith.constant 0 : i32
    %c0_i32_0 = arith.constant 0 : i32
    return %c0_i32, %arg0 : i32, i32
  }
  func.func @transform_2(%arg0: i32) -> (i32, i32) {
    %c0_i32 = arith.constant 0 : i32
    %c0_i32_0 = arith.constant 0 : i32
    %c0_i32_1 = arith.constant 0 : i32
    return %c0_i32, %c0_i32_0 : i32, i32
  }
  func.func @transform_3(%arg0: i32) -> (i32, i32) {
    %c0_i32 = arith.constant 0 : i32
    %c0_i32_0 = arith.constant 0 : i32
    %c0_i32_1 = arith.constant 0 : i32
    return %c0_i32, %c0_i32_0 : i32, i32
  }
  func.func @transform_4(%arg0: i32) -> (i32, i32) {
    %c0_i32 = arith.constant 0 : i32
    %c0_i32_0 = arith.constant 0 : i32
    return %c0_i32, %arg0 : i32, i32
  }
}

module attributes {stable_mosaic.version = 11 : i64} {
  func.func @_mm_kernel(%arg0: i32, %arg1: memref<8x27xbf16, #tpu.memory_space<vmem>>, %arg2: memref<27x128xbf16, #tpu.memory_space<vmem>>, %arg3: memref<8x1xf32, #tpu.memory_space<vmem>>, %arg4: memref<8x1xf32, #tpu.memory_space<vmem>>, %arg5: memref<8x128xf32, #tpu.memory_space<vmem>>) attributes {dimension_semantics = [#tpu.dimension_semantics<parallel>], iteration_bounds = array<i64: 1>, scalar_prefetch = 0 : i64, scratch_operands = 0 : i64, tpu.core_type = #tpu.core_type<tc>, window_params = [{pipeline_mode = #tpu.pipeline_mode<synchronous>, transform_indices = @transform_0, window_bounds = array<i64: 8, 27>}, {transform_indices = @transform_1, window_bounds = array<i64: 27, 128>}, {pipeline_mode = #tpu.pipeline_mode<synchronous>, transform_indices = @transform_2, window_bounds = array<i64: 8, 1>}, {pipeline_mode = #tpu.pipeline_mode<synchronous>, transform_indices = @transform_3, window_bounds = array<i64: 8, 1>}, {transform_indices = @transform_4, window_bounds = array<i64: 8, 128>}]} {
    %c0 = arith.constant 0 : index
    %c0_0 = arith.constant 0 : index
    %0 = vector.load %arg1[%c0, %c0_0] : memref<8x27xbf16, #tpu.memory_space<vmem>>, vector<8x27xbf16>
    %c0_1 = arith.constant 0 : index
    %c0_2 = arith.constant 0 : index
    %1 = vector.load %arg2[%c0_1, %c0_2] : memref<27x128xbf16, #tpu.memory_space<vmem>>, vector<27x128xbf16>
    %cst = arith.constant dense<0.000000e+00> : vector<8x128xf32>
    %2 = tpu.matmul %0, %1, %cst {dimension_numbers = #tpu.dot_dimension_numbers<[1], [0], [0], [1], [0, 0, 1, 1], [], []>} : vector<8x27xbf16>, vector<27x128xbf16>, vector<8x128xf32> -> vector<8x128xf32>
    %c0_3 = arith.constant 0 : index
    %c0_4 = arith.constant 0 : index
    %3 = vector.load %arg3[%c0_3, %c0_4] : memref<8x1xf32, #tpu.memory_space<vmem>>, vector<8x1xf32>
    %4 = vector.broadcast %3 : vector<8x1xf32> to vector<8x128xf32>
    %5 = arith.addf %2, %4 : vector<8x128xf32>
    %cst_5 = arith.constant 0.000000e+00 : f32
    %6 = vector.broadcast %cst_5 : f32 to vector<8x128xf32>
    %7 = arith.cmpf oge, %5, %6 : vector<8x128xf32>
    %c0_6 = arith.constant 0 : index
    %c0_7 = arith.constant 0 : index
    %8 = vector.load %arg4[%c0_6, %c0_7] : memref<8x1xf32, #tpu.memory_space<vmem>>, vector<8x1xf32>
    %9 = vector.broadcast %8 : vector<8x1xf32> to vector<8x128xf32>
    %10 = arith.mulf %5, %9 : vector<8x128xf32>
    %11 = arith.select %7, %5, %10 : vector<8x128xi1>, vector<8x128xf32>
    %c0_8 = arith.constant 0 : index
    %c0_9 = arith.constant 0 : index
    %12 = vector.load %arg5[%c0_8, %c0_9] : memref<8x128xf32, #tpu.memory_space<vmem>>, vector<8x128xf32>
    tpu.vector_store %arg5[%c0_8, %c0_9], %11 {strides = array<i32>} : memref<8x128xf32, #tpu.memory_space<vmem>>, vector<8x128xf32>,
    return
  }
  func.func @transform_0(%arg0: i32) -> (i32, i32) {
    %c0_i32 = arith.constant 0 : i32
    %c0_i32_0 = arith.constant 0 : i32
    %c0_i32_1 = arith.constant 0 : i32
    return %c0_i32, %c0_i32_0 : i32, i32
  }
  func.func @transform_1(%arg0: i32) -> (i32, i32) {
    %c0_i32 = arith.constant 0 : i32
    %c0_i32_0 = arith.constant 0 : i32
    return %c0_i32, %arg0 : i32, i32
  }
  func.func @transform_2(%arg0: i32) -> (i32, i32) {
    %c0_i32 = arith.constant 0 : i32
    %c0_i32_0 = arith.constant 0 : i32
    %c0_i32_1 = arith.constant 0 : i32
    return %c0_i32, %c0_i32_0 : i32, i32
  }
  func.func @transform_3(%arg0: i32) -> (i32, i32) {
    %c0_i32 = arith.constant 0 : i32
    %c0_i32_0 = arith.constant 0 : i32
    %c0_i32_1 = arith.constant 0 : i32
    return %c0_i32, %c0_i32_0 : i32, i32
  }
  func.func @transform_4(%arg0: i32) -> (i32, i32) {
    %c0_i32 = arith.constant 0 : i32
    %c0_i32_0 = arith.constant 0 : i32
    return %c0_i32, %arg0 : i32, i32
  }
}

module attributes {stable_mosaic.version = 11 : i64} {
  func.func @_mm_kernel(%arg0: i32, %arg1: memref<16x8xbf16, #tpu.memory_space<vmem>>, %arg2: memref<8x128xbf16, #tpu.memory_space<vmem>>, %arg3: memref<16x1xf32, #tpu.memory_space<vmem>>, %arg4: memref<16x128xf32, #tpu.memory_space<vmem>>) attributes {dimension_semantics = [#tpu.dimension_semantics<parallel>], iteration_bounds = array<i64: 1>, scalar_prefetch = 0 : i64, scratch_operands = 0 : i64, tpu.core_type = #tpu.core_type<tc>, window_params = [{pipeline_mode = #tpu.pipeline_mode<synchronous>, transform_indices = @transform_0, window_bounds = array<i64: 16, 8>}, {transform_indices = @transform_1, window_bounds = array<i64: 8, 128>}, {pipeline_mode = #tpu.pipeline_mode<synchronous>, transform_indices = @transform_2, window_bounds = array<i64: 16, 1>}, {transform_indices = @transform_3, window_bounds = array<i64: 16, 128>}]} {
    %c0 = arith.constant 0 : index
    %c0_0 = arith.constant 0 : index
    %0 = vector.load %arg1[%c0, %c0_0] : memref<16x8xbf16, #tpu.memory_space<vmem>>, vector<16x8xbf16>
    %c0_1 = arith.constant 0 : index
    %c0_2 = arith.constant 0 : index
    %1 = vector.load %arg2[%c0_1, %c0_2] : memref<8x128xbf16, #tpu.memory_space<vmem>>, vector<8x128xbf16>
    %cst = arith.constant dense<0.000000e+00> : vector<16x128xf32>
    %2 = tpu.matmul %0, %1, %cst {dimension_numbers = #tpu.dot_dimension_numbers<[1], [0], [0], [1], [0, 0, 1, 1], [], []>} : vector<16x8xbf16>, vector<8x128xbf16>, vector<16x128xf32> -> vector<16x128xf32>
    %c0_3 = arith.constant 0 : index
    %c0_4 = arith.constant 0 : index
    %3 = vector.load %arg3[%c0_3, %c0_4] : memref<16x1xf32, #tpu.memory_space<vmem>>, vector<16x1xf32>
    %4 = vector.broadcast %3 : vector<16x1xf32> to vector<16x128xf32>
    %5 = arith.addf %2, %4 : vector<16x128xf32>
    %c0_5 = arith.constant 0 : index
    %c0_6 = arith.constant 0 : index
    %6 = vector.load %arg4[%c0_5, %c0_6] : memref<16x128xf32, #tpu.memory_space<vmem>>, vector<16x128xf32>
    tpu.vector_store %arg4[%c0_5, %c0_6], %5 {strides = array<i32>} : memref<16x128xf32, #tpu.memory_space<vmem>>, vector<16x128xf32>,
    return
  }
  func.func @transform_0(%arg0: i32) -> (i32, i32) {
    %c0_i32 = arith.constant 0 : i32
    %c0_i32_0 = arith.constant 0 : i32
    %c0_i32_1 = arith.constant 0 : i32
    return %c0_i32, %c0_i32_0 : i32, i32
  }
  func.func @transform_1(%arg0: i32) -> (i32, i32) {
    %c0_i32 = arith.constant 0 : i32
    %c0_i32_0 = arith.constant 0 : i32
    return %c0_i32, %arg0 : i32, i32
  }
  func.func @transform_2(%arg0: i32) -> (i32, i32) {
    %c0_i32 = arith.constant 0 : i32
    %c0_i32_0 = arith.constant 0 : i32
    %c0_i32_1 = arith.constant 0 : i32
    return %c0_i32, %c0_i32_0 : i32, i32
  }
  func.func @transform_3(%arg0: i32) -> (i32, i32) {
    %c0_i32 = arith.constant 0 : i32
    %c0_i32_0 = arith.constant 0 : i32
    return %c0_i32, %arg0 : i32, i32
  }
}

module attributes {stable_mosaic.version = 11 : i64} {
  func.func @_mm_kernel(%arg0: i32, %arg1: memref<8x2xbf16, #tpu.memory_space<vmem>>, %arg2: memref<2x256xbf16, #tpu.memory_space<vmem>>, %arg3: memref<8x1xf32, #tpu.memory_space<vmem>>, %arg4: memref<8x1xf32, #tpu.memory_space<vmem>>, %arg5: memref<8x256xf32, #tpu.memory_space<vmem>>) attributes {dimension_semantics = [#tpu.dimension_semantics<parallel>], iteration_bounds = array<i64: 4>, scalar_prefetch = 0 : i64, scratch_operands = 0 : i64, tpu.core_type = #tpu.core_type<tc>, window_params = [{pipeline_mode = #tpu.pipeline_mode<synchronous>, transform_indices = @transform_0, window_bounds = array<i64: 8, 2>}, {transform_indices = @transform_1, window_bounds = array<i64: 2, 256>}, {pipeline_mode = #tpu.pipeline_mode<synchronous>, transform_indices = @transform_2, window_bounds = array<i64: 8, 1>}, {pipeline_mode = #tpu.pipeline_mode<synchronous>, transform_indices = @transform_3, window_bounds = array<i64: 8, 1>}, {transform_indices = @transform_4, window_bounds = array<i64: 8, 256>}]} {
    %c0 = arith.constant 0 : index
    %c0_0 = arith.constant 0 : index
    %0 = vector.load %arg1[%c0, %c0_0] : memref<8x2xbf16, #tpu.memory_space<vmem>>, vector<8x2xbf16>
    %c0_1 = arith.constant 0 : index
    %c0_2 = arith.constant 0 : index
    %1 = vector.load %arg2[%c0_1, %c0_2] : memref<2x256xbf16, #tpu.memory_space<vmem>>, vector<2x256xbf16>
    %cst = arith.constant dense<0.000000e+00> : vector<8x256xf32>
    %2 = tpu.matmul %0, %1, %cst {dimension_numbers = #tpu.dot_dimension_numbers<[1], [0], [0], [1], [0, 0, 1, 1], [], []>} : vector<8x2xbf16>, vector<2x256xbf16>, vector<8x256xf32> -> vector<8x256xf32>
    %c0_3 = arith.constant 0 : index
    %c0_4 = arith.constant 0 : index
    %3 = vector.load %arg3[%c0_3, %c0_4] : memref<8x1xf32, #tpu.memory_space<vmem>>, vector<8x1xf32>
    %4 = vector.broadcast %3 : vector<8x1xf32> to vector<8x256xf32>
    %5 = arith.addf %2, %4 : vector<8x256xf32>
    %cst_5 = arith.constant 0.000000e+00 : f32
    %6 = vector.broadcast %cst_5 : f32 to vector<8x256xf32>
    %7 = arith.cmpf oge, %5, %6 : vector<8x256xf32>
    %c0_6 = arith.constant 0 : index
    %c0_7 = arith.constant 0 : index
    %8 = vector.load %arg4[%c0_6, %c0_7] : memref<8x1xf32, #tpu.memory_space<vmem>>, vector<8x1xf32>
    %9 = vector.broadcast %8 : vector<8x1xf32> to vector<8x256xf32>
    %10 = arith.mulf %5, %9 : vector<8x256xf32>
    %11 = arith.select %7, %5, %10 : vector<8x256xi1>, vector<8x256xf32>
    %c0_8 = arith.constant 0 : index
    %c0_9 = arith.constant 0 : index
    %12 = vector.load %arg5[%c0_8, %c0_9] : memref<8x256xf32, #tpu.memory_space<vmem>>, vector<8x256xf32>
    tpu.vector_store %arg5[%c0_8, %c0_9], %11 {strides = array<i32>} : memref<8x256xf32, #tpu.memory_space<vmem>>, vector<8x256xf32>,
    return
  }
  func.func @transform_0(%arg0: i32) -> (i32, i32) {
    %c0_i32 = arith.constant 0 : i32
    %c0_i32_0 = arith.constant 0 : i32
    %c0_i32_1 = arith.constant 0 : i32
    return %c0_i32, %c0_i32_0 : i32, i32
  }
  func.func @transform_1(%arg0: i32) -> (i32, i32) {
    %c0_i32 = arith.constant 0 : i32
    %c0_i32_0 = arith.constant 0 : i32
    return %c0_i32, %arg0 : i32, i32
  }
  func.func @transform_2(%arg0: i32) -> (i32, i32) {
    %c0_i32 = arith.constant 0 : i32
    %c0_i32_0 = arith.constant 0 : i32
    %c0_i32_1 = arith.constant 0 : i32
    return %c0_i32, %c0_i32_0 : i32, i32
  }
  func.func @transform_3(%arg0: i32) -> (i32, i32) {
    %c0_i32 = arith.constant 0 : i32
    %c0_i32_0 = arith.constant 0 : i32
    %c0_i32_1 = arith.constant 0 : i32
    return %c0_i32, %c0_i32_0 : i32, i32
  }
  func.func @transform_4(%arg0: i32) -> (i32, i32) {
    %c0_i32 = arith.constant 0 : i32
    %c0_i32_0 = arith.constant 0 : i32
    return %c0_i32, %arg0 : i32, i32
  }
}

module attributes {stable_mosaic.version = 11 : i64} {
  func.func @_mm_kernel(%arg0: i32, %arg1: memref<8x288xbf16, #tpu.memory_space<vmem>>, %arg2: memref<288x128xbf16, #tpu.memory_space<vmem>>, %arg3: memref<8x1xf32, #tpu.memory_space<vmem>>, %arg4: memref<8x1xf32, #tpu.memory_space<vmem>>, %arg5: memref<8x128xf32, #tpu.memory_space<vmem>>, %arg6: memref<8x128xf32, #tpu.memory_space<vmem>>) attributes {dimension_semantics = [#tpu.dimension_semantics<parallel>], iteration_bounds = array<i64: 2>, scalar_prefetch = 0 : i64, scratch_operands = 0 : i64, tpu.core_type = #tpu.core_type<tc>, window_params = [{pipeline_mode = #tpu.pipeline_mode<synchronous>, transform_indices = @transform_0, window_bounds = array<i64: 8, 288>}, {transform_indices = @transform_1, window_bounds = array<i64: 288, 128>}, {pipeline_mode = #tpu.pipeline_mode<synchronous>, transform_indices = @transform_2, window_bounds = array<i64: 8, 1>}, {pipeline_mode = #tpu.pipeline_mode<synchronous>, transform_indices = @transform_3, window_bounds = array<i64: 8, 1>}, {transform_indices = @transform_4, window_bounds = array<i64: 8, 128>}, {transform_indices = @transform_5, window_bounds = array<i64: 8, 128>}]} {
    %c0 = arith.constant 0 : index
    %c0_0 = arith.constant 0 : index
    %0 = vector.load %arg1[%c0, %c0_0] : memref<8x288xbf16, #tpu.memory_space<vmem>>, vector<8x288xbf16>
    %c0_1 = arith.constant 0 : index
    %c0_2 = arith.constant 0 : index
    %1 = vector.load %arg2[%c0_1, %c0_2] : memref<288x128xbf16, #tpu.memory_space<vmem>>, vector<288x128xbf16>
    %cst = arith.constant dense<0.000000e+00> : vector<8x128xf32>
    %2 = tpu.matmul %0, %1, %cst {dimension_numbers = #tpu.dot_dimension_numbers<[1], [0], [0], [1], [0, 0, 1, 1], [], []>} : vector<8x288xbf16>, vector<288x128xbf16>, vector<8x128xf32> -> vector<8x128xf32>
    %c0_3 = arith.constant 0 : index
    %c0_4 = arith.constant 0 : index
    %3 = vector.load %arg3[%c0_3, %c0_4] : memref<8x1xf32, #tpu.memory_space<vmem>>, vector<8x1xf32>
    %4 = vector.broadcast %3 : vector<8x1xf32> to vector<8x128xf32>
    %5 = arith.addf %2, %4 : vector<8x128xf32>
    %cst_5 = arith.constant 0.000000e+00 : f32
    %6 = vector.broadcast %cst_5 : f32 to vector<8x128xf32>
    %7 = arith.cmpf oge, %5, %6 : vector<8x128xf32>
    %c0_6 = arith.constant 0 : index
    %c0_7 = arith.constant 0 : index
    %8 = vector.load %arg4[%c0_6, %c0_7] : memref<8x1xf32, #tpu.memory_space<vmem>>, vector<8x1xf32>
    %9 = vector.broadcast %8 : vector<8x1xf32> to vector<8x128xf32>
    %10 = arith.mulf %5, %9 : vector<8x128xf32>
    %11 = arith.select %7, %5, %10 : vector<8x128xi1>, vector<8x128xf32>
    %c0_8 = arith.constant 0 : index
    %c0_9 = arith.constant 0 : index
    %12 = vector.load %arg5[%c0_8, %c0_9] : memref<8x128xf32, #tpu.memory_space<vmem>>, vector<8x128xf32>
    %cst_10 = arith.constant -1.000000e+00 : f32
    %13 = vector.broadcast %cst_10 : f32 to vector<8x128xf32>
    %14 = arith.mulf %13, %12 : vector<8x128xf32>
    %15 = arith.addf %11, %14 : vector<8x128xf32>
    %c0_11 = arith.constant 0 : index
    %c0_12 = arith.constant 0 : index
    %16 = vector.load %arg6[%c0_11, %c0_12] : memref<8x128xf32, #tpu.memory_space<vmem>>, vector<8x128xf32>
    tpu.vector_store %arg6[%c0_11, %c0_12], %15 {strides = array<i32>} : memref<8x128xf32, #tpu.memory_space<vmem>>, vector<8x128xf32>,
    return
  }
  func.func @transform_0(%arg0: i32) -> (i32, i32) {
    %c0_i32 = arith.constant 0 : i32
    %c0_i32_0 = arith.constant 0 : i32
    %c0_i32_1 = arith.constant 0 : i32
    return %c0_i32, %c0_i32_0 : i32, i32
  }
  func.func @transform_1(%arg0: i32) -> (i32, i32) {
    %c0_i32 = arith.constant 0 : i32
    %c0_i32_0 = arith.constant 0 : i32
    return %c0_i32, %arg0 : i32, i32
  }
  func.func @transform_2(%arg0: i32) -> (i32, i32) {
    %c0_i32 = arith.constant 0 : i32
    %c0_i32_0 = arith.constant 0 : i32
    %c0_i32_1 = arith.constant 0 : i32
    return %c0_i32, %c0_i32_0 : i32, i32
  }
  func.func @transform_3(%arg0: i32) -> (i32, i32) {
    %c0_i32 = arith.constant 0 : i32
    %c0_i32_0 = arith.constant 0 : i32
    %c0_i32_1 = arith.constant 0 : i32
    return %c0_i32, %c0_i32_0 : i32, i32
  }
  func.func @transform_4(%arg0: i32) -> (i32, i32) {
    %c0_i32 = arith.constant 0 : i32
    %c0_i32_0 = arith.constant 0 : i32
    return %c0_i32, %arg0 : i32, i32
  }
  func.func @transform_5(%arg0: i32) -> (i32, i32) {
    %c0_i32 = arith.constant 0 : i32
    %c0_i32_0 = arith.constant 0 : i32
    return %c0_i32, %arg0 : i32, i32
  }
}

module attributes {stable_mosaic.version = 11 : i64} {
  func.func @_mm_kernel(%arg0: i32, %arg1: memref<32x72xbf16, #tpu.memory_space<vmem>>, %arg2: memref<72x128xbf16, #tpu.memory_space<vmem>>, %arg3: memref<32x1xf32, #tpu.memory_space<vmem>>, %arg4: memref<32x1xf32, #tpu.memory_space<vmem>>, %arg5: memref<32x128xf32, #tpu.memory_space<vmem>>, %arg6: memref<32x128xf32, #tpu.memory_space<vmem>>) attributes {dimension_semantics = [#tpu.dimension_semantics<parallel>], iteration_bounds = array<i64: 2>, scalar_prefetch = 0 : i64, scratch_operands = 0 : i64, tpu.core_type = #tpu.core_type<tc>, window_params = [{pipeline_mode = #tpu.pipeline_mode<synchronous>, transform_indices = @transform_0, window_bounds = array<i64: 32, 72>}, {transform_indices = @transform_1, window_bounds = array<i64: 72, 128>}, {pipeline_mode = #tpu.pipeline_mode<synchronous>, transform_indices = @transform_2, window_bounds = array<i64: 32, 1>}, {pipeline_mode = #tpu.pipeline_mode<synchronous>, transform_indices = @transform_3, window_bounds = array<i64: 32, 1>}, {transform_indices = @transform_4, window_bounds = array<i64: 32, 128>}, {transform_indices = @transform_5, window_bounds = array<i64: 32, 128>}]} {
    %c0 = arith.constant 0 : index
    %c0_0 = arith.constant 0 : index
    %0 = vector.load %arg1[%c0, %c0_0] : memref<32x72xbf16, #tpu.memory_space<vmem>>, vector<32x72xbf16>
    %c0_1 = arith.constant 0 : index
    %c0_2 = arith.constant 0 : index
    %1 = vector.load %arg2[%c0_1, %c0_2] : memref<72x128xbf16, #tpu.memory_space<vmem>>, vector<72x128xbf16>
    %cst = arith.constant dense<0.000000e+00> : vector<32x128xf32>
    %2 = tpu.matmul %0, %1, %cst {dimension_numbers = #tpu.dot_dimension_numbers<[1], [0], [0], [1], [0, 0, 1, 1], [], []>} : vector<32x72xbf16>, vector<72x128xbf16>, vector<32x128xf32> -> vector<32x128xf32>
    %c0_3 = arith.constant 0 : index
    %c0_4 = arith.constant 0 : index
    %3 = vector.load %arg3[%c0_3, %c0_4] : memref<32x1xf32, #tpu.memory_space<vmem>>, vector<32x1xf32>
    %4 = vector.broadcast %3 : vector<32x1xf32> to vector<32x128xf32>
    %5 = arith.addf %2, %4 : vector<32x128xf32>
    %cst_5 = arith.constant 0.000000e+00 : f32
    %6 = vector.broadcast %cst_5 : f32 to vector<32x128xf32>
    %7 = arith.cmpf oge, %5, %6 : vector<32x128xf32>
    %c0_6 = arith.constant 0 : index
    %c0_7 = arith.constant 0 : index
    %8 = vector.load %arg4[%c0_6, %c0_7] : memref<32x1xf32, #tpu.memory_space<vmem>>, vector<32x1xf32>
    %9 = vector.broadcast %8 : vector<32x1xf32> to vector<32x128xf32>
    %10 = arith.mulf %5, %9 : vector<32x128xf32>
    %11 = arith.select %7, %5, %10 : vector<32x128xi1>, vector<32x128xf32>
    %c0_8 = arith.constant 0 : index
    %c0_9 = arith.constant 0 : index
    %12 = vector.load %arg5[%c0_8, %c0_9] : memref<32x128xf32, #tpu.memory_space<vmem>>, vector<32x128xf32>
    %cst_10 = arith.constant 1.000000e+00 : f32
    %13 = vector.broadcast %cst_10 : f32 to vector<32x128xf32>
    %14 = arith.mulf %13, %12 : vector<32x128xf32>
    %15 = arith.addf %11, %14 : vector<32x128xf32>
    %c0_11 = arith.constant 0 : index
    %c0_12 = arith.constant 0 : index
    %16 = vector.load %arg6[%c0_11, %c0_12] : memref<32x128xf32, #tpu.memory_space<vmem>>, vector<32x128xf32>
    tpu.vector_store %arg6[%c0_11, %c0_12], %15 {strides = array<i32>} : memref<32x128xf32, #tpu.memory_space<vmem>>, vector<32x128xf32>,
    return
  }
  func.func @transform_0(%arg0: i32) -> (i32, i32) {
    %c0_i32 = arith.constant 0 : i32
    %c0_i32_0 = arith.constant 0 : i32
    %c0_i32_1 = arith.constant 0 : i32
    return %c0_i32, %c0_i32_0 : i32, i32
  }
  func.func @transform_1(%arg0: i32) -> (i32, i32) {
    %c0_i32 = arith.constant 0 : i32
    %c0_i32_0 = arith.constant 0 : i32
    return %c0_i32, %arg0 : i32, i32
  }
  func.func @transform_2(%arg0: i32) -> (i32, i32) {
    %c0_i32 = arith.constant 0 : i32
    %c0_i32_0 = arith.constant 0 : i32
    %c0_i32_1 = arith.constant 0 : i32
    return %c0_i32, %c0_i32_0 : i32, i32
  }
  func.func @transform_3(%arg0: i32) -> (i32, i32) {
    %c0_i32 = arith.constant 0 : i32
    %c0_i32_0 = arith.constant 0 : i32
    %c0_i32_1 = arith.constant 0 : i32
    return %c0_i32, %c0_i32_0 : i32, i32
  }
  func.func @transform_4(%arg0: i32) -> (i32, i32) {
    %c0_i32 = arith.constant 0 : i32
    %c0_i32_0 = arith.constant 0 : i32
    return %c0_i32, %arg0 : i32, i32
  }
  func.func @transform_5(%arg0: i32) -> (i32, i32) {
    %c0_i32 = arith.constant 0 : i32
    %c0_i32_0 = arith.constant 0 : i32
    return %c0_i32, %arg0 : i32, i32
  }
}

module attributes {stable_mosaic.version = 11 : i64} {
  func.func @_mm_kernel(%arg0: i32, %arg1: memref<8x288xbf16, #tpu.memory_space<vmem>>, %arg2: memref<288x128xbf16, #tpu.memory_space<vmem>>, %arg3: memref<8x1xf32, #tpu.memory_space<vmem>>, %arg4: memref<8x1xf32, #tpu.memory_space<vmem>>, %arg5: memref<8x128xf32, #tpu.memory_space<vmem>>) attributes {dimension_semantics = [#tpu.dimension_semantics<parallel>], iteration_bounds = array<i64: 2>, scalar_prefetch = 0 : i64, scratch_operands = 0 : i64, tpu.core_type = #tpu.core_type<tc>, window_params = [{pipeline_mode = #tpu.pipeline_mode<synchronous>, transform_indices = @transform_0, window_bounds = array<i64: 8, 288>}, {transform_indices = @transform_1, window_bounds = array<i64: 288, 128>}, {pipeline_mode = #tpu.pipeline_mode<synchronous>, transform_indices = @transform_2, window_bounds = array<i64: 8, 1>}, {pipeline_mode = #tpu.pipeline_mode<synchronous>, transform_indices = @transform_3, window_bounds = array<i64: 8, 1>}, {transform_indices = @transform_4, window_bounds = array<i64: 8, 128>}]} {
    %c0 = arith.constant 0 : index
    %c0_0 = arith.constant 0 : index
    %0 = vector.load %arg1[%c0, %c0_0] : memref<8x288xbf16, #tpu.memory_space<vmem>>, vector<8x288xbf16>
    %c0_1 = arith.constant 0 : index
    %c0_2 = arith.constant 0 : index
    %1 = vector.load %arg2[%c0_1, %c0_2] : memref<288x128xbf16, #tpu.memory_space<vmem>>, vector<288x128xbf16>
    %cst = arith.constant dense<0.000000e+00> : vector<8x128xf32>
    %2 = tpu.matmul %0, %1, %cst {dimension_numbers = #tpu.dot_dimension_numbers<[1], [0], [0], [1], [0, 0, 1, 1], [], []>} : vector<8x288xbf16>, vector<288x128xbf16>, vector<8x128xf32> -> vector<8x128xf32>
    %c0_3 = arith.constant 0 : index
    %c0_4 = arith.constant 0 : index
    %3 = vector.load %arg3[%c0_3, %c0_4] : memref<8x1xf32, #tpu.memory_space<vmem>>, vector<8x1xf32>
    %4 = vector.broadcast %3 : vector<8x1xf32> to vector<8x128xf32>
    %5 = arith.addf %2, %4 : vector<8x128xf32>
    %cst_5 = arith.constant 0.000000e+00 : f32
    %6 = vector.broadcast %cst_5 : f32 to vector<8x128xf32>
    %7 = arith.cmpf oge, %5, %6 : vector<8x128xf32>
    %c0_6 = arith.constant 0 : index
    %c0_7 = arith.constant 0 : index
    %8 = vector.load %arg4[%c0_6, %c0_7] : memref<8x1xf32, #tpu.memory_space<vmem>>, vector<8x1xf32>
    %9 = vector.broadcast %8 : vector<8x1xf32> to vector<8x128xf32>
    %10 = arith.mulf %5, %9 : vector<8x128xf32>
    %11 = arith.select %7, %5, %10 : vector<8x128xi1>, vector<8x128xf32>
    %c0_8 = arith.constant 0 : index
    %c0_9 = arith.constant 0 : index
    %12 = vector.load %arg5[%c0_8, %c0_9] : memref<8x128xf32, #tpu.memory_space<vmem>>, vector<8x128xf32>
    tpu.vector_store %arg5[%c0_8, %c0_9], %11 {strides = array<i32>} : memref<8x128xf32, #tpu.memory_space<vmem>>, vector<8x128xf32>,
    return
  }
  func.func @transform_0(%arg0: i32) -> (i32, i32) {
    %c0_i32 = arith.constant 0 : i32
    %c0_i32_0 = arith.constant 0 : i32
    %c0_i32_1 = arith.constant 0 : i32
    return %c0_i32, %c0_i32_0 : i32, i32
  }
  func.func @transform_1(%arg0: i32) -> (i32, i32) {
    %c0_i32 = arith.constant 0 : i32
    %c0_i32_0 = arith.constant 0 : i32
    return %c0_i32, %arg0 : i32, i32
  }
  func.func @transform_2(%arg0: i32) -> (i32, i32) {
    %c0_i32 = arith.constant 0 : i32
    %c0_i32_0 = arith.constant 0 : i32
    %c0_i32_1 = arith.constant 0 : i32
    return %c0_i32, %c0_i32_0 : i32, i32
  }
  func.func @transform_3(%arg0: i32) -> (i32, i32) {
    %c0_i32 = arith.constant 0 : i32
    %c0_i32_0 = arith.constant 0 : i32
    %c0_i32_1 = arith.constant 0 : i32
    return %c0_i32, %c0_i32_0 : i32, i32
  }
  func.func @transform_4(%arg0: i32) -> (i32, i32) {
    %c0_i32 = arith.constant 0 : i32
    %c0_i32_0 = arith.constant 0 : i32
    return %c0_i32, %arg0 : i32, i32
  }
}

module attributes {stable_mosaic.version = 11 : i64} {
  func.func @_mm_kernel(%arg0: i32, %arg1: memref<32x72xbf16, #tpu.memory_space<vmem>>, %arg2: memref<72x128xbf16, #tpu.memory_space<vmem>>, %arg3: memref<32x1xf32, #tpu.memory_space<vmem>>, %arg4: memref<32x1xf32, #tpu.memory_space<vmem>>, %arg5: memref<32x128xf32, #tpu.memory_space<vmem>>, %arg6: memref<32x128xf32, #tpu.memory_space<vmem>>) attributes {dimension_semantics = [#tpu.dimension_semantics<parallel>], iteration_bounds = array<i64: 2>, scalar_prefetch = 0 : i64, scratch_operands = 0 : i64, tpu.core_type = #tpu.core_type<tc>, window_params = [{pipeline_mode = #tpu.pipeline_mode<synchronous>, transform_indices = @transform_0, window_bounds = array<i64: 32, 72>}, {transform_indices = @transform_1, window_bounds = array<i64: 72, 128>}, {pipeline_mode = #tpu.pipeline_mode<synchronous>, transform_indices = @transform_2, window_bounds = array<i64: 32, 1>}, {pipeline_mode = #tpu.pipeline_mode<synchronous>, transform_indices = @transform_3, window_bounds = array<i64: 32, 1>}, {transform_indices = @transform_4, window_bounds = array<i64: 32, 128>}, {transform_indices = @transform_5, window_bounds = array<i64: 32, 128>}]} {
    %c0 = arith.constant 0 : index
    %c0_0 = arith.constant 0 : index
    %0 = vector.load %arg1[%c0, %c0_0] : memref<32x72xbf16, #tpu.memory_space<vmem>>, vector<32x72xbf16>
    %c0_1 = arith.constant 0 : index
    %c0_2 = arith.constant 0 : index
    %1 = vector.load %arg2[%c0_1, %c0_2] : memref<72x128xbf16, #tpu.memory_space<vmem>>, vector<72x128xbf16>
    %cst = arith.constant dense<0.000000e+00> : vector<32x128xf32>
    %2 = tpu.matmul %0, %1, %cst {dimension_numbers = #tpu.dot_dimension_numbers<[1], [0], [0], [1], [0, 0, 1, 1], [], []>} : vector<32x72xbf16>, vector<72x128xbf16>, vector<32x128xf32> -> vector<32x128xf32>
    %c0_3 = arith.constant 0 : index
    %c0_4 = arith.constant 0 : index
    %3 = vector.load %arg3[%c0_3, %c0_4] : memref<32x1xf32, #tpu.memory_space<vmem>>, vector<32x1xf32>
    %4 = vector.broadcast %3 : vector<32x1xf32> to vector<32x128xf32>
    %5 = arith.addf %2, %4 : vector<32x128xf32>
    %cst_5 = arith.constant 0.000000e+00 : f32
    %6 = vector.broadcast %cst_5 : f32 to vector<32x128xf32>
    %7 = arith.cmpf oge, %5, %6 : vector<32x128xf32>
    %c0_6 = arith.constant 0 : index
    %c0_7 = arith.constant 0 : index
    %8 = vector.load %arg4[%c0_6, %c0_7] : memref<32x1xf32, #tpu.memory_space<vmem>>, vector<32x1xf32>
    %9 = vector.broadcast %8 : vector<32x1xf32> to vector<32x128xf32>
    %10 = arith.mulf %5, %9 : vector<32x128xf32>
    %11 = arith.select %7, %5, %10 : vector<32x128xi1>, vector<32x128xf32>
    %c0_8 = arith.constant 0 : index
    %c0_9 = arith.constant 0 : index
    %12 = vector.load %arg5[%c0_8, %c0_9] : memref<32x128xf32, #tpu.memory_space<vmem>>, vector<32x128xf32>
    %cst_10 = arith.constant -1.000000e+00 : f32
    %13 = vector.broadcast %cst_10 : f32 to vector<32x128xf32>
    %14 = arith.mulf %13, %12 : vector<32x128xf32>
    %15 = arith.addf %11, %14 : vector<32x128xf32>
    %c0_11 = arith.constant 0 : index
    %c0_12 = arith.constant 0 : index
    %16 = vector.load %arg6[%c0_11, %c0_12] : memref<32x128xf32, #tpu.memory_space<vmem>>, vector<32x128xf32>
    tpu.vector_store %arg6[%c0_11, %c0_12], %15 {strides = array<i32>} : memref<32x128xf32, #tpu.memory_space<vmem>>, vector<32x128xf32>,
    return
  }
  func.func @transform_0(%arg0: i32) -> (i32, i32) {
    %c0_i32 = arith.constant 0 : i32
    %c0_i32_0 = arith.constant 0 : i32
    %c0_i32_1 = arith.constant 0 : i32
    return %c0_i32, %c0_i32_0 : i32, i32
  }
  func.func @transform_1(%arg0: i32) -> (i32, i32) {
    %c0_i32 = arith.constant 0 : i32
    %c0_i32_0 = arith.constant 0 : i32
    return %c0_i32, %arg0 : i32, i32
  }
  func.func @transform_2(%arg0: i32) -> (i32, i32) {
    %c0_i32 = arith.constant 0 : i32
    %c0_i32_0 = arith.constant 0 : i32
    %c0_i32_1 = arith.constant 0 : i32
    return %c0_i32, %c0_i32_0 : i32, i32
  }
  func.func @transform_3(%arg0: i32) -> (i32, i32) {
    %c0_i32 = arith.constant 0 : i32
    %c0_i32_0 = arith.constant 0 : i32
    %c0_i32_1 = arith.constant 0 : i32
    return %c0_i32, %c0_i32_0 : i32, i32
  }
  func.func @transform_4(%arg0: i32) -> (i32, i32) {
    %c0_i32 = arith.constant 0 : i32
    %c0_i32_0 = arith.constant 0 : i32
    return %c0_i32, %arg0 : i32, i32
  }
  func.func @transform_5(%arg0: i32) -> (i32, i32) {
    %c0_i32 = arith.constant 0 : i32
    %c0_i32_0 = arith.constant 0 : i32
    return %c0_i32, %arg0 : i32, i32
  }
}

module attributes {stable_mosaic.version = 11 : i64} {
  func.func @_mm_kernel(%arg0: i32, %arg1: memref<8x288xbf16, #tpu.memory_space<vmem>>, %arg2: memref<288x128xbf16, #tpu.memory_space<vmem>>, %arg3: memref<8x1xf32, #tpu.memory_space<vmem>>, %arg4: memref<8x1xf32, #tpu.memory_space<vmem>>, %arg5: memref<8x128xf32, #tpu.memory_space<vmem>>, %arg6: memref<8x128xf32, #tpu.memory_space<vmem>>) attributes {dimension_semantics = [#tpu.dimension_semantics<parallel>], iteration_bounds = array<i64: 2>, scalar_prefetch = 0 : i64, scratch_operands = 0 : i64, tpu.core_type = #tpu.core_type<tc>, window_params = [{pipeline_mode = #tpu.pipeline_mode<synchronous>, transform_indices = @transform_0, window_bounds = array<i64: 8, 288>}, {transform_indices = @transform_1, window_bounds = array<i64: 288, 128>}, {pipeline_mode = #tpu.pipeline_mode<synchronous>, transform_indices = @transform_2, window_bounds = array<i64: 8, 1>}, {pipeline_mode = #tpu.pipeline_mode<synchronous>, transform_indices = @transform_3, window_bounds = array<i64: 8, 1>}, {transform_indices = @transform_4, window_bounds = array<i64: 8, 128>}, {transform_indices = @transform_5, window_bounds = array<i64: 8, 128>}]} {
    %c0 = arith.constant 0 : index
    %c0_0 = arith.constant 0 : index
    %0 = vector.load %arg1[%c0, %c0_0] : memref<8x288xbf16, #tpu.memory_space<vmem>>, vector<8x288xbf16>
    %c0_1 = arith.constant 0 : index
    %c0_2 = arith.constant 0 : index
    %1 = vector.load %arg2[%c0_1, %c0_2] : memref<288x128xbf16, #tpu.memory_space<vmem>>, vector<288x128xbf16>
    %cst = arith.constant dense<0.000000e+00> : vector<8x128xf32>
    %2 = tpu.matmul %0, %1, %cst {dimension_numbers = #tpu.dot_dimension_numbers<[1], [0], [0], [1], [0, 0, 1, 1], [], []>} : vector<8x288xbf16>, vector<288x128xbf16>, vector<8x128xf32> -> vector<8x128xf32>
    %c0_3 = arith.constant 0 : index
    %c0_4 = arith.constant 0 : index
    %3 = vector.load %arg3[%c0_3, %c0_4] : memref<8x1xf32, #tpu.memory_space<vmem>>, vector<8x1xf32>
    %4 = vector.broadcast %3 : vector<8x1xf32> to vector<8x128xf32>
    %5 = arith.addf %2, %4 : vector<8x128xf32>
    %cst_5 = arith.constant 0.000000e+00 : f32
    %6 = vector.broadcast %cst_5 : f32 to vector<8x128xf32>
    %7 = arith.cmpf oge, %5, %6 : vector<8x128xf32>
    %c0_6 = arith.constant 0 : index
    %c0_7 = arith.constant 0 : index
    %8 = vector.load %arg4[%c0_6, %c0_7] : memref<8x1xf32, #tpu.memory_space<vmem>>, vector<8x1xf32>
    %9 = vector.broadcast %8 : vector<8x1xf32> to vector<8x128xf32>
    %10 = arith.mulf %5, %9 : vector<8x128xf32>
    %11 = arith.select %7, %5, %10 : vector<8x128xi1>, vector<8x128xf32>
    %c0_8 = arith.constant 0 : index
    %c0_9 = arith.constant 0 : index
    %12 = vector.load %arg5[%c0_8, %c0_9] : memref<8x128xf32, #tpu.memory_space<vmem>>, vector<8x128xf32>
    %cst_10 = arith.constant 1.000000e+00 : f32
    %13 = vector.broadcast %cst_10 : f32 to vector<8x128xf32>
    %14 = arith.mulf %13, %12 : vector<8x128xf32>
    %15 = arith.addf %11, %14 : vector<8x128xf32>
    %c0_11 = arith.constant 0 : index
    %c0_12 = arith.constant 0 : index
    %16 = vector.load %arg6[%c0_11, %c0_12] : memref<8x128xf32, #tpu.memory_space<vmem>>, vector<8x128xf32>
    tpu.vector_store %arg6[%c0_11, %c0_12], %15 {strides = array<i32>} : memref<8x128xf32, #tpu.memory_space<vmem>>, vector<8x128xf32>,
    return
  }
  func.func @transform_0(%arg0: i32) -> (i32, i32) {
    %c0_i32 = arith.constant 0 : i32
    %c0_i32_0 = arith.constant 0 : i32
    %c0_i32_1 = arith.constant 0 : i32
    return %c0_i32, %c0_i32_0 : i32, i32
  }
  func.func @transform_1(%arg0: i32) -> (i32, i32) {
    %c0_i32 = arith.constant 0 : i32
    %c0_i32_0 = arith.constant 0 : i32
    return %c0_i32, %arg0 : i32, i32
  }
  func.func @transform_2(%arg0: i32) -> (i32, i32) {
    %c0_i32 = arith.constant 0 : i32
    %c0_i32_0 = arith.constant 0 : i32
    %c0_i32_1 = arith.constant 0 : i32
    return %c0_i32, %c0_i32_0 : i32, i32
  }
  func.func @transform_3(%arg0: i32) -> (i32, i32) {
    %c0_i32 = arith.constant 0 : i32
    %c0_i32_0 = arith.constant 0 : i32
    %c0_i32_1 = arith.constant 0 : i32
    return %c0_i32, %c0_i32_0 : i32, i32
  }
  func.func @transform_4(%arg0: i32) -> (i32, i32) {
    %c0_i32 = arith.constant 0 : i32
    %c0_i32_0 = arith.constant 0 : i32
    return %c0_i32, %arg0 : i32, i32
  }
  func.func @transform_5(%arg0: i32) -> (i32, i32) {
    %c0_i32 = arith.constant 0 : i32
    %c0_i32_0 = arith.constant 0 : i32
    return %c0_i32, %arg0 : i32, i32
  }
}

module attributes {stable_mosaic.version = 11 : i64} {
  func.func @_mm_kernel(%arg0: i32, %arg1: memref<32x72xbf16, #tpu.memory_space<vmem>>, %arg2: memref<72x128xbf16, #tpu.memory_space<vmem>>, %arg3: memref<32x1xf32, #tpu.memory_space<vmem>>, %arg4: memref<32x1xf32, #tpu.memory_space<vmem>>, %arg5: memref<32x128xf32, #tpu.memory_space<vmem>>) attributes {dimension_semantics = [#tpu.dimension_semantics<parallel>], iteration_bounds = array<i64: 2>, scalar_prefetch = 0 : i64, scratch_operands = 0 : i64, tpu.core_type = #tpu.core_type<tc>, window_params = [{pipeline_mode = #tpu.pipeline_mode<synchronous>, transform_indices = @transform_0, window_bounds = array<i64: 32, 72>}, {transform_indices = @transform_1, window_bounds = array<i64: 72, 128>}, {pipeline_mode = #tpu.pipeline_mode<synchronous>, transform_indices = @transform_2, window_bounds = array<i64: 32, 1>}, {pipeline_mode = #tpu.pipeline_mode<synchronous>, transform_indices = @transform_3, window_bounds = array<i64: 32, 1>}, {transform_indices = @transform_4, window_bounds = array<i64: 32, 128>}]} {
    %c0 = arith.constant 0 : index
    %c0_0 = arith.constant 0 : index
    %0 = vector.load %arg1[%c0, %c0_0] : memref<32x72xbf16, #tpu.memory_space<vmem>>, vector<32x72xbf16>
    %c0_1 = arith.constant 0 : index
    %c0_2 = arith.constant 0 : index
    %1 = vector.load %arg2[%c0_1, %c0_2] : memref<72x128xbf16, #tpu.memory_space<vmem>>, vector<72x128xbf16>
    %cst = arith.constant dense<0.000000e+00> : vector<32x128xf32>
    %2 = tpu.matmul %0, %1, %cst {dimension_numbers = #tpu.dot_dimension_numbers<[1], [0], [0], [1], [0, 0, 1, 1], [], []>} : vector<32x72xbf16>, vector<72x128xbf16>, vector<32x128xf32> -> vector<32x128xf32>
    %c0_3 = arith.constant 0 : index
    %c0_4 = arith.constant 0 : index
    %3 = vector.load %arg3[%c0_3, %c0_4] : memref<32x1xf32, #tpu.memory_space<vmem>>, vector<32x1xf32>
    %4 = vector.broadcast %3 : vector<32x1xf32> to vector<32x128xf32>
    %5 = arith.addf %2, %4 : vector<32x128xf32>
    %cst_5 = arith.constant 0.000000e+00 : f32
    %6 = vector.broadcast %cst_5 : f32 to vector<32x128xf32>
    %7 = arith.cmpf oge, %5, %6 : vector<32x128xf32>
    %c0_6 = arith.constant 0 : index
    %c0_7 = arith.constant 0 : index
    %8 = vector.load %arg4[%c0_6, %c0_7] : memref<32x1xf32, #tpu.memory_space<vmem>>, vector<32x1xf32>
    %9 = vector.broadcast %8 : vector<32x1xf32> to vector<32x128xf32>
    %10 = arith.mulf %5, %9 : vector<32x128xf32>
    %11 = arith.select %7, %5, %10 : vector<32x128xi1>, vector<32x128xf32>
    %c0_8 = arith.constant 0 : index
    %c0_9 = arith.constant 0 : index
    %12 = vector.load %arg5[%c0_8, %c0_9] : memref<32x128xf32, #tpu.memory_space<vmem>>, vector<32x128xf32>
    tpu.vector_store %arg5[%c0_8, %c0_9], %11 {strides = array<i32>} : memref<32x128xf32, #tpu.memory_space<vmem>>, vector<32x128xf32>,
    return
  }
  func.func @transform_0(%arg0: i32) -> (i32, i32) {
    %c0_i32 = arith.constant 0 : i32
    %c0_i32_0 = arith.constant 0 : i32
    %c0_i32_1 = arith.constant 0 : i32
    return %c0_i32, %c0_i32_0 : i32, i32
  }
  func.func @transform_1(%arg0: i32) -> (i32, i32) {
    %c0_i32 = arith.constant 0 : i32
    %c0_i32_0 = arith.constant 0 : i32
    return %c0_i32, %arg0 : i32, i32
  }
  func.func @transform_2(%arg0: i32) -> (i32, i32) {
    %c0_i32 = arith.constant 0 : i32
    %c0_i32_0 = arith.constant 0 : i32
    %c0_i32_1 = arith.constant 0 : i32
    return %c0_i32, %c0_i32_0 : i32, i32
  }
  func.func @transform_3(%arg0: i32) -> (i32, i32) {
    %c0_i32 = arith.constant 0 : i32
    %c0_i32_0 = arith.constant 0 : i32
    %c0_i32_1 = arith.constant 0 : i32
    return %c0_i32, %c0_i32_0 : i32, i32
  }
  func.func @transform_4(%arg0: i32) -> (i32, i32) {
    %c0_i32 = arith.constant 0 : i32
    %c0_i32_0 = arith.constant 0 : i32
    return %c0_i32, %arg0 : i32, i32
  }
}

module attributes {stable_mosaic.version = 11 : i64} {
  func.func @_mm_kernel(%arg0: i32, %arg1: memref<8x2xbf16, #tpu.memory_space<vmem>>, %arg2: memref<2x256xbf16, #tpu.memory_space<vmem>>, %arg3: memref<8x1xf32, #tpu.memory_space<vmem>>, %arg4: memref<8x1xf32, #tpu.memory_space<vmem>>, %arg5: memref<8x256xf32, #tpu.memory_space<vmem>>, %arg6: memref<8x256xf32, #tpu.memory_space<vmem>>) attributes {dimension_semantics = [#tpu.dimension_semantics<parallel>], iteration_bounds = array<i64: 4>, scalar_prefetch = 0 : i64, scratch_operands = 0 : i64, tpu.core_type = #tpu.core_type<tc>, window_params = [{pipeline_mode = #tpu.pipeline_mode<synchronous>, transform_indices = @transform_0, window_bounds = array<i64: 8, 2>}, {transform_indices = @transform_1, window_bounds = array<i64: 2, 256>}, {pipeline_mode = #tpu.pipeline_mode<synchronous>, transform_indices = @transform_2, window_bounds = array<i64: 8, 1>}, {pipeline_mode = #tpu.pipeline_mode<synchronous>, transform_indices = @transform_3, window_bounds = array<i64: 8, 1>}, {transform_indices = @transform_4, window_bounds = array<i64: 8, 256>}, {transform_indices = @transform_5, window_bounds = array<i64: 8, 256>}]} {
    %c0 = arith.constant 0 : index
    %c0_0 = arith.constant 0 : index
    %0 = vector.load %arg1[%c0, %c0_0] : memref<8x2xbf16, #tpu.memory_space<vmem>>, vector<8x2xbf16>
    %c0_1 = arith.constant 0 : index
    %c0_2 = arith.constant 0 : index
    %1 = vector.load %arg2[%c0_1, %c0_2] : memref<2x256xbf16, #tpu.memory_space<vmem>>, vector<2x256xbf16>
    %cst = arith.constant dense<0.000000e+00> : vector<8x256xf32>
    %2 = tpu.matmul %0, %1, %cst {dimension_numbers = #tpu.dot_dimension_numbers<[1], [0], [0], [1], [0, 0, 1, 1], [], []>} : vector<8x2xbf16>, vector<2x256xbf16>, vector<8x256xf32> -> vector<8x256xf32>
    %c0_3 = arith.constant 0 : index
    %c0_4 = arith.constant 0 : index
    %3 = vector.load %arg3[%c0_3, %c0_4] : memref<8x1xf32, #tpu.memory_space<vmem>>, vector<8x1xf32>
    %4 = vector.broadcast %3 : vector<8x1xf32> to vector<8x256xf32>
    %5 = arith.addf %2, %4 : vector<8x256xf32>
    %cst_5 = arith.constant 0.000000e+00 : f32
    %6 = vector.broadcast %cst_5 : f32 to vector<8x256xf32>
    %7 = arith.cmpf oge, %5, %6 : vector<8x256xf32>
    %c0_6 = arith.constant 0 : index
    %c0_7 = arith.constant 0 : index
    %8 = vector.load %arg4[%c0_6, %c0_7] : memref<8x1xf32, #tpu.memory_space<vmem>>, vector<8x1xf32>
    %9 = vector.broadcast %8 : vector<8x1xf32> to vector<8x256xf32>
    %10 = arith.mulf %5, %9 : vector<8x256xf32>
    %11 = arith.select %7, %5, %10 : vector<8x256xi1>, vector<8x256xf32>
    %c0_8 = arith.constant 0 : index
    %c0_9 = arith.constant 0 : index
    %12 = vector.load %arg5[%c0_8, %c0_9] : memref<8x256xf32, #tpu.memory_space<vmem>>, vector<8x256xf32>
    %cst_10 = arith.constant 1.000000e+00 : f32
    %13 = vector.broadcast %cst_10 : f32 to vector<8x256xf32>
    %14 = arith.mulf %13, %12 : vector<8x256xf32>
    %15 = arith.addf %11, %14 : vector<8x256xf32>
    %c0_11 = arith.constant 0 : index
    %c0_12 = arith.constant 0 : index
    %16 = vector.load %arg6[%c0_11, %c0_12] : memref<8x256xf32, #tpu.memory_space<vmem>>, vector<8x256xf32>
    tpu.vector_store %arg6[%c0_11, %c0_12], %15 {strides = array<i32>} : memref<8x256xf32, #tpu.memory_space<vmem>>, vector<8x256xf32>,
    return
  }
  func.func @transform_0(%arg0: i32) -> (i32, i32) {
    %c0_i32 = arith.constant 0 : i32
    %c0_i32_0 = arith.constant 0 : i32
    %c0_i32_1 = arith.constant 0 : i32
    return %c0_i32, %c0_i32_0 : i32, i32
  }
  func.func @transform_1(%arg0: i32) -> (i32, i32) {
    %c0_i32 = arith.constant 0 : i32
    %c0_i32_0 = arith.constant 0 : i32
    return %c0_i32, %arg0 : i32, i32
  }
  func.func @transform_2(%arg0: i32) -> (i32, i32) {
    %c0_i32 = arith.constant 0 : i32
    %c0_i32_0 = arith.constant 0 : i32
    %c0_i32_1 = arith.constant 0 : i32
    return %c0_i32, %c0_i32_0 : i32, i32
  }
  func.func @transform_3(%arg0: i32) -> (i32, i32) {
    %c0_i32 = arith.constant 0 : i32
    %c0_i32_0 = arith.constant 0 : i32
    %c0_i32_1 = arith.constant 0 : i32
    return %c0_i32, %c0_i32_0 : i32, i32
  }
  func.func @transform_4(%arg0: i32) -> (i32, i32) {
    %c0_i32 = arith.constant 0 : i32
    %c0_i32_0 = arith.constant 0 : i32
    return %c0_i32, %arg0 : i32, i32
  }
  func.func @transform_5(%arg0: i32) -> (i32, i32) {
    %c0_i32 = arith.constant 0 : i32
    %c0_i32_0 = arith.constant 0 : i32
    return %c0_i32, %arg0 : i32, i32
  }
}

module attributes {stable_mosaic.version = 11 : i64} {
  func.func @_mm_kernel(%arg0: i32, %arg1: memref<3x288xbf16, #tpu.memory_space<vmem>>, %arg2: memref<288x256xbf16, #tpu.memory_space<vmem>>, %arg3: memref<3x1xf32, #tpu.memory_space<vmem>>, %arg4: memref<3x256xf32, #tpu.memory_space<vmem>>) attributes {dimension_semantics = [#tpu.dimension_semantics<parallel>], iteration_bounds = array<i64: 2>, scalar_prefetch = 0 : i64, scratch_operands = 0 : i64, tpu.core_type = #tpu.core_type<tc>, window_params = [{pipeline_mode = #tpu.pipeline_mode<synchronous>, transform_indices = @transform_0, window_bounds = array<i64: 3, 288>}, {transform_indices = @transform_1, window_bounds = array<i64: 288, 256>}, {pipeline_mode = #tpu.pipeline_mode<synchronous>, transform_indices = @transform_2, window_bounds = array<i64: 3, 1>}, {transform_indices = @transform_3, window_bounds = array<i64: 3, 256>}]} {
    %c0 = arith.constant 0 : index
    %c0_0 = arith.constant 0 : index
    %0 = vector.load %arg1[%c0, %c0_0] : memref<3x288xbf16, #tpu.memory_space<vmem>>, vector<3x288xbf16>
    %c0_1 = arith.constant 0 : index
    %c0_2 = arith.constant 0 : index
    %1 = vector.load %arg2[%c0_1, %c0_2] : memref<288x256xbf16, #tpu.memory_space<vmem>>, vector<288x256xbf16>
    %cst = arith.constant dense<0.000000e+00> : vector<3x256xf32>
    %2 = tpu.matmul %0, %1, %cst {dimension_numbers = #tpu.dot_dimension_numbers<[1], [0], [0], [1], [0, 0, 1, 1], [], []>} : vector<3x288xbf16>, vector<288x256xbf16>, vector<3x256xf32> -> vector<3x256xf32>
    %c0_3 = arith.constant 0 : index
    %c0_4 = arith.constant 0 : index
    %3 = vector.load %arg3[%c0_3, %c0_4] : memref<3x1xf32, #tpu.memory_space<vmem>>, vector<3x1xf32>
    %4 = vector.broadcast %3 : vector<3x1xf32> to vector<3x256xf32>
    %5 = arith.addf %2, %4 : vector<3x256xf32>
    %c0_5 = arith.constant 0 : index
    %c0_6 = arith.constant 0 : index
    %6 = vector.load %arg4[%c0_5, %c0_6] : memref<3x256xf32, #tpu.memory_space<vmem>>, vector<3x256xf32>
    tpu.vector_store %arg4[%c0_5, %c0_6], %5 {strides = array<i32>} : memref<3x256xf32, #tpu.memory_space<vmem>>, vector<3x256xf32>,
    return
  }
  func.func @transform_0(%arg0: i32) -> (i32, i32) {
    %c0_i32 = arith.constant 0 : i32
    %c0_i32_0 = arith.constant 0 : i32
    %c0_i32_1 = arith.constant 0 : i32
    return %c0_i32, %c0_i32_0 : i32, i32
  }
  func.func @transform_1(%arg0: i32) -> (i32, i32) {
    %c0_i32 = arith.constant 0 : i32
    %c0_i32_0 = arith.constant 0 : i32
    return %c0_i32, %arg0 : i32, i32
  }
  func.func @transform_2(%arg0: i32) -> (i32, i32) {
    %c0_i32 = arith.constant 0 : i32
    %c0_i32_0 = arith.constant 0 : i32
    %c0_i32_1 = arith.constant 0 : i32
    return %c0_i32, %c0_i32_0 : i32, i32
  }
  func.func @transform_3(%arg0: i32) -> (i32, i32) {
    %c0_i32 = arith.constant 0 : i32
    %c0_i32_0 = arith.constant 0 : i32
    return %c0_i32, %arg0 : i32, i32
  }
}

</mosaic_0001>

<bundles_post_ra>
// kernel: _lambda_.14
= control target key start
LH: loop header
LB: loop body
LE: loop exit
PB: predicated region body
PF: predicated region fallthrough
CT: control target
= control target key end

     0   :  { %9 = vsyncpa [#allocation3], 0  ;;  %s191_s0 = inlined_call_operand.hbm [shape: bf16[8,8], index: 0, kind: input, shape index: {}]   ;;  %s192_s1 = inlined_call_operand.vmem [shape: bf16[8,128], index: 1, kind: input, shape index: {}]   ;;  %s193_s2 = inlined_call_operand.hbm [shape: f32[8,1], index: 2, kind: input, shape index: {}]   ;;  %s194_s3 = inlined_call_operand.vmem [shape: f32[8,1], index: 3, kind: input, shape index: {}]   ;;  %s195_s4 = inlined_call_operand.vmem [shape: f32[8,128], index: 4, kind: output, shape index: {}]  }
   0x1   :  { %s16_s17 = sshll.u32 %s191_s0, 4  ;;  %s17_s17 = int_to_ptr.hbm [resolvable:$true] %s16_s17 }
   0x2   :  { %10 = vsyncpa [#allocation5], 0  ;;  %s148_s18 = smov [#allocation2]   ;;  %s29_s22 = sshll.u32 %s193_s2, 4  ;;  %s30_s22 = int_to_ptr.hbm [resolvable:$true] %s29_s22 }
   0x3   :  { %s18_s19 = sshll.u32 %s148_s18, 4  ;;  %s149_s23 = smov [#allocation4]   ;;  %s19_s19 = int_to_ptr.vmem [resolvable:$true] %s18_s19 }
   0x4   :  { %21 = dma.hbm_to_vmem [thread:$0]  %s17_s17, 64, %s19_s19, [#allocation3]  }
   0x5   :  { %s31_s24 = sshll.u32 %s149_s23, 4  ;;  %s32_s24 = int_to_ptr.vmem [resolvable:$true] %s31_s24 }
   0x6   :  { %34 = dma.hbm_to_vmem [thread:$0]  %s30_s22, 128, %s32_s24, [#allocation5]  }
   0x7   :  { %144 = dma.done.wait [#allocation3], 64  }
   0x8   :  { %145 = vsyncadd [#allocation3], 4294967232 }
   0x9   :  { %146 = dma.done.wait [#allocation5], 128  }
   0xa   :  { %147 = vsyncadd [#allocation5], 4294967168  ;;  %v150_v0 = vmov 0   ;;  %vm58_vm0 = vcmask 1043456   ;;  %v47_v1 = vld [vmem:[%s192_s1] sm:$0xf] }
   0xb   :  { %95 = vset.pattern.permute.xlu0 %v150_v0  ;;  %v48_v2 = vld [vmem:[#allocation4] sm:$0xff]  ;;  %v60_v3 = vsel %vm58_vm0, %v47_v1, 0  ;;  %v46_v4 = vld [vmem:[#allocation2] sm:$0xf]  ;;  %vm54_vm1 = vcmask 64512  }
   0xc   :  { %51 = vperm.xlu0 %95, %v48_v2   ;;  %69 = vmatpush.bf16.msra.mxu0 %v60_v3  ;;  %v76_v5 = vld [vmem:[%s194_s3] sm:$0xff] }
   0xf   :  { %91 = vmatmul.msk.bf16.vlgmr.msra.gmra.mxu0 %vm54_vm1, %v46_v4 }
  0x14   :  { %79 = vperm.xlu0 %95, %v76_v5  }
  0x7e   :  { %v52_v6 = vpop.permute.xlu0 %51 }
  0x86   :  { %v80_v9 = vpop.permute.xlu0 %79 }
  0x8c   :  { %v71_v7 = vpop.f32.mrf.mxu0 }
  0x8d   :  { %v72_v8 = vadd.f32 %v71_v7, %v52_v6 }
  0x8f   :  { %vm75_vm2 = vcmp.ge.f32.partialorder %v72_v8, 0.0  ;;  %v82_v10 = vmul.f32 %v80_v9, %v72_v8 }
  0x91   :  { %v83_v11 = vsel %vm75_vm2, %v72_v8, %v82_v10 }
  0x92   :  { %84 = vst [vmem:[%s195_s4] sm:$0xff] %v83_v11 }
  0x94   :  { %v73_v12 = vpop.f32.mrf.mxu0 }
  0x95   :  { %89 = vsyncpa [#allocation3], 1 }
  0x96   :  { %90 = vsyncpa [#allocation5], 1 }

// kernel: _lambda_.13
= control target key start
LH: loop header
LB: loop body
LE: loop exit
PB: predicated region body
PF: predicated region fallthrough
CT: control target
= control target key end

     0   :  { %9 = vsyncpa [#allocation3], 0  ;;  %s226_s0 = inlined_call_operand.hbm [shape: bf16[8,27], index: 0, kind: input, shape index: {}]   ;;  %s227_s1 = inlined_call_operand.vmem [shape: bf16[27,128], index: 1, kind: input, shape index: {}]   ;;  %s228_s2 = inlined_call_operand.hbm [shape: f32[8,1], index: 2, kind: input, shape index: {}]   ;;  %s229_s3 = inlined_call_operand.vmem [shape: f32[8,1], index: 3, kind: input, shape index: {}]   ;;  %s230_s4 = inlined_call_operand.vmem [shape: f32[8,128], index: 4, kind: output, shape index: {}]  }
   0x1   :  { %s16_s17 = sshll.u32 %s226_s0, 4  ;;  %s17_s17 = int_to_ptr.hbm [resolvable:$true] %s16_s17 }
   0x2   :  { %10 = vsyncpa [#allocation5], 0  ;;  %s176_s18 = smov [#allocation2]   ;;  %s29_s22 = sshll.u32 %s228_s2, 4  ;;  %s30_s22 = int_to_ptr.hbm [resolvable:$true] %s29_s22 }
   0x3   :  { %s18_s19 = sshll.u32 %s176_s18, 4  ;;  %s177_s23 = smov [#allocation4]   ;;  %s19_s19 = int_to_ptr.vmem [resolvable:$true] %s18_s19 }
   0x4   :  { %21 = dma.hbm_to_vmem [thread:$0]  %s17_s17, 64, %s19_s19, [#allocation3]  }
   0x5   :  { %s31_s24 = sshll.u32 %s177_s23, 4  ;;  %s32_s24 = int_to_ptr.vmem [resolvable:$true] %s31_s24 }
   0x6   :  { %34 = dma.hbm_to_vmem [thread:$0]  %s30_s22, 128, %s32_s24, [#allocation5]  }
   0x7   :  { %172 = dma.done.wait [#allocation3], 64  }
   0x8   :  { %173 = vsyncadd [#allocation3], 4294967232 }
   0x9   :  { %174 = dma.done.wait [#allocation5], 128  }
   0xa   :  { %175 = vsyncadd [#allocation5], 4294967168  ;;  %vm72_vm0 = vcmask 1044480   ;;  %v178_v0 = vmov 0   ;;  %vm73_vm1 = vcmask 1045504   ;;  %v179_v1 = vmov 65535  }
   0xb   :  { %123 = vset.pattern.permute.xlu0 %v178_v0  ;;  %v74_v2 = vsel %vm72_vm0, 4294967295, %v179_v1  ;;  %v114_v3 = vld [vmem:[%s227_s1 + $0x8] sm:$0xf]  ;;  %v118_v4 = vld [vmem:[%s227_s1 + $0x8] sm:$0x30]  ;;  %v117_v9 = vld [vmem:[%s227_s1] sm:$0xff] }
   0xc   :  { %v75_v5 = vsel %vm73_vm1, %v74_v2, 0  ;;  %v115_v6 = vor.u32 %v118_v4, %v114_v3  ;;  %v51_v7 = vld [vmem:[#allocation4] sm:$0xff]  ;;  %v46_v11 = vld [vmem:[#allocation2] sm:$0xf]  ;;  %vm68_vm2 = vcmask 220160  }
   0xd   :  { %54 = vperm.xlu0 %123, %v51_v7   ;;  %v93_v10 = vld [vmem:[%s229_s3] sm:$0xff] }
   0xe   :  { %v77_v8 = vand.u32 %v115_v6, %v75_v5 }
  0x10   :  { %85 = vmatpush.bf16.msra.mxu0 %v77_v8 }
  0x14   :  { %86 = vmatpush.bf16.msra.mxu0 %v117_v9 }
  0x15   :  { %96 = vperm.xlu0 %123, %v93_v10  }
  0x17   :  { %116 = vmatmul.msk.bf16.vlgmr.msra.gmra.mxu0 %vm68_vm2, %v46_v11 }
  0x7f   :  { %v55_v12 = vpop.permute.xlu0 %54 }
  0x87   :  { %v97_v15 = vpop.permute.xlu0 %96 }
  0x94   :  { %v88_v13 = vpop.f32.mrf.mxu0 }
  0x95   :  { %v89_v14 = vadd.f32 %v88_v13, %v55_v12 }
  0x97   :  { %vm92_vm3 = vcmp.ge.f32.partialorder %v89_v14, 0.0  ;;  %v99_v16 = vmul.f32 %v97_v15, %v89_v14 }
  0x99   :  { %v100_v17 = vsel %vm92_vm3, %v89_v14, %v99_v16 }
  0x9a   :  { %101 = vst [vmem:[%s230_s4] sm:$0xff] %v100_v17 }
  0x9c   :  { %v90_v18 = vpop.f32.mrf.mxu0 }
  0x9d   :  { %106 = vsyncpa [#allocation3], 1 }
  0x9e   :  { %107 = vsyncpa [#allocation5], 1 }

// kernel: _lambda_.15
= control target key start
LH: loop header
LB: loop body
LE: loop exit
PB: predicated region body
PF: predicated region fallthrough
CT: control target
= control target key end

     0   :  { %vm39_vm0 = vcmask 1043456   ;;  %v71_v1 = vmov 0   ;;  %vm35_vm1 = vcmask 64512   ;;  %s110_s1 = inlined_call_operand.vmem [shape: bf16[8,128], index: 1, kind: input, shape index: {}]   ;;  %s111_s0 = inlined_call_operand.vmem [shape: bf16[16,8], index: 0, kind: input, shape index: {}]   ;;  %s112_s2 = inlined_call_operand.vmem [shape: f32[16,1], index: 2, kind: input, shape index: {}]   ;;  %s113_s3 = inlined_call_operand.vmem [shape: f32[16,128], index: 3, kind: output, shape index: {}]  }
   0x1   :  { %v17_v0 = vld [vmem:[%s110_s1] sm:$0xf]  ;;  %70 = vset.pattern.permute.xlu0 %v71_v1  ;;  %v19_v5 = vld [vmem:[%s112_s2 + $0x8] sm:$0xff] }
   0x2   :  { %v18_v2 = vld [vmem:[%s112_s2] sm:$0xff]  ;;  %v41_v3 = vsel %vm39_vm0, %v17_v0, 0 }
   0x3   :  { %v68_v4 = vld [vmem:[%s111_s0] sm:$0xff]  ;;  %22 = vperm.xlu0 %70, %v18_v2   ;;  %50 = vmatpush.bf16.msra.mxu0 %v41_v3 }
   0x6   :  { %67 = vmatmul.msk.bf16.vlgmr.msra.gmra.mxu0 %vm35_vm1, %v68_v4 }
   0xb   :  { %27 = vperm.xlu0 %70, %v19_v5  }
  0x75   :  { %v23_v6 = vpop.permute.xlu0 %22 }
  0x7d   :  { %v28_v9 = vpop.permute.xlu0 %27 }
  0x83   :  { %v52_v7 = vpop.f32.mrf.mxu0 }
  0x84   :  { %v53_v8 = vadd.f32 %v52_v7, %v23_v6 }
  0x86   :  { %57 = vst [vmem:[%s113_s3] sm:$0xff] %v53_v8 }
  0x8b   :  { %v54_v10 = vpop.f32.mrf.mxu0 }
  0x8c   :  { %v55_v11 = vadd.f32 %v54_v10, %v28_v9 }
  0x8e   :  { %58 = vst [vmem:[%s113_s3 + $0x8] sm:$0xff] %v55_v11 }

// kernel: _lambda_.16
= control target key start
LH: loop header
LB: loop body
LE: loop exit
PB: predicated region body
PF: predicated region fallthrough
CT: control target
= control target key end

     0   :  { %9 = vsyncpa [#allocation3], 0  ;;  %s564_s0 = inlined_call_operand.hbm [shape: bf16[8,2], index: 0, kind: input, shape index: {}]   ;;  %s565_s1 = inlined_call_operand.vmem [shape: bf16[2,1024], index: 1, kind: input, shape index: {}]   ;;  %s566_s2 = inlined_call_operand.hbm [shape: f32[8,1], index: 2, kind: input, shape index: {}]   ;;  %s567_s3 = inlined_call_operand.vmem [shape: f32[8,1], index: 3, kind: input, shape index: {}]   ;;  %s568_s4 = inlined_call_operand.vmem [shape: f32[8,1024], index: 4, kind: output, shape index: {}]  }
   0x1   :  { %10 = vsyncpa [#allocation5], 0  ;;  %s516_s15 = smov 0  }
   0x2 LB: > { %s148_s18 = sshll.u32 %s564_s0, 4  ;;  %s365_s19 = sadd.s32 4294967295, %s486_s15   ;;  %s486_s15 = sphi %s516_s15, %s16_s15   ;;  %s149_s18 = int_to_ptr.hbm [resolvable:$true] %s148_s18 }
   0x3   : > { %p367_p0 = scmp.ge.s32.totalorder %s486_s15, 1  ;;  %p136_p1 = scmp.lt.s32.totalorder %s486_s15, 5 }
   0x4   : > { %p527_p2 = scmp.eq.s32.totalorder %s365_s19, 0  ;;  %s488_s22 = smov [#allocation2]  }
   0x5   : > { %p531_p3 = pnand %p367_p0, %p136_p1  ;;  %s150_s23 = sshll.u32 %s488_s22, 4  ;;  %s151_s23 = int_to_ptr.vmem [resolvable:$true] %s150_s23 }
   0x6   : > { %s160_s26 = sshll.u32 %s566_s2, 4  ;;  %s489_s27 = smov [#allocation4]   ;;  %s161_s26 = int_to_ptr.hbm [resolvable:$true] %s160_s26 }
   0x7   : > { %p389_p4 = pneg %p531_p3  ;;  %s162_s28 = sshll.u32 %s489_s27, 4  ;;  %s163_s28 = int_to_ptr.vmem [resolvable:$true] %s162_s28 }
   0x8   : > { %186 = sbr.rel (%p531_p3) target bundleno = 168 (0xa8), region = 36 }
   0x9   : > { %p390_p5 = pnand %p527_p2, %p389_p4 }
   0xb   : > { %392 = dma.hbm_to_vmem [thread:$0]  (!%p390_p5), %s149_s18, 64, %s151_s23, [#allocation3]  }
   0xc   : > { %395 = dma.hbm_to_vmem [thread:$0]  (!%p390_p5), %s161_s26, 128, %s163_s28, [#allocation5]  }
   0xd   : > { %477 = dma.done.wait (%p527_p2), [#allocation3], 64  }
   0xe   : > { %479 = vsyncadd (%p527_p2), [#allocation3], 4294967232 }
   0xf   : > { %481 = dma.done.wait (%p527_p2), [#allocation5], 128  }
  0x10   : > { %483 = vsyncadd (%p527_p2), [#allocation5], 4294967168  ;;  %s374_s29 = sshll.u32 %s365_s19, 1  ;;  %v490_v0 = vmov 0   ;;  %v231_v2 = vld [vmem:[#allocation4] sm:$0xff]  ;;  %vm245_vm0 = vcmask 1040384  }
  0x11   : > { %p218_p6 = scmp.lt.s32.totalorder %s374_s29, 7  ;;  %411 = vset.pattern.permute.xlu0 %v490_v0  ;;  %v278_v3 = vld [vmem:[%s567_s3] sm:$0xff]  ;;  %v229_v8 = vld [vmem:[#allocation2] sm:$0xf]  ;;  %vm241_vm1 = vcmask 15360  }
  0x12   : > { %234 = vperm.xlu0 %411, %v231_v2  }
  0x13   : > { %s572_s29 = smov (!%p218_p6, %s374_s29), 7 }
  0x14   : > { %s220_s6 = scalar_lea.vmem %s565_s1, %s572_s29  ;;  %s376_s9 = sshll.u32 %s572_s29, 3 }
  0x15   : > { %v230_v1 = vld [vmem:[%s220_s6] sm:$0x3]  ;;  %s226_s12 = scalar_lea.vmem %s568_s4, %s376_s9 }
  0x16   : > { %238 = vst [vmem:[#allocation1] ss:$9 sm:$0xff] %v230_v1 }
  0x1a   : > { %281 = vperm.xlu0 %411, %v278_v3  }
  0x1d   : > { %v239_v4 = vld [vmem:[#allocation1] sm:$0xff]  ;;  %v240_v5 = vld [vmem:[#allocation1 + $0x9] sm:$0xff] }
  0x1e   : > { %v246_v6 = vsel %vm245_vm0, %v239_v4, 0  ;;  %v248_v7 = vsel %vm245_vm0, %v240_v5, 0 }
  0x1f   : > { %257 = vmatpush.bf16.msra.mxu0 %v246_v6  ;;  %270 = vmatpush.bf16.msra.mxu1 %v248_v7 }
  0x22   : > { %377 = vmatmul.msk.bf16.vlgmr.msra.gmra.mxu0 %vm241_vm1, %v229_v8  ;;  %378 = vmatmul.msk.bf16.vlgmr.msra.gmra.mxu1 %vm241_vm1, %v229_v8 }
  0x84   : > { %v235_v9 = vpop.permute.xlu0 %234 }
  0x8c   : > { %v282_v14 = vpop.permute.xlu0 %281 }
  0x9f   : > { %v259_v10 = vpop.f32.mrf.mxu0  ;;  %v272_v11 = vpop.f32.mrf.mxu1 }
  0xa0   : > { %v260_v12 = vadd.f32 %v259_v10, %v235_v9  ;;  %v273_v13 = vadd.f32 %v272_v11, %v235_v9 }
  0xa2   : > { %vm276_vm2 = vcmp.ge.f32.partialorder %v260_v12, 0.0  ;;  %v284_v15 = vmul.f32 %v282_v14, %v260_v12  ;;  %vm277_vm3 = vcmp.ge.f32.partialorder %v273_v13, 0.0  ;;  %v285_v16 = vmul.f32 %v282_v14, %v273_v13 }
  0xa4   : > { %v286_v17 = vsel %vm276_vm2, %v260_v12, %v284_v15  ;;  %v287_v18 = vsel %vm277_vm3, %v273_v13, %v285_v16 }
  0xa5   : > { %288 = vst [vmem:[%s226_s12] sm:$0xff] %v286_v17 }
  0xa6   : > { %289 = vst [vmem:[%s226_s12 + $0x8] sm:$0xff] %v287_v18 }
  0xa7   : > { %v261_v19 = vpop.f32.mrf.mxu0  ;;  %v274_v20 = vpop.f32.mrf.mxu1 }
  0xa8 PF: > { %s16_s15 = sadd.s32 1, %s486_s15  }
  0xa9   : > { %p13_p7 = scmp.ge.s32.totalorder %s16_s15, 6  }
  0xab   :  { %15 = sbr.rel (!%p13_p7) target bundleno = 2 (0x2), region = 75 }
  0xb0   :  { %312 = vsyncpa [#allocation3], 1 }
  0xb1   :  { %314 = vsyncpa [#allocation3 + $0x1], 1 }
  0xb2   :  { %315 = vsyncpa [#allocation5], 1 }

// kernel: _lambda_.17
= control target key start
LH: loop header
LB: loop body
LE: loop exit
PB: predicated region body
PF: predicated region fallthrough
CT: control target
= control target key end

     0   :  { %s897_s18 = smov 0   ;;  %s899_s19 = smov 0   ;;  %s1062_s0 = inlined_call_operand.vmem [shape: bf16[8,288], index: 0, kind: input, shape index: {}]   ;;  %s1063_s1 = inlined_call_operand.vmem [shape: bf16[288,256], index: 1, kind: input, shape index: {}]   ;;  %s1064_s2 = inlined_call_operand.vmem [shape: f32[8,1], index: 2, kind: input, shape index: {}]   ;;  %s1065_s3 = inlined_call_operand.vmem [shape: f32[8,1], index: 3, kind: input, shape index: {}]   ;;  %s1066_s4 = inlined_call_operand.vmem [shape: f32[8,256], index: 4, kind: input, shape index: {}]   ;;  %s1067_s5 = inlined_call_operand.vmem [shape: f32[8,256], index: 5, kind: output, shape index: {}]  }
   0x1   :  { %s901_s20 = smov 0  }
   0x2 LB: > { %s713_s21 = sadd.s32 4294967295, %s864_s20   ;;  %s914_s22 = sadd.s32 1, %s864_s20   ;;  %s864_s20 = sphi %s901_s20, %s1070_s20   ;;  %s860_s19 = sphi %s899_s19, %s1069_s19   ;;  %s856_s18 = sphi %s897_s18, %s1068_s18  }
   0x3   : > { %s40_s23 = ssub.s32 %s864_s20, %s914_s22  ;;  %s43_s24 = sadd.s32 1, %s860_s19 }
   0x4   : > { %p41_p0 = scmp.eq.s32.totalorder %s40_s23, 0  ;;  %p50_p1 = scmp.ne.s32.totalorder %s860_s19, %s856_s18 }
   0x5   : > { %p51_p2 = scmp.eq.s32.totalorder %s864_s20, 0  ;;  %p716_p4 = scmp.ge.s32.totalorder %s864_s20, 2 }
   0x6   : > { %s923_s25 = scalar_select %p41_p0, %s860_s19, %s43_s24  }
   0x7   : > { %p52_p3 = por %p51_p2, %p50_p1  ;;  %179 = sbr.rel (%p716_p4) target bundleno = 53 (0x35), region = 28 }
   0xc   : > { %182 = sbr.rel (!%p52_p3) target bundleno = 53 (0x35), region = 32  ;;  %s184_s26 = sand.u32 (%p52_p3), 1, %s860_s19  }
   0xd   : > { %s717_s27 = sshll.u32 (%p52_p3), %s864_s20, 2  ;;  %s814_s28 = smul.u32 (%p52_p3), 144, %s184_s26 }
   0xe   : > { %s931_s6 = scalar_lea.vmem (%p52_p3), %s1063_s1, %s717_s27 }
   0xf   : > { %v205_v0 = vld [vmem:[%s931_s6] sm:$0xf] (%p52_p3)  ;;  %v207_v1 = vld [vmem:[%s931_s6 + $0x8] sm:$0xf] (%p52_p3)  ;;  %v209_v2 = vld [vmem:[%s931_s6 + $0x10] sm:$0xf] (%p52_p3) }
  0x10   : > { %s936_s7 = scalar_lea.vmem (%p52_p3), [#allocation2], %s814_s28  ;;  %v211_v3 = vld [vmem:[%s931_s6 + $0x18] sm:$0xf] (%p52_p3)  ;;  %v213_v4 = vld [vmem:[%s931_s6 + $0x20] sm:$0xf] (%p52_p3) }
  0x11   : > { %206 = vst [vmem:[%s936_s7] sm:$0xf] %v205_v0  ;;  %v215_v5 = vld [vmem:[%s931_s6 + $0x28] sm:$0xf]  ;;  %v217_v6 = vld [vmem:[%s931_s6 + $0x30] sm:$0xf] }
  0x12   : > { %208 = vst [vmem:[%s936_s7 + $0x4] sm:$0xf] %v207_v1  ;;  %v219_v7 = vld [vmem:[%s931_s6 + $0x38] sm:$0xf]  ;;  %v221_v8 = vld [vmem:[%s931_s6 + $0x40] sm:$0xf] }
  0x13   : > { %210 = vst [vmem:[%s936_s7 + $0x8] sm:$0xf] %v209_v2  ;;  %v223_v9 = vld [vmem:[%s931_s6 + $0x48] sm:$0xf]  ;;  %v225_v10 = vld [vmem:[%s931_s6 + $0x50] sm:$0xf] }
  0x14   : > { %212 = vst [vmem:[%s936_s7 + $0xc] sm:$0xf] %v211_v3  ;;  %v227_v11 = vld [vmem:[%s931_s6 + $0x58] sm:$0xf]  ;;  %v229_v12 = vld [vmem:[%s931_s6 + $0x60] sm:$0xf] }
  0x15   : > { %214 = vst [vmem:[%s936_s7 + $0x10] sm:$0xf] %v213_v4  ;;  %v231_v13 = vld [vmem:[%s931_s6 + $0x68] sm:$0xf]  ;;  %v233_v14 = vld [vmem:[%s931_s6 + $0x70] sm:$0xf] }
  0x16   : > { %216 = vst [vmem:[%s936_s7 + $0x14] sm:$0xf] %v215_v5  ;;  %v235_v15 = vld [vmem:[%s931_s6 + $0x78] sm:$0xf]  ;;  %v237_v16 = vld [vmem:[%s931_s6 + $0x80] sm:$0xf] }
  0x17   : > { %218 = vst [vmem:[%s936_s7 + $0x18] sm:$0xf] %v217_v6  ;;  %v239_v17 = vld [vmem:[%s931_s6 + $0x88] sm:$0xf]  ;;  %v241_v18 = vld [vmem:[%s931_s6 + $0x90] sm:$0xf] }
  0x18   : > { %220 = vst [vmem:[%s936_s7 + $0x1c] sm:$0xf] %v219_v7  ;;  %v243_v19 = vld [vmem:[%s931_s6 + $0x98] sm:$0xf]  ;;  %v245_v20 = vld [vmem:[%s931_s6 + $0xa0] sm:$0xf] }
  0x19   : > { %222 = vst [vmem:[%s936_s7 + $0x20] sm:$0xf] %v221_v8  ;;  %v247_v21 = vld [vmem:[%s931_s6 + $0xa8] sm:$0xf]  ;;  %v249_v22 = vld [vmem:[%s931_s6 + $0xb0] sm:$0xf] }
  0x1a   : > { %224 = vst [vmem:[%s936_s7 + $0x24] sm:$0xf] %v223_v9  ;;  %v251_v23 = vld [vmem:[%s931_s6 + $0xb8] sm:$0xf]  ;;  %v253_v24 = vld [vmem:[%s931_s6 + $0xc0] sm:$0xf] }
  0x1b   : > { %226 = vst [vmem:[%s936_s7 + $0x28] sm:$0xf] %v225_v10  ;;  %v255_v25 = vld [vmem:[%s931_s6 + $0xc8] sm:$0xf]  ;;  %v257_v26 = vld [vmem:[%s931_s6 + $0xd0] sm:$0xf] }
  0x1c   : > { %228 = vst [vmem:[%s936_s7 + $0x2c] sm:$0xf] %v227_v11  ;;  %v259_v27 = vld [vmem:[%s931_s6 + $0xd8] sm:$0xf]  ;;  %v261_v28 = vld [vmem:[%s931_s6 + $0xe0] sm:$0xf] }
  0x1d   : > { %230 = vst [vmem:[%s936_s7 + $0x30] sm:$0xf] %v229_v12  ;;  %v263_v29 = vld [vmem:[%s931_s6 + $0xe8] sm:$0xf]  ;;  %v265_v30 = vld [vmem:[%s931_s6 + $0xf0] sm:$0xf] }
  0x1e   : > { %232 = vst [vmem:[%s936_s7 + $0x34] sm:$0xf] %v231_v13  ;;  %v267_v31 = vld [vmem:[%s931_s6 + $0xf8] sm:$0xf]  ;;  %v269_v32 = vld [vmem:[%s931_s6 + $0x100] sm:$0xf] }
  0x1f   : > { %234 = vst [vmem:[%s936_s7 + $0x38] sm:$0xf] %v233_v14  ;;  %v271_v33 = vld [vmem:[%s931_s6 + $0x108] sm:$0xf]  ;;  %v273_v34 = vld [vmem:[%s931_s6 + $0x110] sm:$0xf] }
  0x20   : > { %236 = vst [vmem:[%s936_s7 + $0x3c] sm:$0xf] %v235_v15  ;;  %v275_v35 = vld [vmem:[%s931_s6 + $0x118] sm:$0xf] }
  0x21   : > { %238 = vst [vmem:[%s936_s7 + $0x40] sm:$0xf] %v237_v16 }
  0x22   : > { %240 = vst [vmem:[%s936_s7 + $0x44] sm:$0xf] %v239_v17 }
  0x23   : > { %242 = vst [vmem:[%s936_s7 + $0x48] sm:$0xf] %v241_v18 }
  0x24   : > { %244 = vst [vmem:[%s936_s7 + $0x4c] sm:$0xf] %v243_v19 }
  0x25   : > { %246 = vst [vmem:[%s936_s7 + $0x50] sm:$0xf] %v245_v20 }
  0x26   : > { %248 = vst [vmem:[%s936_s7 + $0x54] sm:$0xf] %v247_v21 }
  0x27   : > { %250 = vst [vmem:[%s936_s7 + $0x58] sm:$0xf] %v249_v22 }
  0x28   : > { %252 = vst [vmem:[%s936_s7 + $0x5c] sm:$0xf] %v251_v23 }
  0x29   : > { %254 = vst [vmem:[%s936_s7 + $0x60] sm:$0xf] %v253_v24 }
  0x2a   : > { %256 = vst [vmem:[%s936_s7 + $0x64] sm:$0xf] %v255_v25 }
  0x2b   : > { %258 = vst [vmem:[%s936_s7 + $0x68] sm:$0xf] %v257_v26 }
  0x2c   : > { %260 = vst [vmem:[%s936_s7 + $0x6c] sm:$0xf] %v259_v27 }
  0x2d   : > { %262 = vst [vmem:[%s936_s7 + $0x70] sm:$0xf] %v261_v28 }
  0x2e   : > { %264 = vst [vmem:[%s936_s7 + $0x74] sm:$0xf] %v263_v29 }
  0x2f   : > { %266 = vst [vmem:[%s936_s7 + $0x78] sm:$0xf] %v265_v30 }
  0x30   : > { %268 = vst [vmem:[%s936_s7 + $0x7c] sm:$0xf] %v267_v31 }
  0x31   : > { %270 = vst [vmem:[%s936_s7 + $0x80] sm:$0xf] %v269_v32 }
  0x32   : > { %272 = vst [vmem:[%s936_s7 + $0x84] sm:$0xf] %v271_v33 }
  0x33   : > { %274 = vst [vmem:[%s936_s7 + $0x88] sm:$0xf] %v273_v34 }
  0x34   : > { %276 = vst [vmem:[%s936_s7 + $0x8c] sm:$0xf] %v275_v35 }
  0x35 PF: > { %p718_p5 = scmp.ge.s32.totalorder %s864_s20, 1  ;;  %p378_p6 = scmp.lt.s32.totalorder %s864_s20, 3 }
  0x37   : > { %p379_p7 = pnand %p718_p5, %p378_p6 }
  0x38   : > { %s385_s8 = sand.u32 (!%p379_p7), 1, %s856_s18   ;;  %p415_p8 = scmp.lt.s32.totalorder (!%p379_p7), %s713_s21, 1 }
  0x39   : > { %382 = sbr.rel (%p379_p7) target bundleno = 232 (0xe8), region = 77 }
  0x3a   : > { %s815_s9 = smul.u32 (!%p379_p7), 144, %s385_s8 }
  0x3c   : > { %s1010_s10 = scalar_lea.vmem (!%p379_p7), [#allocation2], %s815_s9 }
  0x3e   : > { %v866_v36 = vmov 0   ;;  %v803_v37 = vld [vmem:[%s1010_s10 + $0x38] sm:$0xff]  ;;  %v802_v40 = vld [vmem:[%s1010_s10 + $0x30] sm:$0xff]  ;;  %v813_v42 = vld [vmem:[%s1010_s10 + $0x88] sm:$0xff]  ;;  %vm586_vm0 = vcmask 261120   ;;  %s1072_s21 = smov (!%p415_p8, %s713_s21), 1 }
  0x3f   : > { %841 = vset.pattern.permute.xlu0 %v866_v36  ;;  %v811_v38 = vld [vmem:[%s1010_s10 + $0x78] sm:$0xff]  ;;  %590 = vmatpush.bf16.msra.mxu0 %v803_v37  ;;  %v810_v41 = vld [vmem:[%s1010_s10 + $0x70] sm:$0xff]  ;;  %v812_v44 = vld [vmem:[%s1010_s10 + $0x80] sm:$0xff]  ;;  %s719_s23 = sshll.u32 %s1072_s21, 3 }
  0x40   : > { %v425_v39 = vld [vmem:[%s1062_s0 + $0x8] sm:$0xf]  ;;  %603 = vmatpush.bf16.msra.mxu1 %v811_v38  ;;  %622 = vmatpush.bf16.msra.mxu2 %v813_v42  ;;  %v462_v47 = vld [vmem:[%s1064_s2] sm:$0xff]  ;;  %s418_s27 = scalar_lea.vmem %s1066_s4, %s719_s23  ;;  %s422_s21 = scalar_lea.vmem %s1067_s5, %s719_s23 }
  0x41   : > { %v472_v43 = vunpack.c.l.b16 %v425_v39  ;;  %v801_v45 = vld [vmem:[%s1010_s10 + $0x28] sm:$0xff]  ;;  %465 = vperm.xlu0 %841, %v462_v47   ;;  %v800_v49 = vld [vmem:[%s1010_s10 + $0x20] sm:$0xff]  ;;  %v799_v52 = vld [vmem:[%s1010_s10 + $0x18] sm:$0xff] }
  0x42   : > { %v809_v46 = vld [vmem:[%s1010_s10 + $0x68] sm:$0xff]  ;;  %v808_v50 = vld [vmem:[%s1010_s10 + $0x60] sm:$0xff]  ;;  %v807_v53 = vld [vmem:[%s1010_s10 + $0x58] sm:$0xff] }
  0x43   : > { %591 = vmatpush.bf16.msra.mxu0 %v802_v40  ;;  %v475_v48 = vpack.c.b16 %v472_v43, %v472_v43  ;;  %v630_v51 = vld [vmem:[%s1065_s3] sm:$0xff]  ;;  %v797_v56 = vld [vmem:[%s1010_s10 + $0x8] sm:$0xff] }
  0x44   : > { %604 = vmatpush.bf16.msra.mxu1 %v810_v41  ;;  %623 = vmatpush.bf16.msra.mxu2 %v812_v44  ;;  %v798_v54 = vld [vmem:[%s1010_s10 + $0x10] sm:$0xff]  ;;  %v805_v57 = vld [vmem:[%s1010_s10 + $0x48] sm:$0xff]  ;;  %v796_v61 = vld [vmem:[%s1010_s10] sm:$0xff] }
  0x45   : > { %v806_v55 = vld [vmem:[%s1010_s10 + $0x50] sm:$0xff]  ;;  %v804_v62 = vld [vmem:[%s1010_s10 + $0x40] sm:$0xff] }
  0x46   : > { %v424_v58 = vld [vmem:[%s1062_s0] sm:$0xff] }
  0x47   : > { %592 = vmatpush.bf16.msra.mxu0 %v801_v45  ;;  %793 = vmatmul.msk.bf16.vlgmr.msra.gmra.mxu2 %vm586_vm0, %v475_v48  ;;  %v470_v59 = vunpack.c.l.b16 %v424_v58  ;;  %v471_v60 = vunpack.c.h.b16 %v424_v58  ;;  %v638_v8 = vld [vmem:[%s418_s27] sm:$0xff] }
  0x48   : > { %605 = vmatpush.bf16.msra.mxu1 %v809_v46  ;;  %v639_v11 = vmul.f32 -1.0, %v638_v8 }
  0x49   : > { %633 = vperm.xlu0 %841, %v630_v51   ;;  %v473_v63 = vpack.c.b16 %v470_v59, %v470_v59  ;;  %v474_v0 = vpack.c.b16 %v471_v60, %v471_v60 }
  0x4b   : > { %593 = vmatpush.bf16.msra.mxu0 %v800_v49 }
  0x4c   : > { %606 = vmatpush.bf16.msra.mxu1 %v808_v50 }
  0x4f   : > { %594 = vmatpush.bf16.msra.mxu0 %v799_v52 }
  0x50   : > { %607 = vmatpush.bf16.msra.mxu1 %v807_v53 }
  0x53   : > { %595 = vmatpush.bf16.msra.mxu0 %v798_v54 }
  0x54   : > { %608 = vmatpush.bf16.msra.mxu1 %v806_v55 }
  0x57   : > { %596 = vmatpush.bf16.msra.mxu0 %v797_v56 }
  0x58   : > { %609 = vmatpush.bf16.msra.mxu1 %v805_v57 }
  0x5b   : > { %597 = vmatpush.bf16.msra.mxu0 %v796_v61 }
  0x5c   : > { %610 = vmatpush.bf16.msra.mxu1 %v804_v62 }
  0x5e   : > { %598 = vmatmul.bf16.vlgmr.msra.gmra.mxu0 %v473_v63 }
  0x5f   : > { %611 = vmatmul.bf16.vlgmr.msra.gmra.mxu1 %v474_v0 }
  0xb3   : > { %v466_v3 = vpop.permute.xlu0 %465 }
  0xbb   : > { %v634_v10 = vpop.permute.xlu0 %633 }
  0xca   : > { %v625_v1 = vpop.f32.mrf.mxu2 }
  0xd2   : > { %v627_v2 = vpop.f32.mrf.mxu2 }
  0xdb   : > { %v599_v4 = vpop.f32.mrf.mxu0 }
  0xdc   : > { %v612_v5 = vpop.f32.mrf.mxu1  ;;  %v600_v6 = vadd.f32 %v599_v4, %v466_v3 }
  0xde   : > { %v613_v7 = vadd.f32 %v612_v5, %v600_v6 }
  0xe0   : > { %v626_v9 = vadd.f32 %v625_v1, %v613_v7 }
  0xe2   : > { %vm629_vm1 = vcmp.ge.f32.partialorder %v626_v9, 0.0  ;;  %v636_v12 = vmul.f32 %v634_v10, %v626_v9 }
  0xe3   : > { %v601_v13 = vpop.f32.mrf.mxu0 }
  0xe4   : > { %v614_v14 = vpop.f32.mrf.mxu1  ;;  %v637_v15 = vsel %vm629_vm1, %v626_v9, %v636_v12 }
  0xe5   : > { %v640_v16 = vadd.f32 %v639_v11, %v637_v15 }
  0xe7   : > { %641 = vst [vmem:[%s422_s21] sm:$0xff] %v640_v16 }
  0xe8 PF: > { %p12_p9 = scmp.ge.s32.totalorder %s914_s22, 4   ;;  %s1068_s18 = smov %s860_s19 }
  0xe9   : > { %s1069_s19 = smov %s923_s25  ;;  %s1070_s20 = smov %s914_s22 }
  0xea   :  { %14 = sbr.rel (!%p12_p9) target bundleno = 2 (0x2), region = 119 }

// kernel: _lambda_.18
= control target key start
LH: loop header
LB: loop body
LE: loop exit
PB: predicated region body
PF: predicated region fallthrough
CT: control target
= control target key end

     0   :  { %s778_s18 = smov 0   ;;  %s780_s19 = smov 0   ;;  %s885_s0 = inlined_call_operand.vmem [shape: bf16[32,72], index: 0, kind: input, shape index: {}]   ;;  %s886_s1 = inlined_call_operand.vmem [shape: bf16[72,256], index: 1, kind: input, shape index: {}]   ;;  %s887_s2 = inlined_call_operand.vmem [shape: f32[32,1], index: 2, kind: input, shape index: {}]   ;;  %s888_s3 = inlined_call_operand.vmem [shape: f32[32,1], index: 3, kind: input, shape index: {}]   ;;  %s889_s4 = inlined_call_operand.vmem [shape: f32[32,256], index: 4, kind: input, shape index: {}]   ;;  %s890_s5 = inlined_call_operand.vmem [shape: f32[32,256], index: 5, kind: output, shape index: {}]  }
   0x1   :  { %s782_s20 = smov 0  }
   0x2 LB: > { %s642_s21 = sadd.s32 4294967295, %s745_s20   ;;  %s795_s22 = sadd.s32 1, %s745_s20   ;;  %s745_s20 = sphi %s782_s20, %s895_s20   ;;  %s741_s19 = sphi %s780_s19, %s894_s19   ;;  %s737_s18 = sphi %s778_s18, %s893_s18  }
   0x3   : > { %s40_s23 = ssub.s32 %s745_s20, %s795_s22  ;;  %s43_s24 = sadd.s32 1, %s741_s19 }
   0x4   : > { %p41_p0 = scmp.eq.s32.totalorder %s40_s23, 0  ;;  %p50_p1 = scmp.ne.s32.totalorder %s741_s19, %s737_s18 }
   0x5   : > { %p51_p2 = scmp.eq.s32.totalorder %s745_s20, 0  ;;  %p148_p3 = scmp.eq.s32.totalorder %s642_s21, 1 }
   0x6   : > { %s806_s25 = scalar_select %p41_p0, %s741_s19, %s43_s24  }
   0x7   : > { %p808_p4 = por %p51_p2, %p50_p1  ;;  %p812_p5 = por %p148_p3, %p50_p1 }
   0x8   : > { %p645_p6 = scmp.ge.s32.totalorder %s745_s20, 2 }
   0xa   : > { %179 = sbr.rel (%p645_p6) target bundleno = 37 (0x25), region = 28 }
   0xf   : > { %182 = sbr.rel (!%p808_p4) target bundleno = 29 (0x1d), region = 32  ;;  %s184_s28 = sand.u32 (%p808_p4), 1, %s741_s19  }
  0x10   : > { %s646_s29 = sshll.u32 (%p808_p4), %s745_s20, 2  ;;  %s693_s30 = smul.u32 (%p808_p4), 36, %s184_s28 }
  0x11   : > { %s188_s8 = scalar_lea.vmem (%p808_p4), %s886_s1, %s646_s29 }
  0x12   : > { %v205_v0 = vld [vmem:[%s188_s8] sm:$0xf] (%p808_p4)  ;;  %v207_v1 = vld [vmem:[%s188_s8 + $0x8] sm:$0xf] (%p808_p4)  ;;  %v209_v2 = vld [vmem:[%s188_s8 + $0x10] sm:$0xf] (%p808_p4) }
  0x13   : > { %s186_s9 = scalar_lea.vmem (%p808_p4), [#allocation2], %s693_s30  ;;  %v211_v3 = vld [vmem:[%s188_s8 + $0x18] sm:$0xf] (%p808_p4)  ;;  %v213_v4 = vld [vmem:[%s188_s8 + $0x20] sm:$0xf] (%p808_p4) }
  0x14   : > { %206 = vst [vmem:[%s186_s9] sm:$0xf] %v205_v0  ;;  %v215_v5 = vld [vmem:[%s188_s8 + $0x28] sm:$0xf]  ;;  %v217_v6 = vld [vmem:[%s188_s8 + $0x30] sm:$0xf] }
  0x15   : > { %208 = vst [vmem:[%s186_s9 + $0x4] sm:$0xf] %v207_v1  ;;  %v219_v7 = vld [vmem:[%s188_s8 + $0x38] sm:$0xf]  ;;  %v221_v8 = vld [vmem:[%s188_s8 + $0x40] sm:$0xf] }
  0x16   : > { %210 = vst [vmem:[%s186_s9 + $0x8] sm:$0xf] %v209_v2 }
  0x17   : > { %212 = vst [vmem:[%s186_s9 + $0xc] sm:$0xf] %v211_v3 }
  0x18   : > { %214 = vst [vmem:[%s186_s9 + $0x10] sm:$0xf] %v213_v4 }
  0x19   : > { %216 = vst [vmem:[%s186_s9 + $0x14] sm:$0xf] %v215_v5 }
  0x1a   : > { %218 = vst [vmem:[%s186_s9 + $0x18] sm:$0xf] %v217_v6 }
  0x1b   : > { %220 = vst [vmem:[%s186_s9 + $0x1c] sm:$0xf] %v219_v7 }
  0x1c   : > { %222 = vst [vmem:[%s186_s9 + $0x20] sm:$0xf] %v221_v8 }
  0x1d PF: > { %264 = sbr.rel (!%p808_p4) target bundleno = 37 (0x25), region = 73  ;;  %s266_s10 = sand.u32 (%p808_p4), 1, %s741_s19  }
  0x1e   : > { %s648_s11 = sshll.u32 (%p808_p4), %s745_s20, 3  ;;  %s647_s12 = sshll.u32 (%p808_p4), %s266_s10, 5 }
  0x1f   : > { %s270_s15 = scalar_lea.vmem (%p808_p4), %s889_s4, %s648_s11  ;;  %s268_s16 = scalar_lea.vmem (%p808_p4), [#allocation3], %s647_s12 }
  0x20   : > { %v305_v9 = vld [vmem:[%s270_s15] sm:$0xff] (%p808_p4)  ;;  %v307_v10 = vld [vmem:[%s270_s15 + $0x10] sm:$0xff] (%p808_p4) }
  0x21   : > { %v309_v11 = vld [vmem:[%s270_s15 + $0x20] sm:$0xff] (%p808_p4)  ;;  %306 = vst [vmem:[%s268_s16] sm:$0xff] (%p808_p4), %v305_v9  ;;  %v311_v12 = vld [vmem:[%s270_s15 + $0x30] sm:$0xff] (%p808_p4) }
  0x22   : > { %308 = vst [vmem:[%s268_s16 + $0x8] sm:$0xff] %v307_v10 }
  0x23   : > { %310 = vst [vmem:[%s268_s16 + $0x10] sm:$0xff] %v309_v11 }
  0x24   : > { %312 = vst [vmem:[%s268_s16 + $0x18] sm:$0xff] %v311_v12 }
  0x25 PF: > { %p649_p7 = scmp.ge.s32.totalorder %s745_s20, 1  ;;  %p317_p8 = scmp.lt.s32.totalorder %s745_s20, 3 }
  0x27   : > { %p318_p9 = pnand %p649_p7, %p317_p8 }
  0x28   : > { %s324_s17 = sand.u32 (!%p318_p9), 1, %s737_s18  }
  0x29   : > { %321 = sbr.rel (%p318_p9) target bundleno = 224 (0xe0), region = 111  ;;  %s650_s30 = sshll.u32 (!%p318_p9), %s324_s17, 5 }
  0x2a   : > { %s694_s29 = smul.u32 (!%p318_p9), 36, %s324_s17  ;;  %s333_s6 = scalar_lea.vmem (!%p318_p9), [#allocation3], %s650_s30 }
  0x2b   : > { %s360_s18 = scalar_lea.vmem (!%p318_p9), [#allocation4], %s650_s30 }
  0x2c   : > { %s326_s7 = scalar_lea.vmem (!%p318_p9), [#allocation2], %s694_s29 }
  0x2e   : > { %v377_v13 = vld [vmem:[%s887_s2 + $0x10] sm:$0xff]  ;;  %v375_v14 = vld [vmem:[%s887_s2] sm:$0xff]  ;;  %v747_v15 = vmov 0   ;;  %vm443_vm0 = vcmask 1043456   ;;  %v378_v20 = vld [vmem:[%s887_s2 + $0x18] sm:$0xff]  ;;  %vm436_vm1 = vcmask 588800  }
  0x2f   : > { %721 = vset.pattern.permute.xlu1 %v747_v15  ;;  %720 = vset.pattern.permute.xlu0 %v747_v15  ;;  %v470_v16 = vld [vmem:[%s888_s3] sm:$0xff]  ;;  %v376_v21 = vld [vmem:[%s887_s2 + $0x8] sm:$0xff]  ;;  %v686_v25 = vld [vmem:[%s326_s7 + $0x10] sm:$0xff]  ;;  %s679_s17 = sshll.u32 (%p812_p5), %s642_s21, 3 }
  0x30   : > { %391 = vperm.xlu1 %721, %v377_v13   ;;  %381 = vperm.xlu0 %720, %v375_v14   ;;  %v374_v17 = vld [vmem:[%s326_s7 + $0x20] sm:$0xf]  ;;  %v471_v23 = vld [vmem:[%s888_s3 + $0x8] sm:$0xff]  ;;  %v687_v24 = vld [vmem:[%s326_s7 + $0x18] sm:$0xff]  ;;  %s522_s9 = scalar_lea.vmem (%p812_p5), %s890_s5, %s679_s17 }
  0x31   : > { %722 = vset.pattern.permute.xlu2 %v747_v15  ;;  %v426_v18 = vunpack.c.l.b16 %v374_v17  ;;  %v473_v26 = vld [vmem:[%s888_s3 + $0x18] sm:$0xff]  ;;  %v472_v27 = vld [vmem:[%s888_s3 + $0x10] sm:$0xff]  ;;  %v684_v29 = vld [vmem:[%s326_s7] sm:$0xff] }
  0x32   : > { %476 = vperm.xlu2 %722, %v470_v16   ;;  %v685_v28 = vld [vmem:[%s326_s7 + $0x8] sm:$0xff]  ;;  %v682_v30 = vld [vmem:[%s885_s0] sm:$0xff]  ;;  %v504_v45 = vld [vmem:[%s333_s6 + $0x10] sm:$0xff] }
  0x33   : > { %v431_v19 = vpack.c.b16 %v426_v18, %v426_v18  ;;  %v683_v31 = vld [vmem:[%s885_s0 + $0x8] sm:$0xff]  ;;  %v503_v57 = vld [vmem:[%s333_s6 + $0x8] sm:$0xff]  ;;  %v505_v59 = vld [vmem:[%s333_s6 + $0x18] sm:$0xff] }
  0x34   : > { %v502_v43 = vld [vmem:[%s333_s6] sm:$0xff] }
  0x35   : > { %v445_v22 = vsel %vm443_vm0, %v431_v19, 0 }
  0x36   : > { %450 = vmatpush.bf16.msra.mxu0 %v445_v22  ;;  %688 = vmatpush.bf16.msra.mxu1 %v445_v22 }
  0x38   : > { %396 = vperm.xlu1 %721, %v378_v20   ;;  %386 = vperm.xlu0 %720, %v376_v21  }
  0x3a   : > { %481 = vperm.xlu2 %722, %v471_v23   ;;  %451 = vmatpush.bf16.msra.mxu0 %v687_v24 }
  0x3b   : > { %689 = vmatpush.bf16.msra.mxu1 %v687_v24 }
  0x3e   : > { %452 = vmatpush.bf16.msra.mxu0 %v686_v25 }
  0x3f   : > { %690 = vmatpush.bf16.msra.mxu1 %v686_v25 }
  0x40   : > { %491 = vperm.xlu1 %721, %v473_v26   ;;  %486 = vperm.xlu0 %720, %v472_v27  }
  0x42   : > { %453 = vmatpush.bf16.msra.mxu0 %v685_v28 }
  0x43   : > { %691 = vmatpush.bf16.msra.mxu1 %v685_v28 }
  0x46   : > { %454 = vmatpush.bf16.msra.mxu0 %v684_v29 }
  0x47   : > { %692 = vmatpush.bf16.msra.mxu1 %v684_v29 }
  0x49   : > { %676 = vmatmul.msk.bf16.vlgmr.msra.gmra.mxu0 %vm436_vm1, %v682_v30 }
  0x4a   : > { %677 = vmatmul.msk.bf16.vlgmr.msra.gmra.mxu1 %vm436_vm1, %v683_v31 }
  0x8c   : > { %v477_v36 = vpop.permute.xlu2 %476 }
  0x94   : > { %v482_v55 = vpop.permute.xlu2 %481 }
  0xa2   : > { %v382_v32 = vpop.permute.xlu0 %381  ;;  %v392_v33 = vpop.permute.xlu1 %391 }
  0xaa   : > { %v387_v34 = vpop.permute.xlu0 %386  ;;  %v397_v35 = vpop.permute.xlu1 %396 }
  0xb2   : > { %v487_v41 = vpop.permute.xlu0 %486  ;;  %v492_v54 = vpop.permute.xlu1 %491 }
  0xc6   : > { %v456_v37 = vpop.f32.mrf.mxu0 }
  0xc7   : > { %v461_v38 = vpop.f32.mrf.mxu1  ;;  %v457_v39 = vadd.f32 %v456_v37, %v382_v32 }
  0xc8   : > { %v462_v40 = vadd.f32 %v461_v38, %v392_v33 }
  0xc9   : > { %vm466_vm2 = vcmp.ge.f32.partialorder %v457_v39, 0.0  ;;  %v494_v42 = vmul.f32 %v477_v36, %v457_v39 }
  0xca   : > { %vm468_vm3 = vcmp.ge.f32.partialorder %v462_v40, 0.0  ;;  %v496_v44 = vmul.f32 %v487_v41, %v462_v40 }
  0xcb   : > { %v498_v46 = vsel %vm466_vm2, %v457_v39, %v494_v42 }
  0xcc   : > { %v500_v47 = vsel %vm468_vm3, %v462_v40, %v496_v44  ;;  %v506_v48 = vadd.f32 %v502_v43, %v498_v46 }
  0xcd   : > { %v508_v49 = vadd.f32 %v504_v45, %v500_v47 }
  0xce   : > { %510 = vst [vmem:[%s360_s18] sm:$0xff] %v506_v48  ;;  %v458_v50 = vpop.f32.mrf.mxu0 }
  0xcf   : > { %v463_v51 = vpop.f32.mrf.mxu1  ;;  %512 = vst [vmem:[%s360_s18 + $0x10] sm:$0xff] %v508_v49  ;;  %v459_v52 = vadd.f32 %v458_v50, %v387_v34 }
  0xd0   : > { %v464_v53 = vadd.f32 %v463_v51, %v397_v35 }
  0xd1   : > { %vm467_vm4 = vcmp.ge.f32.partialorder %v459_v52, 0.0  ;;  %v495_v56 = vmul.f32 %v482_v55, %v459_v52 }
  0xd2   : > { %vm469_vm5 = vcmp.ge.f32.partialorder %v464_v53, 0.0  ;;  %v497_v58 = vmul.f32 %v492_v54, %v464_v53 }
  0xd3   : > { %v499_v60 = vsel %vm467_vm4, %v459_v52, %v495_v56  ;;  %520 = sbr.rel (!%p812_p5) target bundleno = 224 (0xe0), region = 123 }
  0xd4   : > { %v501_v61 = vsel %vm469_vm5, %v464_v53, %v497_v58  ;;  %v507_v62 = vadd.f32 %v503_v57, %v499_v60 }
  0xd5   : > { %v509_v63 = vadd.f32 %v505_v59, %v501_v61  ;;  %v557_v0 = vld [vmem:[%s360_s18] sm:$0xff] (%p812_p5) }
  0xd6   : > { %511 = vst [vmem:[%s360_s18 + $0x8] sm:$0xff] %v507_v62  ;;  %v561_v2 = vld [vmem:[%s360_s18 + $0x10] sm:$0xff] (%p812_p5) }
  0xd7   : > { %513 = vst [vmem:[%s360_s18 + $0x18] sm:$0xff] %v509_v63 }
  0xd8   : > { %558 = vst [vmem:[%s522_s9] sm:$0xff] %v557_v0 }
  0xd9   : > { %562 = vst [vmem:[%s522_s9 + $0x20] sm:$0xff] %v561_v2 }
  0xdd   : > { %v559_v1 = vld [vmem:[%s360_s18 + $0x8] sm:$0xff] }
  0xde   : > { %v563_v3 = vld [vmem:[%s360_s18 + $0x18] sm:$0xff]  ;;  %560 = vst [vmem:[%s522_s9 + $0x10] sm:$0xff] %v559_v1 }
  0xdf   : > { %564 = vst [vmem:[%s522_s9 + $0x30] sm:$0xff] %v563_v3 }
  0xe0 PF: > { %p12_p10 = scmp.ge.s32.totalorder %s795_s22, 4   ;;  %s893_s18 = smov %s741_s19 }
  0xe1   : > { %s894_s19 = smov %s806_s25  ;;  %s895_s20 = smov %s795_s22 }
  0xe2   :  { %14 = sbr.rel (!%p12_p10) target bundleno = 2 (0x2), region = 200 }

// kernel: _lambda_.19
= control target key start
LH: loop header
LB: loop body
LE: loop exit
PB: predicated region body
PF: predicated region fallthrough
CT: control target
= control target key end

     0   :  { %s832_s15 = smov 0   ;;  %s834_s16 = smov 0   ;;  %s994_s0 = inlined_call_operand.vmem [shape: bf16[8,288], index: 0, kind: input, shape index: {}]   ;;  %s995_s1 = inlined_call_operand.vmem [shape: bf16[288,256], index: 1, kind: input, shape index: {}]   ;;  %s996_s2 = inlined_call_operand.vmem [shape: f32[8,1], index: 2, kind: input, shape index: {}]   ;;  %s997_s3 = inlined_call_operand.vmem [shape: f32[8,1], index: 3, kind: input, shape index: {}]   ;;  %s998_s4 = inlined_call_operand.vmem [shape: f32[8,256], index: 4, kind: output, shape index: {}]  }
   0x1   :  { %s836_s17 = smov 0  }
   0x2 LB: > { %s654_s18 = sadd.s32 4294967295, %s804_s17   ;;  %s849_s19 = sadd.s32 1, %s804_s17   ;;  %s804_s17 = sphi %s836_s17, %s1001_s17   ;;  %s800_s16 = sphi %s834_s16, %s1000_s16   ;;  %s796_s15 = sphi %s832_s15, %s999_s15  }
   0x3   : > { %s39_s20 = ssub.s32 %s804_s17, %s849_s19  ;;  %s42_s21 = sadd.s32 1, %s800_s16 }
   0x4   : > { %p40_p0 = scmp.eq.s32.totalorder %s39_s20, 0  ;;  %p49_p1 = scmp.ne.s32.totalorder %s800_s16, %s796_s15 }
   0x5   : > { %p50_p2 = scmp.eq.s32.totalorder %s804_s17, 0  ;;  %p657_p4 = scmp.ge.s32.totalorder %s804_s17, 2 }
   0x6   : > { %s858_s22 = scalar_select %p40_p0, %s800_s16, %s42_s21  }
   0x7   : > { %p51_p3 = por %p50_p2, %p49_p1  ;;  %152 = sbr.rel (%p657_p4) target bundleno = 53 (0x35), region = 28 }
   0xc   : > { %155 = sbr.rel (!%p51_p3) target bundleno = 53 (0x35), region = 32  ;;  %s157_s23 = sand.u32 (%p51_p3), 1, %s800_s16  }
   0xd   : > { %s658_s24 = sshll.u32 (%p51_p3), %s804_s17, 2  ;;  %s754_s25 = smul.u32 (%p51_p3), 144, %s157_s23 }
   0xe   : > { %s866_s28 = scalar_lea.vmem (%p51_p3), %s995_s1, %s658_s24 }
   0xf   : > { %v178_v0 = vld [vmem:[%s866_s28] sm:$0xf] (%p51_p3)  ;;  %v180_v1 = vld [vmem:[%s866_s28 + $0x8] sm:$0xf] (%p51_p3)  ;;  %v182_v2 = vld [vmem:[%s866_s28 + $0x10] sm:$0xf] (%p51_p3) }
  0x10   : > { %s871_s29 = scalar_lea.vmem (%p51_p3), [#allocation2], %s754_s25  ;;  %v184_v3 = vld [vmem:[%s866_s28 + $0x18] sm:$0xf] (%p51_p3)  ;;  %v186_v4 = vld [vmem:[%s866_s28 + $0x20] sm:$0xf] (%p51_p3) }
  0x11   : > { %179 = vst [vmem:[%s871_s29] sm:$0xf] %v178_v0  ;;  %v188_v5 = vld [vmem:[%s866_s28 + $0x28] sm:$0xf]  ;;  %v190_v6 = vld [vmem:[%s866_s28 + $0x30] sm:$0xf] }
  0x12   : > { %181 = vst [vmem:[%s871_s29 + $0x4] sm:$0xf] %v180_v1  ;;  %v192_v7 = vld [vmem:[%s866_s28 + $0x38] sm:$0xf]  ;;  %v194_v8 = vld [vmem:[%s866_s28 + $0x40] sm:$0xf] }
  0x13   : > { %183 = vst [vmem:[%s871_s29 + $0x8] sm:$0xf] %v182_v2  ;;  %v196_v9 = vld [vmem:[%s866_s28 + $0x48] sm:$0xf]  ;;  %v198_v10 = vld [vmem:[%s866_s28 + $0x50] sm:$0xf] }
  0x14   : > { %185 = vst [vmem:[%s871_s29 + $0xc] sm:$0xf] %v184_v3  ;;  %v200_v11 = vld [vmem:[%s866_s28 + $0x58] sm:$0xf]  ;;  %v202_v12 = vld [vmem:[%s866_s28 + $0x60] sm:$0xf] }
  0x15   : > { %187 = vst [vmem:[%s871_s29 + $0x10] sm:$0xf] %v186_v4  ;;  %v204_v13 = vld [vmem:[%s866_s28 + $0x68] sm:$0xf]  ;;  %v206_v14 = vld [vmem:[%s866_s28 + $0x70] sm:$0xf] }
  0x16   : > { %189 = vst [vmem:[%s871_s29 + $0x14] sm:$0xf] %v188_v5  ;;  %v208_v15 = vld [vmem:[%s866_s28 + $0x78] sm:$0xf]  ;;  %v210_v16 = vld [vmem:[%s866_s28 + $0x80] sm:$0xf] }
  0x17   : > { %191 = vst [vmem:[%s871_s29 + $0x18] sm:$0xf] %v190_v6  ;;  %v212_v17 = vld [vmem:[%s866_s28 + $0x88] sm:$0xf]  ;;  %v214_v18 = vld [vmem:[%s866_s28 + $0x90] sm:$0xf] }
  0x18   : > { %193 = vst [vmem:[%s871_s29 + $0x1c] sm:$0xf] %v192_v7  ;;  %v216_v19 = vld [vmem:[%s866_s28 + $0x98] sm:$0xf]  ;;  %v218_v20 = vld [vmem:[%s866_s28 + $0xa0] sm:$0xf] }
  0x19   : > { %195 = vst [vmem:[%s871_s29 + $0x20] sm:$0xf] %v194_v8  ;;  %v220_v21 = vld [vmem:[%s866_s28 + $0xa8] sm:$0xf]  ;;  %v222_v22 = vld [vmem:[%s866_s28 + $0xb0] sm:$0xf] }
  0x1a   : > { %197 = vst [vmem:[%s871_s29 + $0x24] sm:$0xf] %v196_v9  ;;  %v224_v23 = vld [vmem:[%s866_s28 + $0xb8] sm:$0xf]  ;;  %v226_v24 = vld [vmem:[%s866_s28 + $0xc0] sm:$0xf] }
  0x1b   : > { %199 = vst [vmem:[%s871_s29 + $0x28] sm:$0xf] %v198_v10  ;;  %v228_v25 = vld [vmem:[%s866_s28 + $0xc8] sm:$0xf]  ;;  %v230_v26 = vld [vmem:[%s866_s28 + $0xd0] sm:$0xf] }
  0x1c   : > { %201 = vst [vmem:[%s871_s29 + $0x2c] sm:$0xf] %v200_v11  ;;  %v232_v27 = vld [vmem:[%s866_s28 + $0xd8] sm:$0xf]  ;;  %v234_v28 = vld [vmem:[%s866_s28 + $0xe0] sm:$0xf] }
  0x1d   : > { %203 = vst [vmem:[%s871_s29 + $0x30] sm:$0xf] %v202_v12  ;;  %v236_v29 = vld [vmem:[%s866_s28 + $0xe8] sm:$0xf]  ;;  %v238_v30 = vld [vmem:[%s866_s28 + $0xf0] sm:$0xf] }
  0x1e   : > { %205 = vst [vmem:[%s871_s29 + $0x34] sm:$0xf] %v204_v13  ;;  %v240_v31 = vld [vmem:[%s866_s28 + $0xf8] sm:$0xf]  ;;  %v242_v32 = vld [vmem:[%s866_s28 + $0x100] sm:$0xf] }
  0x1f   : > { %207 = vst [vmem:[%s871_s29 + $0x38] sm:$0xf] %v206_v14  ;;  %v244_v33 = vld [vmem:[%s866_s28 + $0x108] sm:$0xf]  ;;  %v246_v34 = vld [vmem:[%s866_s28 + $0x110] sm:$0xf] }
  0x20   : > { %209 = vst [vmem:[%s871_s29 + $0x3c] sm:$0xf] %v208_v15  ;;  %v248_v35 = vld [vmem:[%s866_s28 + $0x118] sm:$0xf] }
  0x21   : > { %211 = vst [vmem:[%s871_s29 + $0x40] sm:$0xf] %v210_v16 }
  0x22   : > { %213 = vst [vmem:[%s871_s29 + $0x44] sm:$0xf] %v212_v17 }
  0x23   : > { %215 = vst [vmem:[%s871_s29 + $0x48] sm:$0xf] %v214_v18 }
  0x24   : > { %217 = vst [vmem:[%s871_s29 + $0x4c] sm:$0xf] %v216_v19 }
  0x25   : > { %219 = vst [vmem:[%s871_s29 + $0x50] sm:$0xf] %v218_v20 }
  0x26   : > { %221 = vst [vmem:[%s871_s29 + $0x54] sm:$0xf] %v220_v21 }
  0x27   : > { %223 = vst [vmem:[%s871_s29 + $0x58] sm:$0xf] %v222_v22 }
  0x28   : > { %225 = vst [vmem:[%s871_s29 + $0x5c] sm:$0xf] %v224_v23 }
  0x29   : > { %227 = vst [vmem:[%s871_s29 + $0x60] sm:$0xf] %v226_v24 }
  0x2a   : > { %229 = vst [vmem:[%s871_s29 + $0x64] sm:$0xf] %v228_v25 }
  0x2b   : > { %231 = vst [vmem:[%s871_s29 + $0x68] sm:$0xf] %v230_v26 }
  0x2c   : > { %233 = vst [vmem:[%s871_s29 + $0x6c] sm:$0xf] %v232_v27 }
  0x2d   : > { %235 = vst [vmem:[%s871_s29 + $0x70] sm:$0xf] %v234_v28 }
  0x2e   : > { %237 = vst [vmem:[%s871_s29 + $0x74] sm:$0xf] %v236_v29 }
  0x2f   : > { %239 = vst [vmem:[%s871_s29 + $0x78] sm:$0xf] %v238_v30 }
  0x30   : > { %241 = vst [vmem:[%s871_s29 + $0x7c] sm:$0xf] %v240_v31 }
  0x31   : > { %243 = vst [vmem:[%s871_s29 + $0x80] sm:$0xf] %v242_v32 }
  0x32   : > { %245 = vst [vmem:[%s871_s29 + $0x84] sm:$0xf] %v244_v33 }
  0x33   : > { %247 = vst [vmem:[%s871_s29 + $0x88] sm:$0xf] %v246_v34 }
  0x34   : > { %249 = vst [vmem:[%s871_s29 + $0x8c] sm:$0xf] %v248_v35 }
  0x35 PF: > { %p659_p5 = scmp.ge.s32.totalorder %s804_s17, 1  ;;  %p344_p6 = scmp.lt.s32.totalorder %s804_s17, 3 }
  0x37   : > { %p345_p7 = pnand %p659_p5, %p344_p6 }
  0x38   : > { %s351_s30 = sand.u32 (!%p345_p7), 1, %s796_s15   ;;  %p375_p8 = scmp.lt.s32.totalorder (!%p345_p7), %s654_s18, 1 }
  0x39   : > { %348 = sbr.rel (%p345_p7) target bundleno = 230 (0xe6), region = 73 }
  0x3a   : > { %s755_s5 = smul.u32 (!%p345_p7), 144, %s351_s30 }
  0x3c   : > { %s945_s6 = scalar_lea.vmem (!%p345_p7), [#allocation2], %s755_s5 }
  0x3e   : > { %v806_v36 = vmov 0   ;;  %v743_v37 = vld [vmem:[%s945_s6 + $0x38] sm:$0xff]  ;;  %v742_v40 = vld [vmem:[%s945_s6 + $0x30] sm:$0xff]  ;;  %v753_v42 = vld [vmem:[%s945_s6 + $0x88] sm:$0xff]  ;;  %vm542_vm0 = vcmask 261120   ;;  %s1003_s18 = smov (!%p375_p8, %s654_s18), 1 }
  0x3f   : > { %781 = vset.pattern.permute.xlu0 %v806_v36  ;;  %v751_v38 = vld [vmem:[%s945_s6 + $0x78] sm:$0xff]  ;;  %546 = vmatpush.bf16.msra.mxu0 %v743_v37  ;;  %v750_v41 = vld [vmem:[%s945_s6 + $0x70] sm:$0xff]  ;;  %v752_v44 = vld [vmem:[%s945_s6 + $0x80] sm:$0xff]  ;;  %s660_s15 = sshll.u32 %s1003_s18, 3 }
  0x40   : > { %v381_v39 = vld [vmem:[%s994_s0 + $0x8] sm:$0xf]  ;;  %559 = vmatpush.bf16.msra.mxu1 %v751_v38  ;;  %578 = vmatpush.bf16.msra.mxu2 %v753_v42  ;;  %v418_v47 = vld [vmem:[%s996_s2] sm:$0xff]  ;;  %s378_s23 = scalar_lea.vmem %s998_s4, %s660_s15 }
  0x41   : > { %v428_v43 = vunpack.c.l.b16 %v381_v39  ;;  %v741_v45 = vld [vmem:[%s945_s6 + $0x28] sm:$0xff]  ;;  %421 = vperm.xlu0 %781, %v418_v47   ;;  %v740_v49 = vld [vmem:[%s945_s6 + $0x20] sm:$0xff]  ;;  %v739_v52 = vld [vmem:[%s945_s6 + $0x18] sm:$0xff] }
  0x42   : > { %v749_v46 = vld [vmem:[%s945_s6 + $0x68] sm:$0xff]  ;;  %v748_v50 = vld [vmem:[%s945_s6 + $0x60] sm:$0xff]  ;;  %v747_v53 = vld [vmem:[%s945_s6 + $0x58] sm:$0xff] }
  0x43   : > { %547 = vmatpush.bf16.msra.mxu0 %v742_v40  ;;  %v431_v48 = vpack.c.b16 %v428_v43, %v428_v43  ;;  %v586_v51 = vld [vmem:[%s997_s3] sm:$0xff]  ;;  %v737_v56 = vld [vmem:[%s945_s6 + $0x8] sm:$0xff] }
  0x44   : > { %560 = vmatpush.bf16.msra.mxu1 %v750_v41  ;;  %579 = vmatpush.bf16.msra.mxu2 %v752_v44  ;;  %v738_v54 = vld [vmem:[%s945_s6 + $0x10] sm:$0xff]  ;;  %v745_v57 = vld [vmem:[%s945_s6 + $0x48] sm:$0xff]  ;;  %v736_v61 = vld [vmem:[%s945_s6] sm:$0xff] }
  0x45   : > { %v746_v55 = vld [vmem:[%s945_s6 + $0x50] sm:$0xff]  ;;  %v744_v62 = vld [vmem:[%s945_s6 + $0x40] sm:$0xff] }
  0x46   : > { %v380_v58 = vld [vmem:[%s994_s0] sm:$0xff] }
  0x47   : > { %548 = vmatpush.bf16.msra.mxu0 %v741_v45  ;;  %733 = vmatmul.msk.bf16.vlgmr.msra.gmra.mxu2 %vm542_vm0, %v431_v48  ;;  %v426_v59 = vunpack.c.l.b16 %v380_v58  ;;  %v427_v60 = vunpack.c.h.b16 %v380_v58 }
  0x48   : > { %561 = vmatpush.bf16.msra.mxu1 %v749_v46 }
  0x49   : > { %589 = vperm.xlu0 %781, %v586_v51   ;;  %v429_v63 = vpack.c.b16 %v426_v59, %v426_v59  ;;  %v430_v0 = vpack.c.b16 %v427_v60, %v427_v60 }
  0x4b   : > { %549 = vmatpush.bf16.msra.mxu0 %v740_v49 }
  0x4c   : > { %562 = vmatpush.bf16.msra.mxu1 %v748_v50 }
  0x4f   : > { %550 = vmatpush.bf16.msra.mxu0 %v739_v52 }
  0x50   : > { %563 = vmatpush.bf16.msra.mxu1 %v747_v53 }
  0x53   : > { %551 = vmatpush.bf16.msra.mxu0 %v738_v54 }
  0x54   : > { %564 = vmatpush.bf16.msra.mxu1 %v746_v55 }
  0x57   : > { %552 = vmatpush.bf16.msra.mxu0 %v737_v56 }
  0x58   : > { %565 = vmatpush.bf16.msra.mxu1 %v745_v57 }
  0x5b   : > { %553 = vmatpush.bf16.msra.mxu0 %v736_v61 }
  0x5c   : > { %566 = vmatpush.bf16.msra.mxu1 %v744_v62 }
  0x5e   : > { %554 = vmatmul.bf16.vlgmr.msra.gmra.mxu0 %v429_v63 }
  0x5f   : > { %567 = vmatmul.bf16.vlgmr.msra.gmra.mxu1 %v430_v0 }
  0xb3   : > { %v422_v3 = vpop.permute.xlu0 %421 }
  0xbb   : > { %v590_v9 = vpop.permute.xlu0 %589 }
  0xca   : > { %v581_v1 = vpop.f32.mrf.mxu2 }
  0xd2   : > { %v583_v2 = vpop.f32.mrf.mxu2 }
  0xdb   : > { %v555_v4 = vpop.f32.mrf.mxu0 }
  0xdc   : > { %v568_v5 = vpop.f32.mrf.mxu1  ;;  %v556_v6 = vadd.f32 %v555_v4, %v422_v3 }
  0xde   : > { %v569_v7 = vadd.f32 %v568_v5, %v556_v6 }
  0xe0   : > { %v582_v8 = vadd.f32 %v581_v1, %v569_v7 }
  0xe2   : > { %vm585_vm1 = vcmp.ge.f32.partialorder %v582_v8, 0.0  ;;  %v592_v10 = vmul.f32 %v590_v9, %v582_v8 }
  0xe3   : > { %v557_v11 = vpop.f32.mrf.mxu0 }
  0xe4   : > { %v570_v12 = vpop.f32.mrf.mxu1  ;;  %v593_v13 = vsel %vm585_vm1, %v582_v8, %v592_v10 }
  0xe5   : > { %594 = vst [vmem:[%s378_s23] sm:$0xff] %v593_v13 }
  0xe6 PF: > { %p11_p9 = scmp.ge.s32.totalorder %s849_s19, 4   ;;  %s999_s15 = smov %s800_s16 }
  0xe7   : > { %s1000_s16 = smov %s858_s22  ;;  %s1001_s17 = smov %s849_s19 }
  0xe8   :  { %13 = sbr.rel (!%p11_p9) target bundleno = 2 (0x2), region = 112 }

// kernel: _lambda_.20
= control target key start
LH: loop header
LB: loop body
LE: loop exit
PB: predicated region body
PF: predicated region fallthrough
CT: control target
= control target key end

     0   :  { %s782_s18 = smov 0   ;;  %s784_s19 = smov 0   ;;  %s889_s0 = inlined_call_operand.vmem [shape: bf16[32,72], index: 0, kind: input, shape index: {}]   ;;  %s890_s1 = inlined_call_operand.vmem [shape: bf16[72,256], index: 1, kind: input, shape index: {}]   ;;  %s891_s2 = inlined_call_operand.vmem [shape: f32[32,1], index: 2, kind: input, shape index: {}]   ;;  %s892_s3 = inlined_call_operand.vmem [shape: f32[32,1], index: 3, kind: input, shape index: {}]   ;;  %s893_s4 = inlined_call_operand.vmem [shape: f32[32,256], index: 4, kind: input, shape index: {}]   ;;  %s894_s5 = inlined_call_operand.vmem [shape: f32[32,256], index: 5, kind: output, shape index: {}]  }
   0x1   :  { %s786_s20 = smov 0  }
   0x2 LB: > { %s646_s21 = sadd.s32 4294967295, %s749_s20   ;;  %s799_s22 = sadd.s32 1, %s749_s20   ;;  %s749_s20 = sphi %s786_s20, %s899_s20   ;;  %s745_s19 = sphi %s784_s19, %s898_s19   ;;  %s741_s18 = sphi %s782_s18, %s897_s18  }
   0x3   : > { %s40_s23 = ssub.s32 %s749_s20, %s799_s22  ;;  %s43_s24 = sadd.s32 1, %s745_s19 }
   0x4   : > { %p41_p0 = scmp.eq.s32.totalorder %s40_s23, 0  ;;  %p50_p1 = scmp.ne.s32.totalorder %s745_s19, %s741_s18 }
   0x5   : > { %p51_p2 = scmp.eq.s32.totalorder %s749_s20, 0  ;;  %p148_p3 = scmp.eq.s32.totalorder %s646_s21, 1 }
   0x6   : > { %s810_s25 = scalar_select %p41_p0, %s745_s19, %s43_s24  }
   0x7   : > { %p812_p4 = por %p51_p2, %p50_p1  ;;  %p816_p5 = por %p148_p3, %p50_p1 }
   0x8   : > { %p649_p6 = scmp.ge.s32.totalorder %s749_s20, 2 }
   0xa   : > { %179 = sbr.rel (%p649_p6) target bundleno = 37 (0x25), region = 28 }
   0xf   : > { %182 = sbr.rel (!%p812_p4) target bundleno = 29 (0x1d), region = 32  ;;  %s184_s28 = sand.u32 (%p812_p4), 1, %s745_s19  }
  0x10   : > { %s650_s29 = sshll.u32 (%p812_p4), %s749_s20, 2  ;;  %s697_s30 = smul.u32 (%p812_p4), 36, %s184_s28 }
  0x11   : > { %s188_s8 = scalar_lea.vmem (%p812_p4), %s890_s1, %s650_s29 }
  0x12   : > { %v205_v0 = vld [vmem:[%s188_s8] sm:$0xf] (%p812_p4)  ;;  %v207_v1 = vld [vmem:[%s188_s8 + $0x8] sm:$0xf] (%p812_p4)  ;;  %v209_v2 = vld [vmem:[%s188_s8 + $0x10] sm:$0xf] (%p812_p4) }
  0x13   : > { %s186_s9 = scalar_lea.vmem (%p812_p4), [#allocation2], %s697_s30  ;;  %v211_v3 = vld [vmem:[%s188_s8 + $0x18] sm:$0xf] (%p812_p4)  ;;  %v213_v4 = vld [vmem:[%s188_s8 + $0x20] sm:$0xf] (%p812_p4) }
  0x14   : > { %206 = vst [vmem:[%s186_s9] sm:$0xf] %v205_v0  ;;  %v215_v5 = vld [vmem:[%s188_s8 + $0x28] sm:$0xf]  ;;  %v217_v6 = vld [vmem:[%s188_s8 + $0x30] sm:$0xf] }
  0x15   : > { %208 = vst [vmem:[%s186_s9 + $0x4] sm:$0xf] %v207_v1  ;;  %v219_v7 = vld [vmem:[%s188_s8 + $0x38] sm:$0xf]  ;;  %v221_v8 = vld [vmem:[%s188_s8 + $0x40] sm:$0xf] }
  0x16   : > { %210 = vst [vmem:[%s186_s9 + $0x8] sm:$0xf] %v209_v2 }
  0x17   : > { %212 = vst [vmem:[%s186_s9 + $0xc] sm:$0xf] %v211_v3 }
  0x18   : > { %214 = vst [vmem:[%s186_s9 + $0x10] sm:$0xf] %v213_v4 }
  0x19   : > { %216 = vst [vmem:[%s186_s9 + $0x14] sm:$0xf] %v215_v5 }
  0x1a   : > { %218 = vst [vmem:[%s186_s9 + $0x18] sm:$0xf] %v217_v6 }
  0x1b   : > { %220 = vst [vmem:[%s186_s9 + $0x1c] sm:$0xf] %v219_v7 }
  0x1c   : > { %222 = vst [vmem:[%s186_s9 + $0x20] sm:$0xf] %v221_v8 }
  0x1d PF: > { %264 = sbr.rel (!%p812_p4) target bundleno = 37 (0x25), region = 73  ;;  %s266_s10 = sand.u32 (%p812_p4), 1, %s745_s19  }
  0x1e   : > { %s652_s11 = sshll.u32 (%p812_p4), %s749_s20, 3  ;;  %s651_s12 = sshll.u32 (%p812_p4), %s266_s10, 5 }
  0x1f   : > { %s270_s15 = scalar_lea.vmem (%p812_p4), %s893_s4, %s652_s11  ;;  %s268_s16 = scalar_lea.vmem (%p812_p4), [#allocation3], %s651_s12 }
  0x20   : > { %v305_v9 = vld [vmem:[%s270_s15] sm:$0xff] (%p812_p4)  ;;  %v307_v10 = vld [vmem:[%s270_s15 + $0x10] sm:$0xff] (%p812_p4) }
  0x21   : > { %v309_v11 = vld [vmem:[%s270_s15 + $0x20] sm:$0xff] (%p812_p4)  ;;  %306 = vst [vmem:[%s268_s16] sm:$0xff] (%p812_p4), %v305_v9  ;;  %v311_v12 = vld [vmem:[%s270_s15 + $0x30] sm:$0xff] (%p812_p4) }
  0x22   : > { %308 = vst [vmem:[%s268_s16 + $0x8] sm:$0xff] %v307_v10 }
  0x23   : > { %310 = vst [vmem:[%s268_s16 + $0x10] sm:$0xff] %v309_v11 }
  0x24   : > { %312 = vst [vmem:[%s268_s16 + $0x18] sm:$0xff] %v311_v12 }
  0x25 PF: > { %p653_p7 = scmp.ge.s32.totalorder %s749_s20, 1  ;;  %p317_p8 = scmp.lt.s32.totalorder %s749_s20, 3 }
  0x27   : > { %p318_p9 = pnand %p653_p7, %p317_p8 }
  0x28   : > { %s324_s17 = sand.u32 (!%p318_p9), 1, %s741_s18  }
  0x29   : > { %321 = sbr.rel (%p318_p9) target bundleno = 224 (0xe0), region = 111  ;;  %s654_s30 = sshll.u32 (!%p318_p9), %s324_s17, 5 }
  0x2a   : > { %s698_s29 = smul.u32 (!%p318_p9), 36, %s324_s17  ;;  %s333_s6 = scalar_lea.vmem (!%p318_p9), [#allocation3], %s654_s30 }
  0x2b   : > { %s360_s18 = scalar_lea.vmem (!%p318_p9), [#allocation4], %s654_s30 }
  0x2c   : > { %s326_s7 = scalar_lea.vmem (!%p318_p9), [#allocation2], %s698_s29 }
  0x2e   : > { %v377_v13 = vld [vmem:[%s891_s2 + $0x10] sm:$0xff]  ;;  %v375_v14 = vld [vmem:[%s891_s2] sm:$0xff]  ;;  %v751_v15 = vmov 0   ;;  %vm443_vm0 = vcmask 1043456   ;;  %v378_v20 = vld [vmem:[%s891_s2 + $0x18] sm:$0xff]  ;;  %vm436_vm1 = vcmask 588800  }
  0x2f   : > { %725 = vset.pattern.permute.xlu1 %v751_v15  ;;  %724 = vset.pattern.permute.xlu0 %v751_v15  ;;  %v470_v16 = vld [vmem:[%s892_s3] sm:$0xff]  ;;  %v376_v21 = vld [vmem:[%s891_s2 + $0x8] sm:$0xff]  ;;  %v690_v25 = vld [vmem:[%s326_s7 + $0x10] sm:$0xff]  ;;  %s683_s17 = sshll.u32 (%p816_p5), %s646_s21, 3 }
  0x30   : > { %391 = vperm.xlu1 %725, %v377_v13   ;;  %381 = vperm.xlu0 %724, %v375_v14   ;;  %v374_v17 = vld [vmem:[%s326_s7 + $0x20] sm:$0xf]  ;;  %v471_v23 = vld [vmem:[%s892_s3 + $0x8] sm:$0xff]  ;;  %v691_v24 = vld [vmem:[%s326_s7 + $0x18] sm:$0xff]  ;;  %s526_s9 = scalar_lea.vmem (%p816_p5), %s894_s5, %s683_s17 }
  0x31   : > { %726 = vset.pattern.permute.xlu2 %v751_v15  ;;  %v426_v18 = vunpack.c.l.b16 %v374_v17  ;;  %v473_v26 = vld [vmem:[%s892_s3 + $0x18] sm:$0xff]  ;;  %v472_v27 = vld [vmem:[%s892_s3 + $0x10] sm:$0xff]  ;;  %v688_v29 = vld [vmem:[%s326_s7] sm:$0xff] }
  0x32   : > { %476 = vperm.xlu2 %726, %v470_v16   ;;  %v689_v28 = vld [vmem:[%s326_s7 + $0x8] sm:$0xff]  ;;  %v686_v30 = vld [vmem:[%s889_s0] sm:$0xff]  ;;  %v504_v38 = vld [vmem:[%s333_s6 + $0x10] sm:$0xff] }
  0x33   : > { %v431_v19 = vpack.c.b16 %v426_v18, %v426_v18  ;;  %v687_v31 = vld [vmem:[%s889_s0 + $0x8] sm:$0xff]  ;;  %v508_v45 = vmul.f32 -1.0, %v504_v38  ;;  %v503_v52 = vld [vmem:[%s333_s6 + $0x8] sm:$0xff]  ;;  %v505_v53 = vld [vmem:[%s333_s6 + $0x18] sm:$0xff] }
  0x34   : > { %v502_v37 = vld [vmem:[%s333_s6] sm:$0xff]  ;;  %v507_v60 = vmul.f32 -1.0, %v503_v52  ;;  %v509_v61 = vmul.f32 -1.0, %v505_v53 }
  0x35   : > { %v445_v22 = vsel %vm443_vm0, %v431_v19, 0  ;;  %v506_v44 = vmul.f32 -1.0, %v502_v37 }
  0x36   : > { %450 = vmatpush.bf16.msra.mxu0 %v445_v22  ;;  %692 = vmatpush.bf16.msra.mxu1 %v445_v22 }
  0x38   : > { %396 = vperm.xlu1 %725, %v378_v20   ;;  %386 = vperm.xlu0 %724, %v376_v21  }
  0x3a   : > { %481 = vperm.xlu2 %726, %v471_v23   ;;  %451 = vmatpush.bf16.msra.mxu0 %v691_v24 }
  0x3b   : > { %693 = vmatpush.bf16.msra.mxu1 %v691_v24 }
  0x3e   : > { %452 = vmatpush.bf16.msra.mxu0 %v690_v25 }
  0x3f   : > { %694 = vmatpush.bf16.msra.mxu1 %v690_v25 }
  0x40   : > { %491 = vperm.xlu1 %725, %v473_v26   ;;  %486 = vperm.xlu0 %724, %v472_v27  }
  0x42   : > { %453 = vmatpush.bf16.msra.mxu0 %v689_v28 }
  0x43   : > { %695 = vmatpush.bf16.msra.mxu1 %v689_v28 }
  0x46   : > { %454 = vmatpush.bf16.msra.mxu0 %v688_v29 }
  0x47   : > { %696 = vmatpush.bf16.msra.mxu1 %v688_v29 }
  0x49   : > { %680 = vmatmul.msk.bf16.vlgmr.msra.gmra.mxu0 %vm436_vm1, %v686_v30 }
  0x4a   : > { %681 = vmatmul.msk.bf16.vlgmr.msra.gmra.mxu1 %vm436_vm1, %v687_v31 }
  0x8c   : > { %v477_v36 = vpop.permute.xlu2 %476 }
  0x94   : > { %v482_v59 = vpop.permute.xlu2 %481 }
  0xa2   : > { %v382_v32 = vpop.permute.xlu0 %381  ;;  %v392_v33 = vpop.permute.xlu1 %391 }
  0xaa   : > { %v387_v34 = vpop.permute.xlu0 %386  ;;  %v397_v35 = vpop.permute.xlu1 %396 }
  0xb2   : > { %v487_v43 = vpop.permute.xlu0 %486  ;;  %v492_v58 = vpop.permute.xlu1 %491 }
  0xc6   : > { %v456_v39 = vpop.f32.mrf.mxu0 }
  0xc7   : > { %v461_v40 = vpop.f32.mrf.mxu1  ;;  %v457_v41 = vadd.f32 %v456_v39, %v382_v32 }
  0xc8   : > { %v462_v42 = vadd.f32 %v461_v40, %v392_v33 }
  0xc9   : > { %vm466_vm2 = vcmp.ge.f32.partialorder %v457_v41, 0.0  ;;  %v494_v46 = vmul.f32 %v477_v36, %v457_v41 }
  0xca   : > { %vm468_vm3 = vcmp.ge.f32.partialorder %v462_v42, 0.0  ;;  %v496_v47 = vmul.f32 %v487_v43, %v462_v42 }
  0xcb   : > { %v498_v48 = vsel %vm466_vm2, %v457_v41, %v494_v46 }
  0xcc   : > { %v500_v49 = vsel %vm468_vm3, %v462_v42, %v496_v47  ;;  %v510_v50 = vadd.f32 %v506_v44, %v498_v48 }
  0xcd   : > { %v512_v51 = vadd.f32 %v508_v45, %v500_v49 }
  0xce   : > { %514 = vst [vmem:[%s360_s18] sm:$0xff] %v510_v50  ;;  %v458_v54 = vpop.f32.mrf.mxu0 }
  0xcf   : > { %v463_v55 = vpop.f32.mrf.mxu1  ;;  %516 = vst [vmem:[%s360_s18 + $0x10] sm:$0xff] %v512_v51  ;;  %v459_v56 = vadd.f32 %v458_v54, %v387_v34 }
  0xd0   : > { %v464_v57 = vadd.f32 %v463_v55, %v397_v35 }
  0xd1   : > { %vm467_vm4 = vcmp.ge.f32.partialorder %v459_v56, 0.0  ;;  %v495_v62 = vmul.f32 %v482_v59, %v459_v56 }
  0xd2   : > { %vm469_vm5 = vcmp.ge.f32.partialorder %v464_v57, 0.0  ;;  %v497_v63 = vmul.f32 %v492_v58, %v464_v57 }
  0xd3   : > { %v499_v0 = vsel %vm467_vm4, %v459_v56, %v495_v62  ;;  %524 = sbr.rel (!%p816_p5) target bundleno = 224 (0xe0), region = 123 }
  0xd4   : > { %v501_v1 = vsel %vm469_vm5, %v464_v57, %v497_v63  ;;  %v511_v2 = vadd.f32 %v507_v60, %v499_v0 }
  0xd5   : > { %v513_v3 = vadd.f32 %v509_v61, %v501_v1  ;;  %v561_v4 = vld [vmem:[%s360_s18] sm:$0xff] (%p816_p5) }
  0xd6   : > { %515 = vst [vmem:[%s360_s18 + $0x8] sm:$0xff] %v511_v2  ;;  %v565_v6 = vld [vmem:[%s360_s18 + $0x10] sm:$0xff] (%p816_p5) }
  0xd7   : > { %517 = vst [vmem:[%s360_s18 + $0x18] sm:$0xff] %v513_v3 }
  0xd8   : > { %562 = vst [vmem:[%s526_s9] sm:$0xff] %v561_v4 }
  0xd9   : > { %566 = vst [vmem:[%s526_s9 + $0x20] sm:$0xff] %v565_v6 }
  0xdd   : > { %v563_v5 = vld [vmem:[%s360_s18 + $0x8] sm:$0xff] }
  0xde   : > { %v567_v7 = vld [vmem:[%s360_s18 + $0x18] sm:$0xff]  ;;  %564 = vst [vmem:[%s526_s9 + $0x10] sm:$0xff] %v563_v5 }
  0xdf   : > { %568 = vst [vmem:[%s526_s9 + $0x30] sm:$0xff] %v567_v7 }
  0xe0 PF: > { %p12_p10 = scmp.ge.s32.totalorder %s799_s22, 4   ;;  %s897_s18 = smov %s745_s19 }
  0xe1   : > { %s898_s19 = smov %s810_s25  ;;  %s899_s20 = smov %s799_s22 }
  0xe2   :  { %14 = sbr.rel (!%p12_p10) target bundleno = 2 (0x2), region = 200 }

// kernel: _lambda_.21
= control target key start
LH: loop header
LB: loop body
LE: loop exit
PB: predicated region body
PF: predicated region fallthrough
CT: control target
= control target key end

     0   :  { %s896_s18 = smov 0   ;;  %s898_s19 = smov 0   ;;  %s1061_s0 = inlined_call_operand.vmem [shape: bf16[8,288], index: 0, kind: input, shape index: {}]   ;;  %s1062_s1 = inlined_call_operand.vmem [shape: bf16[288,256], index: 1, kind: input, shape index: {}]   ;;  %s1063_s2 = inlined_call_operand.vmem [shape: f32[8,1], index: 2, kind: input, shape index: {}]   ;;  %s1064_s3 = inlined_call_operand.vmem [shape: f32[8,1], index: 3, kind: input, shape index: {}]   ;;  %s1065_s4 = inlined_call_operand.vmem [shape: f32[8,256], index: 4, kind: input, shape index: {}]   ;;  %s1066_s5 = inlined_call_operand.vmem [shape: f32[8,256], index: 5, kind: output, shape index: {}]  }
   0x1   :  { %s900_s20 = smov 0  }
   0x2 LB: > { %s712_s21 = sadd.s32 4294967295, %s863_s20   ;;  %s913_s22 = sadd.s32 1, %s863_s20   ;;  %s863_s20 = sphi %s900_s20, %s1069_s20   ;;  %s859_s19 = sphi %s898_s19, %s1068_s19   ;;  %s855_s18 = sphi %s896_s18, %s1067_s18  }
   0x3   : > { %s40_s23 = ssub.s32 %s863_s20, %s913_s22  ;;  %s43_s24 = sadd.s32 1, %s859_s19 }
   0x4   : > { %p41_p0 = scmp.eq.s32.totalorder %s40_s23, 0  ;;  %p50_p1 = scmp.ne.s32.totalorder %s859_s19, %s855_s18 }
   0x5   : > { %p51_p2 = scmp.eq.s32.totalorder %s863_s20, 0  ;;  %p715_p4 = scmp.ge.s32.totalorder %s863_s20, 2 }
   0x6   : > { %s922_s25 = scalar_select %p41_p0, %s859_s19, %s43_s24  }
   0x7   : > { %p52_p3 = por %p51_p2, %p50_p1  ;;  %179 = sbr.rel (%p715_p4) target bundleno = 53 (0x35), region = 28 }
   0xc   : > { %182 = sbr.rel (!%p52_p3) target bundleno = 53 (0x35), region = 32  ;;  %s184_s26 = sand.u32 (%p52_p3), 1, %s859_s19  }
   0xd   : > { %s716_s27 = sshll.u32 (%p52_p3), %s863_s20, 2  ;;  %s813_s28 = smul.u32 (%p52_p3), 144, %s184_s26 }
   0xe   : > { %s930_s6 = scalar_lea.vmem (%p52_p3), %s1062_s1, %s716_s27 }
   0xf   : > { %v205_v0 = vld [vmem:[%s930_s6] sm:$0xf] (%p52_p3)  ;;  %v207_v1 = vld [vmem:[%s930_s6 + $0x8] sm:$0xf] (%p52_p3)  ;;  %v209_v2 = vld [vmem:[%s930_s6 + $0x10] sm:$0xf] (%p52_p3) }
  0x10   : > { %s935_s7 = scalar_lea.vmem (%p52_p3), [#allocation2], %s813_s28  ;;  %v211_v3 = vld [vmem:[%s930_s6 + $0x18] sm:$0xf] (%p52_p3)  ;;  %v213_v4 = vld [vmem:[%s930_s6 + $0x20] sm:$0xf] (%p52_p3) }
  0x11   : > { %206 = vst [vmem:[%s935_s7] sm:$0xf] %v205_v0  ;;  %v215_v5 = vld [vmem:[%s930_s6 + $0x28] sm:$0xf]  ;;  %v217_v6 = vld [vmem:[%s930_s6 + $0x30] sm:$0xf] }
  0x12   : > { %208 = vst [vmem:[%s935_s7 + $0x4] sm:$0xf] %v207_v1  ;;  %v219_v7 = vld [vmem:[%s930_s6 + $0x38] sm:$0xf]  ;;  %v221_v8 = vld [vmem:[%s930_s6 + $0x40] sm:$0xf] }
  0x13   : > { %210 = vst [vmem:[%s935_s7 + $0x8] sm:$0xf] %v209_v2  ;;  %v223_v9 = vld [vmem:[%s930_s6 + $0x48] sm:$0xf]  ;;  %v225_v10 = vld [vmem:[%s930_s6 + $0x50] sm:$0xf] }
  0x14   : > { %212 = vst [vmem:[%s935_s7 + $0xc] sm:$0xf] %v211_v3  ;;  %v227_v11 = vld [vmem:[%s930_s6 + $0x58] sm:$0xf]  ;;  %v229_v12 = vld [vmem:[%s930_s6 + $0x60] sm:$0xf] }
  0x15   : > { %214 = vst [vmem:[%s935_s7 + $0x10] sm:$0xf] %v213_v4  ;;  %v231_v13 = vld [vmem:[%s930_s6 + $0x68] sm:$0xf]  ;;  %v233_v14 = vld [vmem:[%s930_s6 + $0x70] sm:$0xf] }
  0x16   : > { %216 = vst [vmem:[%s935_s7 + $0x14] sm:$0xf] %v215_v5  ;;  %v235_v15 = vld [vmem:[%s930_s6 + $0x78] sm:$0xf]  ;;  %v237_v16 = vld [vmem:[%s930_s6 + $0x80] sm:$0xf] }
  0x17   : > { %218 = vst [vmem:[%s935_s7 + $0x18] sm:$0xf] %v217_v6  ;;  %v239_v17 = vld [vmem:[%s930_s6 + $0x88] sm:$0xf]  ;;  %v241_v18 = vld [vmem:[%s930_s6 + $0x90] sm:$0xf] }
  0x18   : > { %220 = vst [vmem:[%s935_s7 + $0x1c] sm:$0xf] %v219_v7  ;;  %v243_v19 = vld [vmem:[%s930_s6 + $0x98] sm:$0xf]  ;;  %v245_v20 = vld [vmem:[%s930_s6 + $0xa0] sm:$0xf] }
  0x19   : > { %222 = vst [vmem:[%s935_s7 + $0x20] sm:$0xf] %v221_v8  ;;  %v247_v21 = vld [vmem:[%s930_s6 + $0xa8] sm:$0xf]  ;;  %v249_v22 = vld [vmem:[%s930_s6 + $0xb0] sm:$0xf] }
  0x1a   : > { %224 = vst [vmem:[%s935_s7 + $0x24] sm:$0xf] %v223_v9  ;;  %v251_v23 = vld [vmem:[%s930_s6 + $0xb8] sm:$0xf]  ;;  %v253_v24 = vld [vmem:[%s930_s6 + $0xc0] sm:$0xf] }
  0x1b   : > { %226 = vst [vmem:[%s935_s7 + $0x28] sm:$0xf] %v225_v10  ;;  %v255_v25 = vld [vmem:[%s930_s6 + $0xc8] sm:$0xf]  ;;  %v257_v26 = vld [vmem:[%s930_s6 + $0xd0] sm:$0xf] }
  0x1c   : > { %228 = vst [vmem:[%s935_s7 + $0x2c] sm:$0xf] %v227_v11  ;;  %v259_v27 = vld [vmem:[%s930_s6 + $0xd8] sm:$0xf]  ;;  %v261_v28 = vld [vmem:[%s930_s6 + $0xe0] sm:$0xf] }
  0x1d   : > { %230 = vst [vmem:[%s935_s7 + $0x30] sm:$0xf] %v229_v12  ;;  %v263_v29 = vld [vmem:[%s930_s6 + $0xe8] sm:$0xf]  ;;  %v265_v30 = vld [vmem:[%s930_s6 + $0xf0] sm:$0xf] }
  0x1e   : > { %232 = vst [vmem:[%s935_s7 + $0x34] sm:$0xf] %v231_v13  ;;  %v267_v31 = vld [vmem:[%s930_s6 + $0xf8] sm:$0xf]  ;;  %v269_v32 = vld [vmem:[%s930_s6 + $0x100] sm:$0xf] }
  0x1f   : > { %234 = vst [vmem:[%s935_s7 + $0x38] sm:$0xf] %v233_v14  ;;  %v271_v33 = vld [vmem:[%s930_s6 + $0x108] sm:$0xf]  ;;  %v273_v34 = vld [vmem:[%s930_s6 + $0x110] sm:$0xf] }
  0x20   : > { %236 = vst [vmem:[%s935_s7 + $0x3c] sm:$0xf] %v235_v15  ;;  %v275_v35 = vld [vmem:[%s930_s6 + $0x118] sm:$0xf] }
  0x21   : > { %238 = vst [vmem:[%s935_s7 + $0x40] sm:$0xf] %v237_v16 }
  0x22   : > { %240 = vst [vmem:[%s935_s7 + $0x44] sm:$0xf] %v239_v17 }
  0x23   : > { %242 = vst [vmem:[%s935_s7 + $0x48] sm:$0xf] %v241_v18 }
  0x24   : > { %244 = vst [vmem:[%s935_s7 + $0x4c] sm:$0xf] %v243_v19 }
  0x25   : > { %246 = vst [vmem:[%s935_s7 + $0x50] sm:$0xf] %v245_v20 }
  0x26   : > { %248 = vst [vmem:[%s935_s7 + $0x54] sm:$0xf] %v247_v21 }
  0x27   : > { %250 = vst [vmem:[%s935_s7 + $0x58] sm:$0xf] %v249_v22 }
  0x28   : > { %252 = vst [vmem:[%s935_s7 + $0x5c] sm:$0xf] %v251_v23 }
  0x29   : > { %254 = vst [vmem:[%s935_s7 + $0x60] sm:$0xf] %v253_v24 }
  0x2a   : > { %256 = vst [vmem:[%s935_s7 + $0x64] sm:$0xf] %v255_v25 }
  0x2b   : > { %258 = vst [vmem:[%s935_s7 + $0x68] sm:$0xf] %v257_v26 }
  0x2c   : > { %260 = vst [vmem:[%s935_s7 + $0x6c] sm:$0xf] %v259_v27 }
  0x2d   : > { %262 = vst [vmem:[%s935_s7 + $0x70] sm:$0xf] %v261_v28 }
  0x2e   : > { %264 = vst [vmem:[%s935_s7 + $0x74] sm:$0xf] %v263_v29 }
  0x2f   : > { %266 = vst [vmem:[%s935_s7 + $0x78] sm:$0xf] %v265_v30 }
  0x30   : > { %268 = vst [vmem:[%s935_s7 + $0x7c] sm:$0xf] %v267_v31 }
  0x31   : > { %270 = vst [vmem:[%s935_s7 + $0x80] sm:$0xf] %v269_v32 }
  0x32   : > { %272 = vst [vmem:[%s935_s7 + $0x84] sm:$0xf] %v271_v33 }
  0x33   : > { %274 = vst [vmem:[%s935_s7 + $0x88] sm:$0xf] %v273_v34 }
  0x34   : > { %276 = vst [vmem:[%s935_s7 + $0x8c] sm:$0xf] %v275_v35 }
  0x35 PF: > { %p717_p5 = scmp.ge.s32.totalorder %s863_s20, 1  ;;  %p378_p6 = scmp.lt.s32.totalorder %s863_s20, 3 }
  0x37   : > { %p379_p7 = pnand %p717_p5, %p378_p6 }
  0x38   : > { %s385_s8 = sand.u32 (!%p379_p7), 1, %s855_s18   ;;  %p415_p8 = scmp.lt.s32.totalorder (!%p379_p7), %s712_s21, 1 }
  0x39   : > { %382 = sbr.rel (%p379_p7) target bundleno = 232 (0xe8), region = 77 }
  0x3a   : > { %s814_s9 = smul.u32 (!%p379_p7), 144, %s385_s8 }
  0x3c   : > { %s1009_s10 = scalar_lea.vmem (!%p379_p7), [#allocation2], %s814_s9 }
  0x3e   : > { %v865_v36 = vmov 0   ;;  %v802_v37 = vld [vmem:[%s1009_s10 + $0x38] sm:$0xff]  ;;  %v801_v40 = vld [vmem:[%s1009_s10 + $0x30] sm:$0xff]  ;;  %v812_v42 = vld [vmem:[%s1009_s10 + $0x88] sm:$0xff]  ;;  %vm586_vm0 = vcmask 261120   ;;  %s1071_s21 = smov (!%p415_p8, %s712_s21), 1 }
  0x3f   : > { %840 = vset.pattern.permute.xlu0 %v865_v36  ;;  %v810_v38 = vld [vmem:[%s1009_s10 + $0x78] sm:$0xff]  ;;  %590 = vmatpush.bf16.msra.mxu0 %v802_v37  ;;  %v809_v41 = vld [vmem:[%s1009_s10 + $0x70] sm:$0xff]  ;;  %v811_v44 = vld [vmem:[%s1009_s10 + $0x80] sm:$0xff]  ;;  %s718_s23 = sshll.u32 %s1071_s21, 3 }
  0x40   : > { %v425_v39 = vld [vmem:[%s1061_s0 + $0x8] sm:$0xf]  ;;  %603 = vmatpush.bf16.msra.mxu1 %v810_v38  ;;  %622 = vmatpush.bf16.msra.mxu2 %v812_v42  ;;  %v462_v47 = vld [vmem:[%s1063_s2] sm:$0xff]  ;;  %s418_s27 = scalar_lea.vmem %s1065_s4, %s718_s23  ;;  %s422_s20 = scalar_lea.vmem %s1066_s5, %s718_s23 }
  0x41   : > { %v472_v43 = vunpack.c.l.b16 %v425_v39  ;;  %v800_v45 = vld [vmem:[%s1009_s10 + $0x28] sm:$0xff]  ;;  %465 = vperm.xlu0 %840, %v462_v47   ;;  %v799_v49 = vld [vmem:[%s1009_s10 + $0x20] sm:$0xff]  ;;  %v798_v52 = vld [vmem:[%s1009_s10 + $0x18] sm:$0xff] }
  0x42   : > { %v808_v46 = vld [vmem:[%s1009_s10 + $0x68] sm:$0xff]  ;;  %v807_v50 = vld [vmem:[%s1009_s10 + $0x60] sm:$0xff]  ;;  %v806_v53 = vld [vmem:[%s1009_s10 + $0x58] sm:$0xff] }
  0x43   : > { %591 = vmatpush.bf16.msra.mxu0 %v801_v40  ;;  %v475_v48 = vpack.c.b16 %v472_v43, %v472_v43  ;;  %v630_v51 = vld [vmem:[%s1064_s3] sm:$0xff]  ;;  %v796_v56 = vld [vmem:[%s1009_s10 + $0x8] sm:$0xff] }
  0x44   : > { %604 = vmatpush.bf16.msra.mxu1 %v809_v41  ;;  %623 = vmatpush.bf16.msra.mxu2 %v811_v44  ;;  %v797_v54 = vld [vmem:[%s1009_s10 + $0x10] sm:$0xff]  ;;  %v804_v57 = vld [vmem:[%s1009_s10 + $0x48] sm:$0xff]  ;;  %v795_v61 = vld [vmem:[%s1009_s10] sm:$0xff] }
  0x45   : > { %v805_v55 = vld [vmem:[%s1009_s10 + $0x50] sm:$0xff]  ;;  %v803_v62 = vld [vmem:[%s1009_s10 + $0x40] sm:$0xff] }
  0x46   : > { %v424_v58 = vld [vmem:[%s1061_s0] sm:$0xff] }
  0x47   : > { %592 = vmatpush.bf16.msra.mxu0 %v800_v45  ;;  %792 = vmatmul.msk.bf16.vlgmr.msra.gmra.mxu2 %vm586_vm0, %v475_v48  ;;  %v470_v59 = vunpack.c.l.b16 %v424_v58  ;;  %v471_v60 = vunpack.c.h.b16 %v424_v58  ;;  %v638_v11 = vld [vmem:[%s418_s27] sm:$0xff] }
  0x48   : > { %605 = vmatpush.bf16.msra.mxu1 %v808_v46 }
  0x49   : > { %633 = vperm.xlu0 %840, %v630_v51   ;;  %v473_v63 = vpack.c.b16 %v470_v59, %v470_v59  ;;  %v474_v0 = vpack.c.b16 %v471_v60, %v471_v60 }
  0x4b   : > { %593 = vmatpush.bf16.msra.mxu0 %v799_v49 }
  0x4c   : > { %606 = vmatpush.bf16.msra.mxu1 %v807_v50 }
  0x4f   : > { %594 = vmatpush.bf16.msra.mxu0 %v798_v52 }
  0x50   : > { %607 = vmatpush.bf16.msra.mxu1 %v806_v53 }
  0x53   : > { %595 = vmatpush.bf16.msra.mxu0 %v797_v54 }
  0x54   : > { %608 = vmatpush.bf16.msra.mxu1 %v805_v55 }
  0x57   : > { %596 = vmatpush.bf16.msra.mxu0 %v796_v56 }
  0x58   : > { %609 = vmatpush.bf16.msra.mxu1 %v804_v57 }
  0x5b   : > { %597 = vmatpush.bf16.msra.mxu0 %v795_v61 }
  0x5c   : > { %610 = vmatpush.bf16.msra.mxu1 %v803_v62 }
  0x5e   : > { %598 = vmatmul.bf16.vlgmr.msra.gmra.mxu0 %v473_v63 }
  0x5f   : > { %611 = vmatmul.bf16.vlgmr.msra.gmra.mxu1 %v474_v0 }
  0xb3   : > { %v466_v3 = vpop.permute.xlu0 %465 }
  0xbb   : > { %v634_v9 = vpop.permute.xlu0 %633 }
  0xca   : > { %v625_v1 = vpop.f32.mrf.mxu2 }
  0xd2   : > { %v627_v2 = vpop.f32.mrf.mxu2 }
  0xdb   : > { %v599_v4 = vpop.f32.mrf.mxu0 }
  0xdc   : > { %v612_v5 = vpop.f32.mrf.mxu1  ;;  %v600_v6 = vadd.f32 %v599_v4, %v466_v3 }
  0xde   : > { %v613_v7 = vadd.f32 %v612_v5, %v600_v6 }
  0xe0   : > { %v626_v8 = vadd.f32 %v625_v1, %v613_v7 }
  0xe2   : > { %vm629_vm1 = vcmp.ge.f32.partialorder %v626_v8, 0.0  ;;  %v636_v10 = vmul.f32 %v634_v9, %v626_v8 }
  0xe3   : > { %v601_v12 = vpop.f32.mrf.mxu0 }
  0xe4   : > { %v614_v13 = vpop.f32.mrf.mxu1  ;;  %v637_v14 = vsel %vm629_vm1, %v626_v8, %v636_v10 }
  0xe5   : > { %v639_v15 = vadd.f32 %v638_v11, %v637_v14 }
  0xe7   : > { %640 = vst [vmem:[%s422_s20] sm:$0xff] %v639_v15 }
  0xe8 PF: > { %p12_p9 = scmp.ge.s32.totalorder %s913_s22, 4   ;;  %s1067_s18 = smov %s859_s19 }
  0xe9   : > { %s1068_s19 = smov %s922_s25  ;;  %s1069_s20 = smov %s913_s22 }
  0xea   :  { %14 = sbr.rel (!%p12_p9) target bundleno = 2 (0x2), region = 119 }

// kernel: _lambda_.22
= control target key start
LH: loop header
LB: loop body
LE: loop exit
PB: predicated region body
PF: predicated region fallthrough
CT: control target
= control target key end

     0   :  { %s650_s15 = smov 0   ;;  %s652_s16 = smov 0   ;;  %s744_s0 = inlined_call_operand.vmem [shape: bf16[32,72], index: 0, kind: input, shape index: {}]   ;;  %s745_s1 = inlined_call_operand.vmem [shape: bf16[72,256], index: 1, kind: input, shape index: {}]   ;;  %s746_s2 = inlined_call_operand.vmem [shape: f32[32,1], index: 2, kind: input, shape index: {}]   ;;  %s747_s3 = inlined_call_operand.vmem [shape: f32[32,1], index: 3, kind: input, shape index: {}]   ;;  %s748_s4 = inlined_call_operand.vmem [shape: f32[32,256], index: 4, kind: output, shape index: {}]  }
   0x1   :  { %s654_s17 = smov 0  }
   0x2 LB: > { %s522_s18 = sadd.s32 4294967295, %s622_s17   ;;  %s667_s19 = sadd.s32 1, %s622_s17   ;;  %s622_s17 = sphi %s654_s17, %s752_s17   ;;  %s618_s16 = sphi %s652_s16, %s751_s16   ;;  %s614_s15 = sphi %s650_s15, %s750_s15  }
   0x3   : > { %s39_s20 = ssub.s32 %s622_s17, %s667_s19  ;;  %s42_s21 = sadd.s32 1, %s618_s16 }
   0x4   : > { %p40_p0 = scmp.eq.s32.totalorder %s39_s20, 0  ;;  %p49_p1 = scmp.ne.s32.totalorder %s618_s16, %s614_s15 }
   0x5   : > { %p50_p2 = scmp.eq.s32.totalorder %s622_s17, 0  ;;  %p121_p3 = scmp.eq.s32.totalorder %s522_s18, 1 }
   0x6   : > { %s678_s22 = scalar_select %p40_p0, %s618_s16, %s42_s21  }
   0x7   : > { %p51_p4 = por %p50_p2, %p49_p1  ;;  %p680_p5 = por %p121_p3, %p49_p1 }
   0x8   : > { %p525_p6 = scmp.ge.s32.totalorder %s622_s17, 2 }
   0xa   : > { %152 = sbr.rel (%p525_p6) target bundleno = 29 (0x1d), region = 28 }
   0xf   : > { %155 = sbr.rel (!%p51_p4) target bundleno = 29 (0x1d), region = 32  ;;  %s157_s24 = sand.u32 (%p51_p4), 1, %s618_s16  }
  0x10   : > { %s526_s25 = sshll.u32 (%p51_p4), %s622_s17, 2  ;;  %s570_s26 = smul.u32 (%p51_p4), 36, %s157_s24 }
  0x11   : > { %s161_s29 = scalar_lea.vmem (%p51_p4), %s745_s1, %s526_s25 }
  0x12   : > { %v178_v0 = vld [vmem:[%s161_s29] sm:$0xf] (%p51_p4)  ;;  %v180_v1 = vld [vmem:[%s161_s29 + $0x8] sm:$0xf] (%p51_p4)  ;;  %v182_v2 = vld [vmem:[%s161_s29 + $0x10] sm:$0xf] (%p51_p4) }
  0x13   : > { %s159_s30 = scalar_lea.vmem (%p51_p4), [#allocation2], %s570_s26  ;;  %v184_v3 = vld [vmem:[%s161_s29 + $0x18] sm:$0xf] (%p51_p4)  ;;  %v186_v4 = vld [vmem:[%s161_s29 + $0x20] sm:$0xf] (%p51_p4) }
  0x14   : > { %179 = vst [vmem:[%s159_s30] sm:$0xf] %v178_v0  ;;  %v188_v5 = vld [vmem:[%s161_s29 + $0x28] sm:$0xf]  ;;  %v190_v6 = vld [vmem:[%s161_s29 + $0x30] sm:$0xf] }
  0x15   : > { %181 = vst [vmem:[%s159_s30 + $0x4] sm:$0xf] %v180_v1  ;;  %v192_v7 = vld [vmem:[%s161_s29 + $0x38] sm:$0xf]  ;;  %v194_v8 = vld [vmem:[%s161_s29 + $0x40] sm:$0xf] }
  0x16   : > { %183 = vst [vmem:[%s159_s30 + $0x8] sm:$0xf] %v182_v2 }
  0x17   : > { %185 = vst [vmem:[%s159_s30 + $0xc] sm:$0xf] %v184_v3 }
  0x18   : > { %187 = vst [vmem:[%s159_s30 + $0x10] sm:$0xf] %v186_v4 }
  0x19   : > { %189 = vst [vmem:[%s159_s30 + $0x14] sm:$0xf] %v188_v5 }
  0x1a   : > { %191 = vst [vmem:[%s159_s30 + $0x18] sm:$0xf] %v190_v6 }
  0x1b   : > { %193 = vst [vmem:[%s159_s30 + $0x1c] sm:$0xf] %v192_v7 }
  0x1c   : > { %195 = vst [vmem:[%s159_s30 + $0x20] sm:$0xf] %v194_v8 }
  0x1d PF: > { %p527_p7 = scmp.ge.s32.totalorder %s622_s17, 1  ;;  %p236_p8 = scmp.lt.s32.totalorder %s622_s17, 3 }
  0x1f   : > { %p237_p9 = pnand %p527_p7, %p236_p8 }
  0x20   : > { %s243_s5 = sand.u32 (!%p237_p9), 1, %s614_s15  }
  0x21   : > { %240 = sbr.rel (%p237_p9) target bundleno = 214 (0xd6), region = 73 }
  0x22   : > { %s571_s10 = smul.u32 (!%p237_p9), 36, %s243_s5 }
  0x24   : > { %s245_s13 = scalar_lea.vmem (!%p237_p9), [#allocation2], %s571_s10  ;;  %s528_s10 = sshll.u32 (!%p237_p9), %s243_s5, 5 }
  0x25   : > { %s266_s11 = scalar_lea.vmem (!%p237_p9), [#allocation3], %s528_s10 }
  0x26   : > { %v283_v9 = vld [vmem:[%s746_s2 + $0x10] sm:$0xff]  ;;  %v281_v10 = vld [vmem:[%s746_s2] sm:$0xff]  ;;  %v624_v11 = vmov 0   ;;  %vm349_vm0 = vcmask 1043456   ;;  %v284_v16 = vld [vmem:[%s746_s2 + $0x18] sm:$0xff]  ;;  %vm342_vm1 = vcmask 588800  }
  0x27   : > { %598 = vset.pattern.permute.xlu1 %v624_v11  ;;  %597 = vset.pattern.permute.xlu0 %v624_v11  ;;  %v376_v12 = vld [vmem:[%s747_s3] sm:$0xff]  ;;  %v282_v17 = vld [vmem:[%s746_s2 + $0x8] sm:$0xff]  ;;  %v563_v21 = vld [vmem:[%s245_s13 + $0x10] sm:$0xff]  ;;  %s556_s15 = sshll.u32 (%p680_p5), %s522_s18, 3 }
  0x28   : > { %297 = vperm.xlu1 %598, %v283_v9   ;;  %287 = vperm.xlu0 %597, %v281_v10   ;;  %v280_v13 = vld [vmem:[%s245_s13 + $0x20] sm:$0xf]  ;;  %v377_v19 = vld [vmem:[%s747_s3 + $0x8] sm:$0xff]  ;;  %v564_v20 = vld [vmem:[%s245_s13 + $0x18] sm:$0xff] }
  0x29   : > { %599 = vset.pattern.permute.xlu2 %v624_v11  ;;  %v332_v14 = vunpack.c.l.b16 %v280_v13  ;;  %v379_v22 = vld [vmem:[%s747_s3 + $0x18] sm:$0xff]  ;;  %v378_v23 = vld [vmem:[%s747_s3 + $0x10] sm:$0xff]  ;;  %v561_v25 = vld [vmem:[%s245_s13] sm:$0xff] }
  0x2a   : > { %382 = vperm.xlu2 %599, %v376_v12   ;;  %v562_v24 = vld [vmem:[%s245_s13 + $0x8] sm:$0xff]  ;;  %v559_v26 = vld [vmem:[%s744_s0] sm:$0xff]  ;;  %s420_s13 = scalar_lea.vmem (%p680_p5), %s748_s4, %s556_s15 }
  0x2b   : > { %v337_v15 = vpack.c.b16 %v332_v14, %v332_v14  ;;  %v560_v27 = vld [vmem:[%s744_s0 + $0x8] sm:$0xff] }
  0x2d   : > { %v351_v18 = vsel %vm349_vm0, %v337_v15, 0 }
  0x2e   : > { %356 = vmatpush.bf16.msra.mxu0 %v351_v18  ;;  %565 = vmatpush.bf16.msra.mxu1 %v351_v18 }
  0x30   : > { %302 = vperm.xlu1 %598, %v284_v16   ;;  %292 = vperm.xlu0 %597, %v282_v17  }
  0x32   : > { %387 = vperm.xlu2 %599, %v377_v19   ;;  %357 = vmatpush.bf16.msra.mxu0 %v564_v20 }
  0x33   : > { %566 = vmatpush.bf16.msra.mxu1 %v564_v20 }
  0x36   : > { %358 = vmatpush.bf16.msra.mxu0 %v563_v21 }
  0x37   : > { %567 = vmatpush.bf16.msra.mxu1 %v563_v21 }
  0x38   : > { %397 = vperm.xlu1 %598, %v379_v22   ;;  %392 = vperm.xlu0 %597, %v378_v23  }
  0x3a   : > { %359 = vmatpush.bf16.msra.mxu0 %v562_v24 }
  0x3b   : > { %568 = vmatpush.bf16.msra.mxu1 %v562_v24 }
  0x3e   : > { %360 = vmatpush.bf16.msra.mxu0 %v561_v25 }
  0x3f   : > { %569 = vmatpush.bf16.msra.mxu1 %v561_v25 }
  0x41   : > { %553 = vmatmul.msk.bf16.vlgmr.msra.gmra.mxu0 %vm342_vm1, %v559_v26 }
  0x42   : > { %554 = vmatmul.msk.bf16.vlgmr.msra.gmra.mxu1 %vm342_vm1, %v560_v27 }
  0x84   : > { %v383_v32 = vpop.permute.xlu2 %382 }
  0x8c   : > { %v388_v47 = vpop.permute.xlu2 %387 }
  0x9a   : > { %v288_v28 = vpop.permute.xlu0 %287  ;;  %v298_v29 = vpop.permute.xlu1 %297 }
  0xa2   : > { %v293_v30 = vpop.permute.xlu0 %292  ;;  %v303_v31 = vpop.permute.xlu1 %302 }
  0xaa   : > { %v393_v37 = vpop.permute.xlu0 %392  ;;  %v398_v46 = vpop.permute.xlu1 %397 }
  0xbe   : > { %v362_v33 = vpop.f32.mrf.mxu0 }
  0xbf   : > { %v367_v34 = vpop.f32.mrf.mxu1  ;;  %v363_v35 = vadd.f32 %v362_v33, %v288_v28 }
  0xc0   : > { %v368_v36 = vadd.f32 %v367_v34, %v298_v29 }
  0xc1   : > { %vm372_vm2 = vcmp.ge.f32.partialorder %v363_v35, 0.0  ;;  %v400_v38 = vmul.f32 %v383_v32, %v363_v35 }
  0xc2   : > { %vm374_vm3 = vcmp.ge.f32.partialorder %v368_v36, 0.0  ;;  %v402_v39 = vmul.f32 %v393_v37, %v368_v36 }
  0xc3   : > { %v404_v40 = vsel %vm372_vm2, %v363_v35, %v400_v38 }
  0xc4   : > { %v406_v41 = vsel %vm374_vm3, %v368_v36, %v402_v39  ;;  %408 = vst [vmem:[%s266_s11] sm:$0xff] %v404_v40 }
  0xc5   : > { %410 = vst [vmem:[%s266_s11 + $0x10] sm:$0xff] %v406_v41 }
  0xc6   : > { %v364_v42 = vpop.f32.mrf.mxu0 }
  0xc7   : > { %v369_v43 = vpop.f32.mrf.mxu1  ;;  %v365_v44 = vadd.f32 %v364_v42, %v293_v30 }
  0xc8   : > { %v370_v45 = vadd.f32 %v369_v43, %v303_v31 }
  0xc9   : > { %vm373_vm4 = vcmp.ge.f32.partialorder %v365_v44, 0.0  ;;  %v401_v48 = vmul.f32 %v388_v47, %v365_v44  ;;  %418 = sbr.rel (!%p680_p5) target bundleno = 214 (0xd6), region = 81 }
  0xca   : > { %vm375_vm5 = vcmp.ge.f32.partialorder %v370_v45, 0.0  ;;  %v403_v49 = vmul.f32 %v398_v46, %v370_v45 }
  0xcb   : > { %v405_v50 = vsel %vm373_vm4, %v365_v44, %v401_v48  ;;  %v455_v52 = vld [vmem:[%s266_s11] sm:$0xff] (%p680_p5) }
  0xcc   : > { %v407_v51 = vsel %vm375_vm5, %v370_v45, %v403_v49  ;;  %409 = vst [vmem:[%s266_s11 + $0x8] sm:$0xff] %v405_v50  ;;  %v459_v54 = vld [vmem:[%s266_s11 + $0x10] sm:$0xff] (%p680_p5) }
  0xcd   : > { %411 = vst [vmem:[%s266_s11 + $0x18] sm:$0xff] %v407_v51 }
  0xce   : > { %456 = vst [vmem:[%s420_s13] sm:$0xff] %v455_v52 }
  0xcf   : > { %460 = vst [vmem:[%s420_s13 + $0x20] sm:$0xff] %v459_v54 }
  0xd3   : > { %v457_v53 = vld [vmem:[%s266_s11 + $0x8] sm:$0xff] }
  0xd4   : > { %v461_v55 = vld [vmem:[%s266_s11 + $0x18] sm:$0xff]  ;;  %458 = vst [vmem:[%s420_s13 + $0x10] sm:$0xff] %v457_v53 }
  0xd5   : > { %462 = vst [vmem:[%s420_s13 + $0x30] sm:$0xff] %v461_v55 }
  0xd6 PF: > { %p11_p10 = scmp.ge.s32.totalorder %s667_s19, 4   ;;  %s750_s15 = smov %s618_s16 }
  0xd7   : > { %s751_s16 = smov %s678_s22  ;;  %s752_s17 = smov %s667_s19 }
  0xd8   :  { %13 = sbr.rel (!%p11_p10) target bundleno = 2 (0x2), region = 150 }

// kernel: _lambda_.24
= control target key start
LH: loop header
LB: loop body
LE: loop exit
PB: predicated region body
PF: predicated region fallthrough
CT: control target
= control target key end

     0   :  { %s441_s18 = smov 0   ;;  %s474_s0 = inlined_call_operand.vmem [shape: bf16[8,2], index: 0, kind: input, shape index: {}]   ;;  %s475_s1 = inlined_call_operand.vmem [shape: bf16[2,1024], index: 1, kind: input, shape index: {}]   ;;  %s476_s2 = inlined_call_operand.vmem [shape: f32[8,1], index: 2, kind: input, shape index: {}]   ;;  %s477_s3 = inlined_call_operand.vmem [shape: f32[8,1], index: 3, kind: input, shape index: {}]   ;;  %s478_s4 = inlined_call_operand.vmem [shape: f32[8,1024], index: 4, kind: input, shape index: {}]   ;;  %s479_s5 = inlined_call_operand.vmem [shape: f32[8,1024], index: 5, kind: output, shape index: {}]  }
   0x1 LB: > { %s378_s19 = sadd.s32 4294967295, %s408_s18   ;;  %p382_p0 = scmp.ge.s32.totalorder %s408_s18, 1  ;;  %s408_s18 = sphi %s441_s18, %s15_s18  }
   0x2   : > { %p198_p1 = scmp.lt.s32.totalorder %s408_s18, 5 }
   0x4   : > { %p199_p2 = pnand %p382_p0, %p198_p1 }
   0x5   : > { %s383_s22 = sshll.u32 (!%p199_p2), %s378_s19, 1 }
   0x6   : > { %202 = sbr.rel (%p199_p2) target bundleno = 161 (0xa1), region = 40  ;;  %p231_p3 = scmp.lt.s32.totalorder (!%p199_p2), %s383_s22, 7 }
   0xb   : > { %v250_v0 = vld [vmem:[%s476_s2] sm:$0xff]  ;;  %v410_v1 = vmov 0   ;;  %s481_s22 = smov (!%p231_p3, %s383_s22), 7  ;;  %vm264_vm0 = vcmask 1040384   ;;  %vm260_vm1 = vcmask 15360  }
   0xc   : > { %401 = vset.pattern.permute.xlu0 %v410_v1  ;;  %s233_s25 = scalar_lea.vmem %s475_s1, %s481_s22  ;;  %v297_v3 = vld [vmem:[%s477_s3] sm:$0xff]  ;;  %s385_s30 = sshll.u32 %s481_s22, 3 }
   0xd   : > { %253 = vperm.xlu0 %401, %v250_v0   ;;  %v249_v2 = vld [vmem:[%s233_s25] sm:$0x3]  ;;  %s239_s8 = scalar_lea.vmem %s478_s4, %s385_s30  ;;  %s245_s11 = scalar_lea.vmem %s479_s5, %s385_s30 }
   0xe   : > { %257 = vst [vmem:[#allocation1] ss:$9 sm:$0xff] %v249_v2  ;;  %v248_v8 = vld [vmem:[%s474_s0] sm:$0xf]  ;;  %v308_v18 = vld [vmem:[%s239_s8 + $0x8] sm:$0xff] }
   0xf   : > { %v307_v16 = vld [vmem:[%s239_s8] sm:$0xff] }
  0x15   : > { %300 = vperm.xlu0 %401, %v297_v3   ;;  %v258_v4 = vld [vmem:[#allocation1] sm:$0xff]  ;;  %v259_v5 = vld [vmem:[#allocation1 + $0x9] sm:$0xff] }
  0x16   : > { %v265_v6 = vsel %vm264_vm0, %v258_v4, 0  ;;  %v267_v7 = vsel %vm264_vm0, %v259_v5, 0 }
  0x17   : > { %276 = vmatpush.bf16.msra.mxu0 %v265_v6  ;;  %289 = vmatpush.bf16.msra.mxu1 %v267_v7 }
  0x1a   : > { %388 = vmatmul.msk.bf16.vlgmr.msra.gmra.mxu0 %vm260_vm1, %v248_v8  ;;  %389 = vmatmul.msk.bf16.vlgmr.msra.gmra.mxu1 %vm260_vm1, %v248_v8 }
  0x7f   : > { %v254_v9 = vpop.permute.xlu0 %253 }
  0x87   : > { %v301_v14 = vpop.permute.xlu0 %300 }
  0x97   : > { %v278_v10 = vpop.f32.mrf.mxu0  ;;  %v291_v11 = vpop.f32.mrf.mxu1 }
  0x98   : > { %v279_v12 = vadd.f32 %v278_v10, %v254_v9  ;;  %v292_v13 = vadd.f32 %v291_v11, %v254_v9 }
  0x9a   : > { %vm295_vm2 = vcmp.ge.f32.partialorder %v279_v12, 0.0  ;;  %v303_v15 = vmul.f32 %v301_v14, %v279_v12  ;;  %vm296_vm3 = vcmp.ge.f32.partialorder %v292_v13, 0.0  ;;  %v304_v17 = vmul.f32 %v301_v14, %v292_v13 }
  0x9c   : > { %v305_v19 = vsel %vm295_vm2, %v279_v12, %v303_v15  ;;  %v306_v20 = vsel %vm296_vm3, %v292_v13, %v304_v17 }
  0x9d   : > { %v309_v21 = vadd.f32 %v307_v16, %v305_v19  ;;  %v310_v22 = vadd.f32 %v308_v18, %v306_v20 }
  0x9f   : > { %311 = vst [vmem:[%s245_s11] sm:$0xff] %v309_v21  ;;  %v280_v23 = vpop.f32.mrf.mxu0  ;;  %v293_v24 = vpop.f32.mrf.mxu1 }
  0xa0   : > { %312 = vst [vmem:[%s245_s11 + $0x8] sm:$0xff] %v310_v22 }
  0xa1 PF: > { %s15_s18 = sadd.s32 1, %s408_s18  }
  0xa2   : > { %p12_p4 = scmp.ge.s32.totalorder %s15_s18, 6  }
  0xa4   :  { %14 = sbr.rel (!%p12_p4) target bundleno = 1 (0x1), region = 73 }

// kernel: _lambda_.25
= control target key start
LH: loop header
LB: loop body
LE: loop exit
PB: predicated region body
PF: predicated region fallthrough
CT: control target
= control target key end

     0   :  { %s997_s12 = smov 0   ;;  %s999_s13 = smov 0   ;;  %s1211_s0 = inlined_call_operand.vmem [shape: bf16[3,288], index: 0, kind: input, shape index: {}]   ;;  %s1212_s1 = inlined_call_operand.vmem [shape: bf16[288,512], index: 1, kind: input, shape index: {}]   ;;  %s1213_s2 = inlined_call_operand.vmem [shape: f32[3,1], index: 2, kind: input, shape index: {}]   ;;  %s1214_s3 = inlined_call_operand.vmem [shape: f32[3,512], index: 3, kind: output, shape index: {}]  }
   0x1   :  { %s1001_s14 = smov 0  }
   0x2 LB: > { %s730_s15 = sadd.s32 4294967295, %s974_s14   ;;  %s1014_s16 = sadd.s32 1, %s974_s14   ;;  %s974_s14 = sphi %s1001_s14, %s1217_s14   ;;  %s970_s13 = sphi %s999_s13, %s1216_s13   ;;  %s966_s12 = sphi %s997_s12, %s1215_s12  }
   0x3   : > { %s38_s17 = ssub.s32 %s974_s14, %s1014_s16  ;;  %s41_s18 = sadd.s32 1, %s970_s13 }
   0x4   : > { %p39_p0 = scmp.eq.s32.totalorder %s38_s17, 0  ;;  %p48_p1 = scmp.ne.s32.totalorder %s970_s13, %s966_s12 }
   0x5   : > { %p49_p2 = scmp.eq.s32.totalorder %s974_s14, 0  ;;  %p733_p4 = scmp.ge.s32.totalorder %s974_s14, 2 }
   0x6   : > { %s1023_s19 = scalar_select %p39_p0, %s970_s13, %s41_s18  }
   0x7   : > { %p50_p3 = por %p49_p2, %p48_p1  ;;  %127 = sbr.rel (%p733_p4) target bundleno = 52 (0x34), region = 24 }
   0xc   : > { %130 = sbr.rel (!%p50_p3) target bundleno = 52 (0x34), region = 28  ;;  %s132_s20 = sand.u32 (%p50_p3), 1, %s970_s13  }
   0xd   : > { %s887_s21 = sshll.u32 (%p50_p3), %s974_s14, 3  ;;  %s924_s22 = smul.u32 (%p50_p3), 288, %s132_s20 }
   0xe   : > { %s1031_s25 = scalar_lea.vmem (%p50_p3), %s1212_s1, %s887_s21 }
   0xf   : > { %v236_v0 = vld [vmem:[%s1031_s25] sm:$0xff] (%p50_p3)  ;;  %v238_v1 = vld [vmem:[%s1031_s25 + $0x10] sm:$0xff] (%p50_p3)  ;;  %s1036_s26 = scalar_lea.vmem (%p50_p3), [#allocation2], %s924_s22 }
  0x10   : > { %v240_v2 = vld [vmem:[%s1031_s25 + $0x20] sm:$0xff] (%p50_p3)  ;;  %237 = vst [vmem:[%s1036_s26] sm:$0xff] (%p50_p3), %v236_v0  ;;  %v242_v3 = vld [vmem:[%s1031_s25 + $0x30] sm:$0xff] (%p50_p3) }
  0x11   : > { %239 = vst [vmem:[%s1036_s26 + $0x8] sm:$0xff] %v238_v1  ;;  %v244_v4 = vld [vmem:[%s1031_s25 + $0x40] sm:$0xff]  ;;  %v246_v5 = vld [vmem:[%s1031_s25 + $0x50] sm:$0xff] }
  0x12   : > { %241 = vst [vmem:[%s1036_s26 + $0x10] sm:$0xff] %v240_v2  ;;  %v248_v6 = vld [vmem:[%s1031_s25 + $0x60] sm:$0xff]  ;;  %v250_v7 = vld [vmem:[%s1031_s25 + $0x70] sm:$0xff] }
  0x13   : > { %243 = vst [vmem:[%s1036_s26 + $0x18] sm:$0xff] %v242_v3  ;;  %v252_v8 = vld [vmem:[%s1031_s25 + $0x80] sm:$0xff]  ;;  %v254_v9 = vld [vmem:[%s1031_s25 + $0x90] sm:$0xff] }
  0x14   : > { %245 = vst [vmem:[%s1036_s26 + $0x20] sm:$0xff] %v244_v4  ;;  %v256_v10 = vld [vmem:[%s1031_s25 + $0xa0] sm:$0xff]  ;;  %v258_v11 = vld [vmem:[%s1031_s25 + $0xb0] sm:$0xff] }
  0x15   : > { %247 = vst [vmem:[%s1036_s26 + $0x28] sm:$0xff] %v246_v5  ;;  %v260_v12 = vld [vmem:[%s1031_s25 + $0xc0] sm:$0xff]  ;;  %v262_v13 = vld [vmem:[%s1031_s25 + $0xd0] sm:$0xff] }
  0x16   : > { %249 = vst [vmem:[%s1036_s26 + $0x30] sm:$0xff] %v248_v6  ;;  %v264_v14 = vld [vmem:[%s1031_s25 + $0xe0] sm:$0xff]  ;;  %v266_v15 = vld [vmem:[%s1031_s25 + $0xf0] sm:$0xff] }
  0x17   : > { %251 = vst [vmem:[%s1036_s26 + $0x38] sm:$0xff] %v250_v7  ;;  %v268_v16 = vld [vmem:[%s1031_s25 + $0x100] sm:$0xff]  ;;  %v270_v17 = vld [vmem:[%s1031_s25 + $0x110] sm:$0xff] }
  0x18   : > { %253 = vst [vmem:[%s1036_s26 + $0x40] sm:$0xff] %v252_v8  ;;  %v272_v18 = vld [vmem:[%s1031_s25 + $0x120] sm:$0xff]  ;;  %v274_v19 = vld [vmem:[%s1031_s25 + $0x130] sm:$0xff] }
  0x19   : > { %255 = vst [vmem:[%s1036_s26 + $0x48] sm:$0xff] %v254_v9  ;;  %v276_v20 = vld [vmem:[%s1031_s25 + $0x140] sm:$0xff]  ;;  %v278_v21 = vld [vmem:[%s1031_s25 + $0x150] sm:$0xff] }
  0x1a   : > { %257 = vst [vmem:[%s1036_s26 + $0x50] sm:$0xff] %v256_v10  ;;  %v280_v22 = vld [vmem:[%s1031_s25 + $0x160] sm:$0xff]  ;;  %v282_v23 = vld [vmem:[%s1031_s25 + $0x170] sm:$0xff] }
  0x1b   : > { %259 = vst [vmem:[%s1036_s26 + $0x58] sm:$0xff] %v258_v11  ;;  %v284_v24 = vld [vmem:[%s1031_s25 + $0x180] sm:$0xff]  ;;  %v286_v25 = vld [vmem:[%s1031_s25 + $0x190] sm:$0xff] }
  0x1c   : > { %261 = vst [vmem:[%s1036_s26 + $0x60] sm:$0xff] %v260_v12  ;;  %v288_v26 = vld [vmem:[%s1031_s25 + $0x1a0] sm:$0xff]  ;;  %v290_v27 = vld [vmem:[%s1031_s25 + $0x1b0] sm:$0xff] }
  0x1d   : > { %263 = vst [vmem:[%s1036_s26 + $0x68] sm:$0xff] %v262_v13  ;;  %v292_v28 = vld [vmem:[%s1031_s25 + $0x1c0] sm:$0xff]  ;;  %v294_v29 = vld [vmem:[%s1031_s25 + $0x1d0] sm:$0xff] }
  0x1e   : > { %265 = vst [vmem:[%s1036_s26 + $0x70] sm:$0xff] %v264_v14  ;;  %v296_v30 = vld [vmem:[%s1031_s25 + $0x1e0] sm:$0xff]  ;;  %v298_v31 = vld [vmem:[%s1031_s25 + $0x1f0] sm:$0xff] }
  0x1f   : > { %267 = vst [vmem:[%s1036_s26 + $0x78] sm:$0xff] %v266_v15  ;;  %v300_v32 = vld [vmem:[%s1031_s25 + $0x200] sm:$0xff]  ;;  %v302_v33 = vld [vmem:[%s1031_s25 + $0x210] sm:$0xff] }
  0x20   : > { %269 = vst [vmem:[%s1036_s26 + $0x80] sm:$0xff] %v268_v16  ;;  %v304_v34 = vld [vmem:[%s1031_s25 + $0x220] sm:$0xff]  ;;  %v306_v35 = vld [vmem:[%s1031_s25 + $0x230] sm:$0xff] }
  0x21   : > { %271 = vst [vmem:[%s1036_s26 + $0x88] sm:$0xff] %v270_v17 }
  0x22   : > { %273 = vst [vmem:[%s1036_s26 + $0x90] sm:$0xff] %v272_v18 }
  0x23   : > { %275 = vst [vmem:[%s1036_s26 + $0x98] sm:$0xff] %v274_v19 }
  0x24   : > { %277 = vst [vmem:[%s1036_s26 + $0xa0] sm:$0xff] %v276_v20 }
  0x25   : > { %279 = vst [vmem:[%s1036_s26 + $0xa8] sm:$0xff] %v278_v21 }
  0x26   : > { %281 = vst [vmem:[%s1036_s26 + $0xb0] sm:$0xff] %v280_v22 }
  0x27   : > { %283 = vst [vmem:[%s1036_s26 + $0xb8] sm:$0xff] %v282_v23 }
  0x28   : > { %285 = vst [vmem:[%s1036_s26 + $0xc0] sm:$0xff] %v284_v24 }
  0x29   : > { %287 = vst [vmem:[%s1036_s26 + $0xc8] sm:$0xff] %v286_v25 }
  0x2a   : > { %289 = vst [vmem:[%s1036_s26 + $0xd0] sm:$0xff] %v288_v26 }
  0x2b   : > { %291 = vst [vmem:[%s1036_s26 + $0xd8] sm:$0xff] %v290_v27 }
  0x2c   : > { %293 = vst [vmem:[%s1036_s26 + $0xe0] sm:$0xff] %v292_v28 }
  0x2d   : > { %295 = vst [vmem:[%s1036_s26 + $0xe8] sm:$0xff] %v294_v29 }
  0x2e   : > { %297 = vst [vmem:[%s1036_s26 + $0xf0] sm:$0xff] %v296_v30 }
  0x2f   : > { %299 = vst [vmem:[%s1036_s26 + $0xf8] sm:$0xff] %v298_v31 }
  0x30   : > { %301 = vst [vmem:[%s1036_s26 + $0x100] sm:$0xff] %v300_v32 }
  0x31   : > { %303 = vst [vmem:[%s1036_s26 + $0x108] sm:$0xff] %v302_v33 }
  0x32   : > { %305 = vst [vmem:[%s1036_s26 + $0x110] sm:$0xff] %v304_v34 }
  0x33   : > { %307 = vst [vmem:[%s1036_s26 + $0x118] sm:$0xff] %v306_v35 }
  0x34 PF: > { %p736_p5 = scmp.ge.s32.totalorder %s974_s14, 1  ;;  %p312_p6 = scmp.lt.s32.totalorder %s974_s14, 3 }
  0x36   : > { %p313_p7 = pnand %p736_p5, %p312_p6 }
  0x37   : > { %s319_s27 = sand.u32 (!%p313_p7), 1, %s966_s12   ;;  %s737_s7 = sshll.u32 (!%p313_p7), %s730_s15, 1 }
  0x38   : > { %316 = sbr.rel (%p313_p7) target bundleno = 246 (0xf6), region = 66  ;;  %p344_p8 = scmp.lt.s32.totalorder (!%p313_p7), %s737_s7, 3 }
  0x39   : > { %s925_s30 = smul.u32 (!%p313_p7), 288, %s319_s27 }
  0x3b   : > { %s1113_s4 = scalar_lea.vmem (!%p313_p7), [#allocation2], %s925_s30 }
  0x3d   : > { %v350_v36 = vld [vmem:[%s1211_s0] sm:$0x3f]  ;;  %v797_v37 = vld [vmem:[%s1113_s4 + $0x70] sm:$0xf]  ;;  %v902_v42 = vld [vmem:[%s1113_s4 + $0x74] sm:$0xf] }
  0x3e   : > { %394 = vst [vmem:[#allocation1] ss:$4 sm:$0xff] %v350_v36  ;;  %v903_v38 = vld [vmem:[%s1113_s4 + $0x74] sm:$0xf0]  ;;  %v877_v39 = vld [vmem:[%s1113_s4 + $0x110] sm:$0xf] }
  0x3f   : > { %v798_v40 = vor.u32 %v903_v38, %v797_v37  ;;  %v923_v41 = vld [vmem:[%s1113_s4 + $0x114] sm:$0xf0]  ;;  %v799_v43 = vld [vmem:[%s1113_s4 + $0x78] sm:$0xf0]  ;;  %v861_v46 = vld [vmem:[%s1113_s4 + $0xf0] sm:$0xf] }
  0x40   : > { %v878_v44 = vor.u32 %v923_v41, %v877_v39  ;;  %v802_v45 = vor.u32 %v902_v42, %v799_v43  ;;  %v919_v47 = vld [vmem:[%s1113_s4 + $0xf4] sm:$0xf0]  ;;  %v789_v48 = vld [vmem:[%s1113_s4 + $0x60] sm:$0xf]  ;;  %v901_v50 = vld [vmem:[%s1113_s4 + $0x64] sm:$0xf0] }
  0x41   : > { %583 = vmatpush.bf16.msra.mxu0 %v798_v40  ;;  %v862_v49 = vor.u32 %v919_v47, %v861_v46  ;;  %v869_v51 = vld [vmem:[%s1113_s4 + $0x100] sm:$0xf]  ;;  %v921_v52 = vld [vmem:[%s1113_s4 + $0x104] sm:$0xf0]  ;;  %v790_v53 = vor.u32 %v901_v50, %v789_v48  ;;  %v900_v55 = vld [vmem:[%s1113_s4 + $0x64] sm:$0xf] }
  0x42   : > { %615 = vmatpush.bf16.msra.mxu2 %v878_v44  ;;  %622 = vmatpush.bf16.msra.mxu3 %v802_v45  ;;  %v870_v54 = vor.u32 %v921_v52, %v869_v51  ;;  %v791_v56 = vld [vmem:[%s1113_s4 + $0x68] sm:$0xf0]  ;;  %v918_v57 = vld [vmem:[%s1113_s4 + $0xf4] sm:$0xf]  ;;  %v863_v59 = vld [vmem:[%s1113_s4 + $0xf8] sm:$0xf0] }
  0x43   : > { %596 = vmatpush.bf16.msra.mxu1 %v862_v49  ;;  %v794_v58 = vor.u32 %v900_v55, %v791_v56  ;;  %v853_v60 = vld [vmem:[%s1113_s4 + $0xe0] sm:$0xf]  ;;  %v917_v61 = vld [vmem:[%s1113_s4 + $0xe4] sm:$0xf0]  ;;  %v866_v62 = vor.u32 %v918_v57, %v863_v59  ;;  %v781_v0 = vld [vmem:[%s1113_s4 + $0x50] sm:$0xf] }
  0x44   : > { %v854_v63 = vor.u32 %v917_v61, %v853_v60  ;;  %v899_v1 = vld [vmem:[%s1113_s4 + $0x54] sm:$0xf0]  ;;  %v898_v2 = vld [vmem:[%s1113_s4 + $0x54] sm:$0xf]  ;;  %v783_v4 = vld [vmem:[%s1113_s4 + $0x58] sm:$0xf0] }
  0x45   : > { %584 = vmatpush.bf16.msra.mxu0 %v790_v53  ;;  %v782_v3 = vor.u32 %v899_v1, %v781_v0  ;;  %v916_v5 = vld [vmem:[%s1113_s4 + $0xe4] sm:$0xf]  ;;  %v855_v6 = vld [vmem:[%s1113_s4 + $0xe8] sm:$0xf0]  ;;  %v786_v7 = vor.u32 %v898_v2, %v783_v4  ;;  %v845_v8 = vld [vmem:[%s1113_s4 + $0xd0] sm:$0xf] }
  0x46   : > { %616 = vmatpush.bf16.msra.mxu2 %v870_v54  ;;  %623 = vmatpush.bf16.msra.mxu3 %v794_v58  ;;  %v915_v9 = vld [vmem:[%s1113_s4 + $0xd4] sm:$0xf0]  ;;  %v773_v10 = vld [vmem:[%s1113_s4 + $0x40] sm:$0xf]  ;;  %v858_v11 = vor.u32 %v916_v5, %v855_v6  ;;  %v897_v13 = vld [vmem:[%s1113_s4 + $0x44] sm:$0xf0] }
  0x47   : > { %597 = vmatpush.bf16.msra.mxu1 %v854_v63  ;;  %v846_v12 = vor.u32 %v915_v9, %v845_v8  ;;  %v896_v14 = vld [vmem:[%s1113_s4 + $0x44] sm:$0xf]  ;;  %v775_v15 = vld [vmem:[%s1113_s4 + $0x48] sm:$0xf0]  ;;  %v914_v16 = vld [vmem:[%s1113_s4 + $0xd4] sm:$0xf]  ;;  %v774_v19 = vor.u32 %v897_v13, %v773_v10 }
  0x48   : > { %v847_v17 = vld [vmem:[%s1113_s4 + $0xd8] sm:$0xf0]  ;;  %v837_v18 = vld [vmem:[%s1113_s4 + $0xc0] sm:$0xf]  ;;  %v913_v20 = vld [vmem:[%s1113_s4 + $0xc4] sm:$0xf0]  ;;  %v778_v22 = vor.u32 %v896_v14, %v775_v15 }
  0x49   : > { %585 = vmatpush.bf16.msra.mxu0 %v782_v3  ;;  %v765_v21 = vld [vmem:[%s1113_s4 + $0x30] sm:$0xf]  ;;  %vm580_vm0 = vcmask 261120   ;;  %v895_v23 = vld [vmem:[%s1113_s4 + $0x34] sm:$0xf0]  ;;  %v850_v26 = vor.u32 %v914_v16, %v847_v17  ;;  %v838_v27 = vor.u32 %v913_v20, %v837_v18  ;;  %v976_v33 = vmov 0  }
  0x4a   : > { %635 = vmatpush.bf16.msrb.mxu2 %v866_v62  ;;  %624 = vmatpush.bf16.msra.mxu3 %v786_v7  ;;  %v894_v24 = vld [vmem:[%s1113_s4 + $0x34] sm:$0xf]  ;;  %v767_v25 = vld [vmem:[%s1113_s4 + $0x38] sm:$0xf0]  ;;  %v912_v29 = vld [vmem:[%s1113_s4 + $0xc4] sm:$0xf]  ;;  %v766_v34 = vor.u32 %v895_v23, %v765_v21 }
  0x4b   : > { %598 = vmatpush.bf16.msra.mxu1 %v846_v12  ;;  %v1153_v28 = vld.sshfl [vmem:[#allocation1 + $0x10] sm:$0xff pattern:$0x73625140]  ;;  %v829_v31 = vld [vmem:[%s1113_s4 + $0xb0] sm:$0xf]  ;;  %951 = vset.pattern.permute.xlu0 %v976_v33  ;;  %v770_v35 = vor.u32 %v894_v24, %v767_v25  ;;  %s1219_s7 = smov (!%p344_p8, %s737_s7), 3 }
  0x4c   : > { %883 = vmatmul.msk.bf16.vlgmr.msra.gmra.mxu2 %vm580_vm0, %v1153_v28  ;;  %v839_v30 = vld [vmem:[%s1113_s4 + $0xc8] sm:$0xf0]  ;;  %v911_v32 = vld [vmem:[%s1113_s4 + $0xb4] sm:$0xf0]  ;;  %v757_v36 = vld [vmem:[%s1113_s4 + $0x20] sm:$0xf] }
  0x4d   : > { %586 = vmatpush.bf16.msra.mxu0 %v774_v19  ;;  %v893_v37 = vld [vmem:[%s1113_s4 + $0x24] sm:$0xf0]  ;;  %v842_v38 = vor.u32 %v912_v29, %v839_v30  ;;  %v830_v39 = vor.u32 %v911_v32, %v829_v31  ;;  %v892_v40 = vld [vmem:[%s1113_s4 + $0x24] sm:$0xf]  ;;  %v759_v41 = vld [vmem:[%s1113_s4 + $0x28] sm:$0xf0] }
  0x4e   : > { %636 = vmatpush.bf16.msrb.mxu2 %v858_v11  ;;  %625 = vmatpush.bf16.msra.mxu3 %v778_v22  ;;  %v910_v42 = vld [vmem:[%s1113_s4 + $0xb4] sm:$0xf]  ;;  %v831_v43 = vld [vmem:[%s1113_s4 + $0xb8] sm:$0xf0]  ;;  %v821_v44 = vld [vmem:[%s1113_s4 + $0xa0] sm:$0xf]  ;;  %v758_v46 = vor.u32 %v893_v37, %v757_v36  ;;  %v762_v47 = vor.u32 %v892_v40, %v759_v41 }
  0x4f   : > { %599 = vmatpush.bf16.msra.mxu1 %v838_v27  ;;  %v909_v45 = vld [vmem:[%s1113_s4 + $0xa4] sm:$0xf0]  ;;  %v749_v48 = vld [vmem:[%s1113_s4 + $0x10] sm:$0xf]  ;;  %v891_v49 = vld [vmem:[%s1113_s4 + $0x14] sm:$0xf0]  ;;  %v834_v50 = vor.u32 %v910_v42, %v831_v43 }
  0x50   : > { %v822_v51 = vor.u32 %v909_v45, %v821_v44  ;;  %v890_v52 = vld [vmem:[%s1113_s4 + $0x14] sm:$0xf]  ;;  %v751_v53 = vld [vmem:[%s1113_s4 + $0x18] sm:$0xf0]  ;;  %v908_v54 = vld [vmem:[%s1113_s4 + $0xa4] sm:$0xf]  ;;  %v750_v58 = vor.u32 %v891_v49, %v749_v48 }
  0x51   : > { %587 = vmatpush.bf16.msra.mxu0 %v766_v34  ;;  %v823_v55 = vld [vmem:[%s1113_s4 + $0xa8] sm:$0xf0]  ;;  %v813_v56 = vld [vmem:[%s1113_s4 + $0x90] sm:$0xf]  ;;  %v907_v57 = vld [vmem:[%s1113_s4 + $0x94] sm:$0xf0]  ;;  %v754_v61 = vor.u32 %v890_v52, %v751_v53 }
  0x52   : > { %637 = vmatpush.bf16.msrb.mxu2 %v850_v26  ;;  %626 = vmatpush.bf16.msra.mxu3 %v770_v35  ;;  %v741_v59 = vld [vmem:[%s1113_s4] sm:$0xf]  ;;  %v889_v60 = vld [vmem:[%s1113_s4 + $0x4] sm:$0xf0]  ;;  %v888_v62 = vld [vmem:[%s1113_s4 + $0x4] sm:$0xf]  ;;  %v826_v1 = vor.u32 %v908_v54, %v823_v55  ;;  %v814_v2 = vor.u32 %v907_v57, %v813_v56 }
  0x53   : > { %600 = vmatpush.bf16.msra.mxu1 %v830_v39  ;;  %v743_v63 = vld [vmem:[%s1113_s4 + $0x8] sm:$0xf0]  ;;  %v906_v0 = vld [vmem:[%s1113_s4 + $0x94] sm:$0xf]  ;;  %v815_v3 = vld [vmem:[%s1113_s4 + $0x98] sm:$0xf0]  ;;  %v742_v9 = vor.u32 %v889_v60, %v741_v59 }
  0x54   : > { %v922_v4 = vld [vmem:[%s1113_s4 + $0x114] sm:$0xf]  ;;  %v879_v5 = vld [vmem:[%s1113_s4 + $0x118] sm:$0xf0]  ;;  %v805_v6 = vld [vmem:[%s1113_s4 + $0x80] sm:$0xf]  ;;  %v746_v10 = vor.u32 %v888_v62, %v743_v63  ;;  %v818_v12 = vor.u32 %v906_v0, %v815_v3 }
  0x55   : > { %588 = vmatpush.bf16.msra.mxu0 %v758_v46  ;;  %v905_v7 = vld [vmem:[%s1113_s4 + $0x84] sm:$0xf0]  ;;  %v387_v8 = vld [vmem:[%s1213_s2] sm:$0x7]  ;;  %v882_v11 = vor.u32 %v922_v4, %v879_v5  ;;  %v920_v14 = vld [vmem:[%s1113_s4 + $0x104] sm:$0xf] }
  0x56   : > { %638 = vmatpush.bf16.msrb.mxu2 %v842_v38  ;;  %627 = vmatpush.bf16.msra.mxu3 %v762_v47  ;;  %v806_v13 = vor.u32 %v905_v7, %v805_v6  ;;  %v871_v15 = vld [vmem:[%s1113_s4 + $0x108] sm:$0xf0]  ;;  %v904_v16 = vld [vmem:[%s1113_s4 + $0x84] sm:$0xf]  ;;  %s738_s8 = sshll.u32 %s1219_s7, 2  ;;  %vm664_vm1 = vcmask 1043456  }
  0x57   : > { %601 = vmatpush.bf16.msra.mxu1 %v822_v51  ;;  %390 = vperm.xlu0 %951, %v387_v8   ;;  %v807_v17 = vld [vmem:[%s1113_s4 + $0x88] sm:$0xf0]  ;;  %v395_v18 = vld.sshfl [vmem:[#allocation1] sm:$0xff pattern:$0x73625140]  ;;  %v874_v19 = vor.u32 %v920_v14, %v871_v15  ;;  %s347_s11 = scalar_lea.vmem %s1214_s3, %s738_s8 }
  0x58   : > { %v396_v20 = vld.sshfl [vmem:[#allocation1 + $0x8] sm:$0xff pattern:$0x73625140]  ;;  %v810_v21 = vor.u32 %v904_v16, %v807_v17 }
  0x59   : > { %589 = vmatpush.bf16.msra.mxu0 %v750_v58 }
  0x5a   : > { %639 = vmatpush.bf16.msrb.mxu2 %v834_v50  ;;  %628 = vmatpush.bf16.msra.mxu3 %v754_v61 }
  0x5b   : > { %602 = vmatpush.bf16.msra.mxu1 %v814_v2 }
  0x5d   : > { %590 = vmatpush.bf16.msra.mxu0 %v742_v9 }
  0x5e   : > { %640 = vmatpush.bf16.msrb.mxu2 %v826_v1  ;;  %629 = vmatpush.bf16.msra.mxu3 %v746_v10 }
  0x5f   : > { %603 = vmatpush.bf16.msra.mxu1 %v806_v13 }
  0x60   : > { %591 = vmatmul.bf16.vlgmr.msra.gmra.mxu0 %v395_v18 }
  0x61   : > { %654 = vmatpush.bf16.msrb.mxu0 %v882_v11  ;;  %630 = vmatmul.bf16.vlgmr.msra.gmra.mxu3 %v395_v18 }
  0x62   : > { %641 = vmatpush.bf16.msrb.mxu2 %v818_v12  ;;  %604 = vmatmul.bf16.vlgmr.msra.gmra.mxu1 %v396_v20 }
  0x65   : > { %655 = vmatpush.bf16.msrb.mxu0 %v874_v19 }
  0x66   : > { %642 = vmatpush.bf16.msrb.mxu2 %v810_v21 }
  0x69   : > { %643 = vmatmul.bf16.vlgmr.msrb.gmra.mxu2 %v396_v20 }
  0x70   : > { %884 = vmatmul.msk.bf16.vlgmr.msrb.gmra.mxu0 %vm580_vm0, %v1153_v28 }
  0xc9   : > { %v391_v27 = vpop.permute.xlu0 %390 }
  0xcf   : > { %v618_v22 = vpop.f32.mrf.mxu2 }
  0xd7   : > { %v620_v23 = vpop.f32.mrf.mxu2 }
  0xdd   : > { %v592_v24 = vpop.f32.mrf.mxu0 }
  0xde   : > { %v593_v32 = vadd.f32 %v592_v24, %v391_v27 }
  0xdf   : > { %v605_v25 = vpop.f32.mrf.mxu1 }
  0xe0   : > { %v606_v35 = vadd.f32 %v605_v25, %v593_v32 }
  0xe2   : > { %v619_v38 = vadd.f32 %v618_v22, %v606_v35 }
  0xe4   : > { %v631_v26 = vpop.f32.mrf.mxu3 }
  0xe5   : > { %v594_v29 = vpop.f32.mrf.mxu0  ;;  %v632_v30 = vadd.f32 %v631_v26, %v391_v27 }
  0xe7   : > { %v607_v31 = vpop.f32.mrf.mxu1 }
  0xec   : > { %v644_v33 = vpop.f32.mrf.mxu2  ;;  %v633_v36 = vpop.f32.mrf.mxu3 }
  0xed   : > { %v645_v34 = vadd.f32 %v644_v33, %v632_v30  ;;  %v657_v28 = vpop.f32.mrf.mxu0 }
  0xef   : > { %v658_v37 = vadd.f32 %v657_v28, %v645_v34 }
  0xf1   : > { %v663_v39 = vrot.slane %v658_v37, 4 }
  0xf3   : > { %v665_v41 = vsel %vm664_vm1, %v619_v38, %v663_v39 }
  0xf4   : > { %v646_v40 = vpop.f32.mrf.mxu2  ;;  %667 = vst [vmem:[%s347_s11] sm:$0x77] %v665_v41 }
  0xf5   : > { %v659_v42 = vpop.f32.mrf.mxu0 }
  0xf6 PF: > { %p10_p9 = scmp.ge.s32.totalorder %s1014_s16, 4   ;;  %s1215_s12 = smov %s970_s13 }
  0xf7   : > { %s1216_s13 = smov %s1023_s19  ;;  %s1217_s14 = smov %s1014_s16 }
  0xf8   :  { %12 = sbr.rel (!%p10_p9) target bundleno = 2 (0x2), region = 105 }

</bundles_post_ra>
